<compile_context>
chip_gen: v7x
topology: tpu7x:2x2x1
jax: 0.10.0
libtpu: 0.0.40
codegen_flags: <defaults>
</compile_context>

<pallas_src>
import functools
import math

import jax
import jax.numpy as jnp
from jax.experimental import pallas as pl
from jax.experimental.pallas import tpu as pltpu

EMBED = 32
HEADS = 4
HEAD_DIM = EMBED // HEADS
FWD_EXP = 4
HIDDEN = FWD_EXP * EMBED
EPS = 1e-5
NEG_INF = -1e20
INV_SQRT_D = 1.0 / math.sqrt(HEAD_DIM)

# packed bias / LayerNorm slab layout (rows): bo1, bo2, g1, be1, g2, be2,
# g3, be3, bf2 (first EMBED lanes), bf1 (first HIDDEN lanes)
NUM_VEC_ROWS = 10
VEC_WIDTH = 128
assert HIDDEN <= VEC_WIDTH and EMBED <= VEC_WIDTH

# packed weight slab layout (rows):
#   [0, E)            wf1.T   (E, HIDDEN)
#   [E, E+H)          wf2.T   (HIDDEN, E)   in lanes [0, E)
#   [E+H, 2E+H)       wo1.T   (E, E)        in lanes [0, E)
#   [2E+H, 3E+H)      wo2.T   (E, E)        in lanes [0, E)
W_ROWS = 3 * EMBED + HIDDEN          # 224
W_COLS = max(HIDDEN, 128)            # 128


# ---------------------------------------------------------------------------
# Pallas kernel: one grid step == one block of BB batch elements, fully fused
# ---------------------------------------------------------------------------
def decoder_block_kernel(mask_ref, kve_ref, q_ref, w_ref, vec_ref, out_ref):
    mm_dtype = w_ref.dtype                       # matmul operand dtype (bf16/f32)
    BB, _, S, E = kve_ref.shape
    rows = BB * S

    keep = mask_ref[...] != 0                    # (S, S) bool, 1 = keep

    vecs = vec_ref[...]                          # (10, 128) f32 slab
    bo1, bo2 = vecs[0:1, :EMBED], vecs[1:2, :EMBED]
    g1, be1 = vecs[2:3, :EMBED], vecs[3:4, :EMBED]
    g2, be2 = vecs[4:5, :EMBED], vecs[5:6, :EMBED]
    g3, be3 = vecs[6:7, :EMBED], vecs[7:8, :EMBED]
    bf2 = vecs[8:9, :EMBED]
    bf1 = vecs[9:10, :HIDDEN]

    w = w_ref[...]                               # (224, 128) weight slab
    wf1_t = w[0:EMBED, :HIDDEN]                  # (E, HIDDEN)
    wf2_t = w[EMBED:EMBED + HIDDEN, :EMBED]      # (HIDDEN, E)
    wo1_t = w[EMBED + HIDDEN:2 * EMBED + HIDDEN, :EMBED]       # (E, E)
    wo2_t = w[2 * EMBED + HIDDEN:3 * EMBED + HIDDEN, :EMBED]   # (E, E)

    def split_heads(x3):
        # (BB, S, E) -> (BB*H, S, D) via static lane slices (cheap at H=4)
        hs = [x3[:, :, h * HEAD_DIM:(h + 1) * HEAD_DIM] for h in range(HEADS)]
        return jnp.stack(hs, axis=1).reshape(BB * HEADS, S, HEAD_DIM)

    def softmax_lastdim(x):
        m = jnp.max(x, axis=-1, keepdims=True)
        e = jnp.exp(x - m)
        # EUP approximate reciprocal: frees VALU slots
        return e * pl.reciprocal(jnp.sum(e, axis=-1, keepdims=True), approx=True)

    def layer_norm(x, g, b):
        mu = jnp.mean(x, axis=-1, keepdims=True)
        var = jnp.mean((x - mu) ** 2, axis=-1, keepdims=True)
        return (x - mu) * jax.lax.rsqrt(var + EPS) * g + b

    def mha(qh_n, kh_n, vh_n, wo_t, bias):
        # qh_n / kh_n / vh_n: (BB*H, S, D) in mm_dtype; wo_t = fc_out.weight.T
        energy = jnp.einsum('nqd,nkd->nqk', qh_n, kh_n,
                            preferred_element_type=jnp.float32)      # (BBH, S, S)
        energy = jnp.where(keep[None, :, :], energy, NEG_INF)        # mask BEFORE scale
        att = softmax_lastdim(energy * INV_SQRT_D)
        ctx = jnp.einsum('nqk,nkd->nqd', att.astype(mm_dtype), vh_n,
                         preferred_element_type=jnp.float32)         # (BBH, S, D)
        ctx = ctx.reshape(BB, HEADS, S, HEAD_DIM)
        merged = jnp.concatenate([ctx[:, h] for h in range(HEADS)], axis=-1)  # (BB,S,E)
        out = jnp.dot(merged.reshape(rows, EMBED).astype(mm_dtype), wo_t,
                      preferred_element_type=jnp.float32)
        return out + bias                                            # (BB*S, E) f32

    # --- activations: k / v / enc in one slab, query once in f32 ---
    act = kve_ref[...]                           # (BB, 3, S, E) mm_dtype
    kh = split_heads(act[:, 0])
    vh = split_heads(act[:, 1])
    eh = split_heads(act[:, 2])

    q3 = q_ref[...]                              # (BB, S, E) f32
    q2 = q3.reshape(rows, EMBED)                 # residual path (f32)
    qh = split_heads(q3).astype(mm_dtype)

    # --- self attention + residual + norm1 (dropout == identity) ---
    attn = mha(qh, kh, vh, wo1_t, bo1)
    x = layer_norm(attn + q2, g1, be1)           # (BB*S, E) f32

    # --- encoder-decoder attention: keys/values = enc, query = x ---
    xh = split_heads(x.reshape(BB, S, EMBED)).astype(mm_dtype)
    enc_attn = mha(xh, eh, eh, wo2_t, bo2)
    x = layer_norm(enc_attn + x, g2, be2)

    # --- feed forward: Linear(E,4E) -> ReLU -> Linear(4E,E) ---
    h1 = jnp.maximum(
        jnp.dot(x.astype(mm_dtype), wf1_t,
                preferred_element_type=jnp.float32) + bf1, 0.0)      # (BB*S, 4E)
    ff = jnp.dot(h1.astype(mm_dtype), wf2_t,
                 preferred_element_type=jnp.float32) + bf2           # (BB*S, E)

    out = layer_norm(ff + x, g3, be3)
    out_ref[...] = out.reshape(BB, S, EMBED).astype(out_ref.dtype)


# ---------------------------------------------------------------------------
# Wrapper: layout plumbing + pallas_call
# ---------------------------------------------------------------------------
def _choose_batch_block(n, max_block=16):
    # largest divisor of n (<= max_block) that keeps grid length >= 2 (v7x: 2 TCs)
    best = 1
    for bb in range(1, min(n, max_block) + 1):
        if n % bb == 0 and (n // bb >= 2 or n == 1):
            best = bb
    return best


@functools.partial(jax.jit, static_argnames=("matmul_dtype", "batch_block"))
def transformer_decoder_block(value, key, query, enc_out, mask, params,
                              matmul_dtype=jnp.bfloat16, batch_block=None):
    N, S, E = query.shape
    assert E == EMBED

    (wo1, bo1, wo2, bo2, g1, be1, g2, be2, g3, be3, wf1, bf1, wf2, bf2) = params

    bb = batch_block if batch_block is not None else _choose_batch_block(N)
    assert N % bb == 0, "batch must be divisible by the batch block"
    grid = (N // bb,)

    # activations: k / v / enc in one slab (1 DMA), query once in f32 (residual)
    kve = jnp.stack([key, value, enc_out], axis=1).astype(matmul_dtype)   # (N,3,S,E)
    q_f32 = query.astype(jnp.float32)                                     # (N,S,E)

    mask_i8 = (mask != 0).astype(jnp.int8)       # (S, S), 1 = keep

    # packed weight slab (pre-transposed, PyTorch layout W:(out,in))
    w_slab = jnp.zeros((W_ROWS, W_COLS), jnp.float32)
    w_slab = w_slab.at[0:EMBED, :HIDDEN].set(wf1.T.astype(jnp.float32))
    w_slab = w_slab.at[EMBED:EMBED + HIDDEN, :EMBED].set(wf2.T.astype(jnp.float32))
    w_slab = w_slab.at[EMBED + HIDDEN:2 * EMBED + HIDDEN, :EMBED].set(
        wo1.T.astype(jnp.float32))
    w_slab = w_slab.at[2 * EMBED + HIDDEN:3 * EMBED + HIDDEN, :EMBED].set(
        wo2.T.astype(jnp.float32))
    w_slab = w_slab.astype(matmul_dtype)

    # packed bias / LayerNorm vector slab (stays f32)
    vec = jnp.zeros((NUM_VEC_ROWS, VEC_WIDTH), jnp.float32)
    for i, r in enumerate((bo1, bo2, g1, be1, g2, be2, g3, be3, bf2)):
        vec = vec.at[i, :EMBED].set(r.reshape(-1).astype(jnp.float32))
    vec = vec.at[9, :HIDDEN].set(bf1.reshape(-1).astype(jnp.float32))

    kve_spec = pl.BlockSpec((bb, 3, S, E), lambda b: (b, 0, 0, 0))
    q_spec = pl.BlockSpec((bb, S, E), lambda b: (b, 0, 0))
    out_spec = pl.BlockSpec((bb, S, E), lambda b: (b, 0, 0))
    const = lambda a: pl.BlockSpec(a.shape, lambda b, n=a.ndim: (0,) * n)

    return pl.pallas_call(
        decoder_block_kernel,
        out_shape=jax.ShapeDtypeStruct((N, S, E), query.dtype),
        grid_spec=pltpu.PrefetchScalarGridSpec(
            num_scalar_prefetch=0,
            grid=grid,
            in_specs=[const(mask_i8), kve_spec, q_spec, const(w_slab), const(vec)],
            out_specs=out_spec),
        compiler_params=pltpu.CompilerParams(
            dimension_semantics=("parallel",),
            vmem_limit_bytes=32 * 1024 * 1024),
    )(mask_i8, kve, q_f32, w_slab, vec)


# ---------------------------------------------------------------------------
# Deterministic parameter init (shapes from the module's __init__)
# ---------------------------------------------------------------------------
def init_params(rng):
    def lin(k, out_f, in_f):
        bound = 1.0 / math.sqrt(in_f)
        kw, kb = jax.random.split(k)
        w = jax.random.uniform(kw, (out_f, in_f), jnp.float32, -bound, bound)
        b = jax.random.uniform(kb, (out_f,), jnp.float32, -bound, bound)
        return w, b

    ks = jax.random.split(rng, 4)
    wo1, bo1 = lin(ks[0], EMBED, EMBED)      # attention.fc_out
    wo2, bo2 = lin(ks[1], EMBED, EMBED)      # encoder_attention.fc_out
    wf1, bf1 = lin(ks[2], HIDDEN, EMBED)     # feed_forward[0]
    wf2, bf2 = lin(ks[3], EMBED, HIDDEN)     # feed_forward[2]
    ones = jnp.ones((EMBED,), jnp.float32)
    zeros = jnp.zeros((EMBED,), jnp.float32)
    return (wo1, bo1, wo2, bo2,
            ones, zeros, ones, zeros, ones, zeros,
            wf1, bf1, wf2, bf2)


# ---------------------------------------------------------------------------
# Pure-JAX reference (mirrors the PyTorch forward exactly, f32)
# ---------------------------------------------------------------------------
def ref_block(value, key, query, enc_out, mask, params):
    (wo1, bo1, wo2, bo2, g1, be1, g2, be2, g3, be3, wf1, bf1, wf2, bf2) = params

    def mha(v, k, q, w, b):
        N, S, E = q.shape
        qh = q.reshape(N, S, HEADS, HEAD_DIM).transpose(2, 0, 1, 3)
        kh = k.reshape(N, S, HEADS, HEAD_DIM).transpose(2, 0, 1, 3)
        vh = v.reshape(N, S, HEADS, HEAD_DIM).transpose(2, 0, 1, 3)
        energy = jnp.einsum('hnqd,hnkd->hnqk', qh, kh)
        energy = jnp.where(mask == 0, NEG_INF, energy)
        att = jax.nn.softmax(energy / math.sqrt(HEAD_DIM), axis=-1)
        o = jnp.einsum('hnqk,hnkd->hnqd', att, vh)
        o = o.transpose(1, 2, 0, 3).reshape(N, S, E)
        return o @ w.T + b

    def ln(x, g, b):
        mu = jnp.mean(x, axis=-1, keepdims=True)
        var = jnp.mean((x - mu) ** 2, axis=-1, keepdims=True)
        return (x - mu) / jnp.sqrt(var + EPS) * g + b

    attn = mha(value, key, query, wo1, bo1)
    q = ln(attn + query, g1, be1)
    enc_attn = mha(enc_out, enc_out, q, wo2, bo2)
    q = ln(enc_attn + q, g2, be2)
    h = jnp.maximum(q @ wf1.T + bf1, 0.0)
    ff = h @ wf2.T + bf2
    return ln(ff + q, g3, be3)


if __name__ == "__main__":
    N, S = 16, 8                                  # batch-block 8 -> grid length 2
    root = jax.random.PRNGKey(0)
    k1, k2, k3, k4, kp = jax.random.split(root, 5)
    value = jax.random.normal(k1, (N, S, EMBED), jnp.float32)
    key = jax.random.normal(k2, (N, S, EMBED), jnp.float32)
    query = jax.random.normal(k3, (N, S, EMBED), jnp.float32)
    enc_out = jax.random.normal(k4, (N, S, EMBED), jnp.float32)
    mask = jnp.tril(jnp.ones((S, S), jnp.float32))  # causal mask, broadcast

    params = init_params(kp)
    ref = ref_block(value, key, query, enc_out, mask, params)

    # f32 matmul path (only approximation: EUP softmax reciprocal)
    out_f32 = jax.block_until_ready(
        transformer_decoder_block(value, key, query, enc_out, mask, params,
                                  matmul_dtype=jnp.float32))
    assert out_f32.shape == (N, S, EMBED)
    assert jnp.allclose(out_f32, ref, rtol=1e-2, atol=1e-2), "f32 kernel mismatch"

    # default path: bf16 matmul operands, f32 accumulation / LN / softmax
    out_bf16 = jax.block_until_ready(
        transformer_decoder_block(value, key, query, enc_out, mask, params))
    assert out_bf16.shape == (N, S, EMBED)
    assert jnp.allclose(out_bf16, ref, rtol=1e-1, atol=1e-1), "bf16 kernel mismatch"

    print("KERNEL_OK")
</pallas_src>

<mosaic_0001>
module attributes {stable_mosaic.version = 11 : i64} {
  func.func @decoder_block_kernel(%arg0: i32, %arg1: memref<8x8xi8, #tpu.memory_space<vmem>>, %arg2: memref<8x3x8x32xf32, #tpu.memory_space<vmem>>, %arg3: memref<8x8x32xf32, #tpu.memory_space<vmem>>, %arg4: memref<224x128xf32, #tpu.memory_space<vmem>>, %arg5: memref<10x128xf32, #tpu.memory_space<vmem>>, %arg6: memref<8x8x32xf32, #tpu.memory_space<vmem>>) attributes {dimension_semantics = [#tpu.dimension_semantics<parallel>], iteration_bounds = array<i64: 2>, scalar_prefetch = 0 : i64, scratch_operands = 0 : i64, tpu.core_type = #tpu.core_type<tc>, window_params = [{pipeline_mode = #tpu.pipeline_mode<synchronous>, transform_indices = @transform_0, window_bounds = array<i64: 8, 8>}, {transform_indices = @transform_1, window_bounds = array<i64: 8, 3, 8, 32>}, {transform_indices = @transform_2, window_bounds = array<i64: 8, 8, 32>}, {pipeline_mode = #tpu.pipeline_mode<synchronous>, transform_indices = @transform_3, window_bounds = array<i64: 224, 128>}, {pipeline_mode = #tpu.pipeline_mode<synchronous>, transform_indices = @transform_4, window_bounds = array<i64: 10, 128>}, {transform_indices = @transform_5, window_bounds = array<i64: 8, 8, 32>}]} {
    %c0 = arith.constant 0 : index
    %c0_0 = arith.constant 0 : index
    %0 = vector.load %arg1[%c0, %c0_0] : memref<8x8xi8, #tpu.memory_space<vmem>>, vector<8x8xi8>
    %c0_i8 = arith.constant 0 : i8
    %1 = vector.broadcast %c0_i8 : i8 to vector<8x8xi8>
    %2 = arith.cmpi ne, %0, %1 : vector<8x8xi8>
    %c0_1 = arith.constant 0 : index
    %c0_2 = arith.constant 0 : index
    %3 = vector.load %arg5[%c0_1, %c0_2] : memref<10x128xf32, #tpu.memory_space<vmem>>, vector<10x128xf32>
    %4 = vector.extract_strided_slice %3 {offsets = [0, 0], sizes = [1, 32], strides = [1, 1]} : vector<10x128xf32> to vector<1x32xf32>
    %5 = vector.extract_strided_slice %3 {offsets = [1, 0], sizes = [1, 32], strides = [1, 1]} : vector<10x128xf32> to vector<1x32xf32>
    %6 = vector.extract_strided_slice %3 {offsets = [2, 0], sizes = [1, 32], strides = [1, 1]} : vector<10x128xf32> to vector<1x32xf32>
    %7 = vector.extract_strided_slice %3 {offsets = [3, 0], sizes = [1, 32], strides = [1, 1]} : vector<10x128xf32> to vector<1x32xf32>
    %8 = vector.extract_strided_slice %3 {offsets = [4, 0], sizes = [1, 32], strides = [1, 1]} : vector<10x128xf32> to vector<1x32xf32>
    %9 = vector.extract_strided_slice %3 {offsets = [5, 0], sizes = [1, 32], strides = [1, 1]} : vector<10x128xf32> to vector<1x32xf32>
    %10 = vector.extract_strided_slice %3 {offsets = [6, 0], sizes = [1, 32], strides = [1, 1]} : vector<10x128xf32> to vector<1x32xf32>
    %11 = vector.extract_strided_slice %3 {offsets = [7, 0], sizes = [1, 32], strides = [1, 1]} : vector<10x128xf32> to vector<1x32xf32>
    %12 = vector.extract_strided_slice %3 {offsets = [8, 0], sizes = [1, 32], strides = [1, 1]} : vector<10x128xf32> to vector<1x32xf32>
    %13 = vector.extract_strided_slice %3 {offsets = [9, 0], sizes = [1, 128], strides = [1, 1]} : vector<10x128xf32> to vector<1x128xf32>
    %c0_3 = arith.constant 0 : index
    %c0_4 = arith.constant 0 : index
    %14 = vector.load %arg4[%c0_3, %c0_4] : memref<224x128xf32, #tpu.memory_space<vmem>>, vector<224x128xf32>
    %15 = vector.extract_strided_slice %14 {offsets = [0, 0], sizes = [32, 128], strides = [1, 1]} : vector<224x128xf32> to vector<32x128xf32>
    %16 = vector.extract_strided_slice %14 {offsets = [32, 0], sizes = [128, 32], strides = [1, 1]} : vector<224x128xf32> to vector<128x32xf32>
    %17 = vector.extract_strided_slice %14 {offsets = [160, 0], sizes = [32, 32], strides = [1, 1]} : vector<224x128xf32> to vector<32x32xf32>
    %18 = vector.extract_strided_slice %14 {offsets = [192, 0], sizes = [32, 32], strides = [1, 1]} : vector<224x128xf32> to vector<32x32xf32>
    %c0_5 = arith.constant 0 : index
    %c0_6 = arith.constant 0 : index
    %c0_7 = arith.constant 0 : index
    %c0_8 = arith.constant 0 : index
    %19 = vector.load %arg2[%c0_5, %c0_6, %c0_7, %c0_8] : memref<8x3x8x32xf32, #tpu.memory_space<vmem>>, vector<8x3x8x32xf32>
    %20 = vector.extract_strided_slice %19 {offsets = [0, 0, 0, 0], sizes = [8, 1, 8, 32], strides = [1, 1, 1, 1]} : vector<8x3x8x32xf32> to vector<8x1x8x32xf32>
    %21 = vector.shape_cast %20 : vector<8x1x8x32xf32> to vector<8x8x32xf32>
    %22 = vector.extract_strided_slice %21 {offsets = [0, 0, 0], sizes = [8, 8, 8], strides = [1, 1, 1]} : vector<8x8x32xf32> to vector<8x8x8xf32>
    %23 = vector.extract_strided_slice %21 {offsets = [0, 0, 8], sizes = [8, 8, 8], strides = [1, 1, 1]} : vector<8x8x32xf32> to vector<8x8x8xf32>
    %24 = vector.extract_strided_slice %21 {offsets = [0, 0, 16], sizes = [8, 8, 8], strides = [1, 1, 1]} : vector<8x8x32xf32> to vector<8x8x8xf32>
    %25 = vector.extract_strided_slice %21 {offsets = [0, 0, 24], sizes = [8, 8, 8], strides = [1, 1, 1]} : vector<8x8x32xf32> to vector<8x8x8xf32>
    %26 = vector.shape_cast %22 : vector<8x8x8xf32> to vector<8x1x8x8xf32>
    %27 = vector.shape_cast %23 : vector<8x8x8xf32> to vector<8x1x8x8xf32>
    %28 = vector.shape_cast %24 : vector<8x8x8xf32> to vector<8x1x8x8xf32>
    %29 = vector.shape_cast %25 : vector<8x8x8xf32> to vector<8x1x8x8xf32>
    %30 = tpu.concatenate %26, %27, %28, %29 in 1 : vector<8x1x8x8xf32>, vector<8x1x8x8xf32>, vector<8x1x8x8xf32>, vector<8x1x8x8xf32> -> vector<8x4x8x8xf32>
    %31 = vector.shape_cast %30 : vector<8x4x8x8xf32> to vector<32x8x8xf32>
    %32 = vector.extract_strided_slice %19 {offsets = [0, 1, 0, 0], sizes = [8, 1, 8, 32], strides = [1, 1, 1, 1]} : vector<8x3x8x32xf32> to vector<8x1x8x32xf32>
    %33 = vector.shape_cast %32 : vector<8x1x8x32xf32> to vector<8x8x32xf32>
    %34 = vector.extract_strided_slice %33 {offsets = [0, 0, 0], sizes = [8, 8, 8], strides = [1, 1, 1]} : vector<8x8x32xf32> to vector<8x8x8xf32>
    %35 = vector.extract_strided_slice %33 {offsets = [0, 0, 8], sizes = [8, 8, 8], strides = [1, 1, 1]} : vector<8x8x32xf32> to vector<8x8x8xf32>
    %36 = vector.extract_strided_slice %33 {offsets = [0, 0, 16], sizes = [8, 8, 8], strides = [1, 1, 1]} : vector<8x8x32xf32> to vector<8x8x8xf32>
    %37 = vector.extract_strided_slice %33 {offsets = [0, 0, 24], sizes = [8, 8, 8], strides = [1, 1, 1]} : vector<8x8x32xf32> to vector<8x8x8xf32>
    %38 = vector.shape_cast %34 : vector<8x8x8xf32> to vector<8x1x8x8xf32>
    %39 = vector.shape_cast %35 : vector<8x8x8xf32> to vector<8x1x8x8xf32>
    %40 = vector.shape_cast %36 : vector<8x8x8xf32> to vector<8x1x8x8xf32>
    %41 = vector.shape_cast %37 : vector<8x8x8xf32> to vector<8x1x8x8xf32>
    %42 = tpu.concatenate %38, %39, %40, %41 in 1 : vector<8x1x8x8xf32>, vector<8x1x8x8xf32>, vector<8x1x8x8xf32>, vector<8x1x8x8xf32> -> vector<8x4x8x8xf32>
    %43 = vector.shape_cast %42 : vector<8x4x8x8xf32> to vector<32x8x8xf32>
    %44 = vector.extract_strided_slice %19 {offsets = [0, 2, 0, 0], sizes = [8, 1, 8, 32], strides = [1, 1, 1, 1]} : vector<8x3x8x32xf32> to vector<8x1x8x32xf32>
    %45 = vector.shape_cast %44 : vector<8x1x8x32xf32> to vector<8x8x32xf32>
    %46 = vector.extract_strided_slice %45 {offsets = [0, 0, 0], sizes = [8, 8, 8], strides = [1, 1, 1]} : vector<8x8x32xf32> to vector<8x8x8xf32>
    %47 = vector.extract_strided_slice %45 {offsets = [0, 0, 8], sizes = [8, 8, 8], strides = [1, 1, 1]} : vector<8x8x32xf32> to vector<8x8x8xf32>
    %48 = vector.extract_strided_slice %45 {offsets = [0, 0, 16], sizes = [8, 8, 8], strides = [1, 1, 1]} : vector<8x8x32xf32> to vector<8x8x8xf32>
    %49 = vector.extract_strided_slice %45 {offsets = [0, 0, 24], sizes = [8, 8, 8], strides = [1, 1, 1]} : vector<8x8x32xf32> to vector<8x8x8xf32>
    %50 = vector.shape_cast %46 : vector<8x8x8xf32> to vector<8x1x8x8xf32>
    %51 = vector.shape_cast %47 : vector<8x8x8xf32> to vector<8x1x8x8xf32>
    %52 = vector.shape_cast %48 : vector<8x8x8xf32> to vector<8x1x8x8xf32>
    %53 = vector.shape_cast %49 : vector<8x8x8xf32> to vector<8x1x8x8xf32>
    %54 = tpu.concatenate %50, %51, %52, %53 in 1 : vector<8x1x8x8xf32>, vector<8x1x8x8xf32>, vector<8x1x8x8xf32>, vector<8x1x8x8xf32> -> vector<8x4x8x8xf32>
    %55 = vector.shape_cast %54 : vector<8x4x8x8xf32> to vector<32x8x8xf32>
    %c0_9 = arith.constant 0 : index
    %c0_10 = arith.constant 0 : index
    %c0_11 = arith.constant 0 : index
    %56 = vector.load %arg3[%c0_9, %c0_10, %c0_11] : memref<8x8x32xf32, #tpu.memory_space<vmem>>, vector<8x8x32xf32>
    %57 = vector.shape_cast %56 : vector<8x8x32xf32> to vector<64x32xf32>
    %58 = vector.extract_strided_slice %56 {offsets = [0, 0, 0], sizes = [8, 8, 8], strides = [1, 1, 1]} : vector<8x8x32xf32> to vector<8x8x8xf32>
    %59 = vector.extract_strided_slice %56 {offsets = [0, 0, 8], sizes = [8, 8, 8], strides = [1, 1, 1]} : vector<8x8x32xf32> to vector<8x8x8xf32>
    %60 = vector.extract_strided_slice %56 {offsets = [0, 0, 16], sizes = [8, 8, 8], strides = [1, 1, 1]} : vector<8x8x32xf32> to vector<8x8x8xf32>
    %61 = vector.extract_strided_slice %56 {offsets = [0, 0, 24], sizes = [8, 8, 8], strides = [1, 1, 1]} : vector<8x8x32xf32> to vector<8x8x8xf32>
    %62 = vector.shape_cast %58 : vector<8x8x8xf32> to vector<8x1x8x8xf32>
    %63 = vector.shape_cast %59 : vector<8x8x8xf32> to vector<8x1x8x8xf32>
    %64 = vector.shape_cast %60 : vector<8x8x8xf32> to vector<8x1x8x8xf32>
    %65 = vector.shape_cast %61 : vector<8x8x8xf32> to vector<8x1x8x8xf32>
    %66 = tpu.concatenate %62, %63, %64, %65 in 1 : vector<8x1x8x8xf32>, vector<8x1x8x8xf32>, vector<8x1x8x8xf32>, vector<8x1x8x8xf32> -> vector<8x4x8x8xf32>
    %67 = vector.shape_cast %66 : vector<8x4x8x8xf32> to vector<32x8x8xf32>
    "tpu.trace_start"() <{level = 10 : i32, message = "nqd,nkd->nqk"}> : () -> ()
    %cst = arith.constant dense<0.000000e+00> : vector<32x8x8xf32>
    %68 = tpu.matmul %67, %31, %cst {dimension_numbers = #tpu.dot_dimension_numbers<[2], [2], [1], [1], [0, 0, 0, 1, 1, 1], [0], [0]>} : vector<32x8x8xf32>, vector<32x8x8xf32>, vector<32x8x8xf32> -> vector<32x8x8xf32>
    "tpu.trace_stop"() : () -> ()
    %69 = vector.shape_cast %2 : vector<8x8xi1> to vector<1x8x8xi1>
    %cst_12 = arith.constant -1.000000e+20 : f32
    %70 = vector.shape_cast %69 : vector<1x8x8xi1> to vector<1x8x8xi1>
    %71 = vector.broadcast %70 : vector<1x8x8xi1> to vector<32x8x8xi1>
    %72 = vector.broadcast %cst_12 : f32 to vector<32x8x8xf32>
    %73 = arith.select %71, %68, %72 : vector<32x8x8xi1>, vector<32x8x8xf32>
    %cst_13 = arith.constant 0.353553385 : f32
    %74 = vector.broadcast %cst_13 : f32 to vector<32x8x8xf32>
    %75 = arith.mulf %73, %74 : vector<32x8x8xf32>
    %cst_14 = arith.constant dense<0xFF800000> : vector<32x8xf32>
    %76 = vector.multi_reduction <maximumf>, %75, %cst_14 [2] : vector<32x8x8xf32> to vector<32x8xf32>
    %77 = vector.shape_cast %76 : vector<32x8xf32> to vector<32x8x1xf32>
    %78 = vector.broadcast %77 : vector<32x8x1xf32> to vector<32x8x8xf32>
    %79 = arith.subf %75, %78 : vector<32x8x8xf32>
    %80 = math.exp %79 : vector<32x8x8xf32>
    %cst_15 = arith.constant dense<0.000000e+00> : vector<32x8xf32>
    %81 = vector.multi_reduction <add>, %80, %cst_15 [2] : vector<32x8x8xf32> to vector<32x8xf32>
    %82 = vector.shape_cast %81 : vector<32x8xf32> to vector<32x8x1xf32>
    %83 = tpu.reciprocal %82 {approx = true} : vector<32x8x1xf32> -> vector<32x8x1xf32>
    %84 = vector.broadcast %83 : vector<32x8x1xf32> to vector<32x8x8xf32>
    %85 = arith.mulf %80, %84 : vector<32x8x8xf32>
    "tpu.trace_start"() <{level = 10 : i32, message = "nqk,nkd->nqd"}> : () -> ()
    %cst_16 = arith.constant dense<0.000000e+00> : vector<32x8x8xf32>
    %86 = tpu.matmul %85, %43, %cst_16 {dimension_numbers = #tpu.dot_dimension_numbers<[2], [1], [1], [2], [0, 0, 0, 1, 1, 2], [0], [0]>} : vector<32x8x8xf32>, vector<32x8x8xf32>, vector<32x8x8xf32> -> vector<32x8x8xf32>
    "tpu.trace_stop"() : () -> ()
    %87 = vector.shape_cast %86 : vector<32x8x8xf32> to vector<8x4x8x8xf32>
    %88 = vector.extract_strided_slice %87 {offsets = [0, 0, 0, 0], sizes = [8, 1, 8, 8], strides = [1, 1, 1, 1]} : vector<8x4x8x8xf32> to vector<8x1x8x8xf32>
    %89 = vector.shape_cast %88 : vector<8x1x8x8xf32> to vector<8x8x8xf32>
    %90 = vector.extract_strided_slice %87 {offsets = [0, 1, 0, 0], sizes = [8, 1, 8, 8], strides = [1, 1, 1, 1]} : vector<8x4x8x8xf32> to vector<8x1x8x8xf32>
    %91 = vector.shape_cast %90 : vector<8x1x8x8xf32> to vector<8x8x8xf32>
    %92 = vector.extract_strided_slice %87 {offsets = [0, 2, 0, 0], sizes = [8, 1, 8, 8], strides = [1, 1, 1, 1]} : vector<8x4x8x8xf32> to vector<8x1x8x8xf32>
    %93 = vector.shape_cast %92 : vector<8x1x8x8xf32> to vector<8x8x8xf32>
    %94 = vector.extract_strided_slice %87 {offsets = [0, 3, 0, 0], sizes = [8, 1, 8, 8], strides = [1, 1, 1, 1]} : vector<8x4x8x8xf32> to vector<8x1x8x8xf32>
    %95 = vector.shape_cast %94 : vector<8x1x8x8xf32> to vector<8x8x8xf32>
    %96 = tpu.concatenate %89, %91, %93, %95 in 2 : vector<8x8x8xf32>, vector<8x8x8xf32>, vector<8x8x8xf32>, vector<8x8x8xf32> -> vector<8x8x32xf32>
    %97 = vector.shape_cast %96 : vector<8x8x32xf32> to vector<64x32xf32>
    %cst_17 = arith.constant dense<0.000000e+00> : vector<64x32xf32>
    %98 = tpu.matmul %97, %17, %cst_17 {dimension_numbers = #tpu.dot_dimension_numbers<[1], [0], [0], [1], [0, 0, 1, 1], [], []>} : vector<64x32xf32>, vector<32x32xf32>, vector<64x32xf32> -> vector<64x32xf32>
    %99 = vector.broadcast %4 : vector<1x32xf32> to vector<64x32xf32>
    %100 = arith.addf %98, %99 : vector<64x32xf32>
    %101 = arith.addf %100, %57 : vector<64x32xf32>
    %cst_18 = arith.constant dense<0.000000e+00> : vector<64xf32>
    %102 = vector.multi_reduction <add>, %101, %cst_18 [1] : vector<64x32xf32> to vector<64xf32>
    %103 = vector.shape_cast %102 : vector<64xf32> to vector<64x1xf32>
    %cst_19 = arith.constant 3.200000e+01 : f32
    %104 = vector.broadcast %cst_19 : f32 to vector<64x1xf32>
    %105 = arith.divf %103, %104 : vector<64x1xf32>
    %106 = vector.broadcast %105 : vector<64x1xf32> to vector<64x32xf32>
    %107 = arith.subf %101, %106 : vector<64x32xf32>
    %108 = arith.mulf %107, %107 : vector<64x32xf32>
    %cst_20 = arith.constant dense<0.000000e+00> : vector<64xf32>
    %109 = vector.multi_reduction <add>, %108, %cst_20 [1] : vector<64x32xf32> to vector<64xf32>
    %110 = vector.shape_cast %109 : vector<64xf32> to vector<64x1xf32>
    %cst_21 = arith.constant 3.200000e+01 : f32
    %111 = vector.broadcast %cst_21 : f32 to vector<64x1xf32>
    %112 = arith.divf %110, %111 : vector<64x1xf32>
    %113 = vector.broadcast %105 : vector<64x1xf32> to vector<64x32xf32>
    %114 = arith.subf %101, %113 : vector<64x32xf32>
    %cst_22 = arith.constant 9.99999974E-6 : f32
    %115 = vector.broadcast %cst_22 : f32 to vector<64x1xf32>
    %116 = arith.addf %112, %115 : vector<64x1xf32>
    %117 = math.rsqrt %116 : vector<64x1xf32>
    %118 = vector.broadcast %117 : vector<64x1xf32> to vector<64x32xf32>
    %119 = arith.mulf %114, %118 : vector<64x32xf32>
    %120 = vector.broadcast %6 : vector<1x32xf32> to vector<64x32xf32>
    %121 = arith.mulf %119, %120 : vector<64x32xf32>
    %122 = vector.broadcast %7 : vector<1x32xf32> to vector<64x32xf32>
    %123 = arith.addf %121, %122 : vector<64x32xf32>
    %124 = vector.shape_cast %123 : vector<64x32xf32> to vector<8x8x32xf32>
    %125 = vector.extract_strided_slice %124 {offsets = [0, 0, 0], sizes = [8, 8, 8], strides = [1, 1, 1]} : vector<8x8x32xf32> to vector<8x8x8xf32>
    %126 = vector.extract_strided_slice %124 {offsets = [0, 0, 8], sizes = [8, 8, 8], strides = [1, 1, 1]} : vector<8x8x32xf32> to vector<8x8x8xf32>
    %127 = vector.extract_strided_slice %124 {offsets = [0, 0, 16], sizes = [8, 8, 8], strides = [1, 1, 1]} : vector<8x8x32xf32> to vector<8x8x8xf32>
    %128 = vector.extract_strided_slice %124 {offsets = [0, 0, 24], sizes = [8, 8, 8], strides = [1, 1, 1]} : vector<8x8x32xf32> to vector<8x8x8xf32>
    %129 = vector.shape_cast %125 : vector<8x8x8xf32> to vector<8x1x8x8xf32>
    %130 = vector.shape_cast %126 : vector<8x8x8xf32> to vector<8x1x8x8xf32>
    %131 = vector.shape_cast %127 : vector<8x8x8xf32> to vector<8x1x8x8xf32>
    %132 = vector.shape_cast %128 : vector<8x8x8xf32> to vector<8x1x8x8xf32>
    %133 = tpu.concatenate %129, %130, %131, %132 in 1 : vector<8x1x8x8xf32>, vector<8x1x8x8xf32>, vector<8x1x8x8xf32>, vector<8x1x8x8xf32> -> vector<8x4x8x8xf32>
    %134 = vector.shape_cast %133 : vector<8x4x8x8xf32> to vector<32x8x8xf32>
    "tpu.trace_start"() <{level = 10 : i32, message = "nqd,nkd->nqk"}> : () -> ()
    %cst_23 = arith.constant dense<0.000000e+00> : vector<32x8x8xf32>
    %135 = tpu.matmul %134, %55, %cst_23 {dimension_numbers = #tpu.dot_dimension_numbers<[2], [2], [1], [1], [0, 0, 0, 1, 1, 1], [0], [0]>} : vector<32x8x8xf32>, vector<32x8x8xf32>, vector<32x8x8xf32> -> vector<32x8x8xf32>
    "tpu.trace_stop"() : () -> ()
    %136 = vector.shape_cast %2 : vector<8x8xi1> to vector<1x8x8xi1>
    %cst_24 = arith.constant -1.000000e+20 : f32
    %137 = vector.shape_cast %136 : vector<1x8x8xi1> to vector<1x8x8xi1>
    %138 = vector.broadcast %137 : vector<1x8x8xi1> to vector<32x8x8xi1>
    %139 = vector.broadcast %cst_24 : f32 to vector<32x8x8xf32>
    %140 = arith.select %138, %135, %139 : vector<32x8x8xi1>, vector<32x8x8xf32>
    %cst_25 = arith.constant 0.353553385 : f32
    %141 = vector.broadcast %cst_25 : f32 to vector<32x8x8xf32>
    %142 = arith.mulf %140, %141 : vector<32x8x8xf32>
    %cst_26 = arith.constant dense<0xFF800000> : vector<32x8xf32>
    %143 = vector.multi_reduction <maximumf>, %142, %cst_26 [2] : vector<32x8x8xf32> to vector<32x8xf32>
    %144 = vector.shape_cast %143 : vector<32x8xf32> to vector<32x8x1xf32>
    %145 = vector.broadcast %144 : vector<32x8x1xf32> to vector<32x8x8xf32>
    %146 = arith.subf %142, %145 : vector<32x8x8xf32>
    %147 = math.exp %146 : vector<32x8x8xf32>
    %cst_27 = arith.constant dense<0.000000e+00> : vector<32x8xf32>
    %148 = vector.multi_reduction <add>, %147, %cst_27 [2] : vector<32x8x8xf32> to vector<32x8xf32>
    %149 = vector.shape_cast %148 : vector<32x8xf32> to vector<32x8x1xf32>
    %150 = tpu.reciprocal %149 {approx = true} : vector<32x8x1xf32> -> vector<32x8x1xf32>
    %151 = vector.broadcast %150 : vector<32x8x1xf32> to vector<32x8x8xf32>
    %152 = arith.mulf %147, %151 : vector<32x8x8xf32>
    "tpu.trace_start"() <{level = 10 : i32, message = "nqk,nkd->nqd"}> : () -> ()
    %cst_28 = arith.constant dense<0.000000e+00> : vector<32x8x8xf32>
    %153 = tpu.matmul %152, %55, %cst_28 {dimension_numbers = #tpu.dot_dimension_numbers<[2], [1], [1], [2], [0, 0, 0, 1, 1, 2], [0], [0]>} : vector<32x8x8xf32>, vector<32x8x8xf32>, vector<32x8x8xf32> -> vector<32x8x8xf32>
    "tpu.trace_stop"() : () -> ()
    %154 = vector.shape_cast %153 : vector<32x8x8xf32> to vector<8x4x8x8xf32>
    %155 = vector.extract_strided_slice %154 {offsets = [0, 0, 0, 0], sizes = [8, 1, 8, 8], strides = [1, 1, 1, 1]} : vector<8x4x8x8xf32> to vector<8x1x8x8xf32>
    %156 = vector.shape_cast %155 : vector<8x1x8x8xf32> to vector<8x8x8xf32>
    %157 = vector.extract_strided_slice %154 {offsets = [0, 1, 0, 0], sizes = [8, 1, 8, 8], strides = [1, 1, 1, 1]} : vector<8x4x8x8xf32> to vector<8x1x8x8xf32>
    %158 = vector.shape_cast %157 : vector<8x1x8x8xf32> to vector<8x8x8xf32>
    %159 = vector.extract_strided_slice %154 {offsets = [0, 2, 0, 0], sizes = [8, 1, 8, 8], strides = [1, 1, 1, 1]} : vector<8x4x8x8xf32> to vector<8x1x8x8xf32>
    %160 = vector.shape_cast %159 : vector<8x1x8x8xf32> to vector<8x8x8xf32>
    %161 = vector.extract_strided_slice %154 {offsets = [0, 3, 0, 0], sizes = [8, 1, 8, 8], strides = [1, 1, 1, 1]} : vector<8x4x8x8xf32> to vector<8x1x8x8xf32>
    %162 = vector.shape_cast %161 : vector<8x1x8x8xf32> to vector<8x8x8xf32>
    %163 = tpu.concatenate %156, %158, %160, %162 in 2 : vector<8x8x8xf32>, vector<8x8x8xf32>, vector<8x8x8xf32>, vector<8x8x8xf32> -> vector<8x8x32xf32>
    %164 = vector.shape_cast %163 : vector<8x8x32xf32> to vector<64x32xf32>
    %cst_29 = arith.constant dense<0.000000e+00> : vector<64x32xf32>
    %165 = tpu.matmul %164, %18, %cst_29 {dimension_numbers = #tpu.dot_dimension_numbers<[1], [0], [0], [1], [0, 0, 1, 1], [], []>} : vector<64x32xf32>, vector<32x32xf32>, vector<64x32xf32> -> vector<64x32xf32>
    %166 = vector.broadcast %5 : vector<1x32xf32> to vector<64x32xf32>
    %167 = arith.addf %165, %166 : vector<64x32xf32>
    %168 = arith.addf %167, %123 : vector<64x32xf32>
    %cst_30 = arith.constant dense<0.000000e+00> : vector<64xf32>
    %169 = vector.multi_reduction <add>, %168, %cst_30 [1] : vector<64x32xf32> to vector<64xf32>
    %170 = vector.shape_cast %169 : vector<64xf32> to vector<64x1xf32>
    %cst_31 = arith.constant 3.200000e+01 : f32
    %171 = vector.broadcast %cst_31 : f32 to vector<64x1xf32>
    %172 = arith.divf %170, %171 : vector<64x1xf32>
    %173 = vector.broadcast %172 : vector<64x1xf32> to vector<64x32xf32>
    %174 = arith.subf %168, %173 : vector<64x32xf32>
    %175 = arith.mulf %174, %174 : vector<64x32xf32>
    %cst_32 = arith.constant dense<0.000000e+00> : vector<64xf32>
    %176 = vector.multi_reduction <add>, %175, %cst_32 [1] : vector<64x32xf32> to vector<64xf32>
    %177 = vector.shape_cast %176 : vector<64xf32> to vector<64x1xf32>
    %cst_33 = arith.constant 3.200000e+01 : f32
    %178 = vector.broadcast %cst_33 : f32 to vector<64x1xf32>
    %179 = arith.divf %177, %178 : vector<64x1xf32>
    %180 = vector.broadcast %172 : vector<64x1xf32> to vector<64x32xf32>
    %181 = arith.subf %168, %180 : vector<64x32xf32>
    %cst_34 = arith.constant 9.99999974E-6 : f32
    %182 = vector.broadcast %cst_34 : f32 to vector<64x1xf32>
    %183 = arith.addf %179, %182 : vector<64x1xf32>
    %184 = math.rsqrt %183 : vector<64x1xf32>
    %185 = vector.broadcast %184 : vector<64x1xf32> to vector<64x32xf32>
    %186 = arith.mulf %181, %185 : vector<64x32xf32>
    %187 = vector.broadcast %8 : vector<1x32xf32> to vector<64x32xf32>
    %188 = arith.mulf %186, %187 : vector<64x32xf32>
    %189 = vector.broadcast %9 : vector<1x32xf32> to vector<64x32xf32>
    %190 = arith.addf %188, %189 : vector<64x32xf32>
    %cst_35 = arith.constant dense<0.000000e+00> : vector<64x128xf32>
    %191 = tpu.matmul %190, %15, %cst_35 {dimension_numbers = #tpu.dot_dimension_numbers<[1], [0], [0], [1], [0, 0, 1, 1], [], []>} : vector<64x32xf32>, vector<32x128xf32>, vector<64x128xf32> -> vector<64x128xf32>
    %192 = vector.broadcast %13 : vector<1x128xf32> to vector<64x128xf32>
    %193 = arith.addf %191, %192 : vector<64x128xf32>
    %cst_36 = arith.constant 0.000000e+00 : f32
    %194 = vector.broadcast %cst_36 : f32 to vector<64x128xf32>
    %195 = arith.maximumf %193, %194 : vector<64x128xf32>
    %cst_37 = arith.constant dense<0.000000e+00> : vector<64x32xf32>
    %196 = tpu.matmul %195, %16, %cst_37 {dimension_numbers = #tpu.dot_dimension_numbers<[1], [0], [0], [1], [0, 0, 1, 1], [], []>} : vector<64x128xf32>, vector<128x32xf32>, vector<64x32xf32> -> vector<64x32xf32>
    %197 = vector.broadcast %12 : vector<1x32xf32> to vector<64x32xf32>
    %198 = arith.addf %196, %197 : vector<64x32xf32>
    %199 = arith.addf %198, %190 : vector<64x32xf32>
    %cst_38 = arith.constant dense<0.000000e+00> : vector<64xf32>
    %200 = vector.multi_reduction <add>, %199, %cst_38 [1] : vector<64x32xf32> to vector<64xf32>
    %201 = vector.shape_cast %200 : vector<64xf32> to vector<64x1xf32>
    %cst_39 = arith.constant 3.200000e+01 : f32
    %202 = vector.broadcast %cst_39 : f32 to vector<64x1xf32>
    %203 = arith.divf %201, %202 : vector<64x1xf32>
    %204 = vector.broadcast %203 : vector<64x1xf32> to vector<64x32xf32>
    %205 = arith.subf %199, %204 : vector<64x32xf32>
    %206 = arith.mulf %205, %205 : vector<64x32xf32>
    %cst_40 = arith.constant dense<0.000000e+00> : vector<64xf32>
    %207 = vector.multi_reduction <add>, %206, %cst_40 [1] : vector<64x32xf32> to vector<64xf32>
    %208 = vector.shape_cast %207 : vector<64xf32> to vector<64x1xf32>
    %cst_41 = arith.constant 3.200000e+01 : f32
    %209 = vector.broadcast %cst_41 : f32 to vector<64x1xf32>
    %210 = arith.divf %208, %209 : vector<64x1xf32>
    %211 = vector.broadcast %203 : vector<64x1xf32> to vector<64x32xf32>
    %212 = arith.subf %199, %211 : vector<64x32xf32>
    %cst_42 = arith.constant 9.99999974E-6 : f32
    %213 = vector.broadcast %cst_42 : f32 to vector<64x1xf32>
    %214 = arith.addf %210, %213 : vector<64x1xf32>
    %215 = math.rsqrt %214 : vector<64x1xf32>
    %216 = vector.broadcast %215 : vector<64x1xf32> to vector<64x32xf32>
    %217 = arith.mulf %212, %216 : vector<64x32xf32>
    %218 = vector.broadcast %10 : vector<1x32xf32> to vector<64x32xf32>
    %219 = arith.mulf %217, %218 : vector<64x32xf32>
    %220 = vector.broadcast %11 : vector<1x32xf32> to vector<64x32xf32>
    %221 = arith.addf %219, %220 : vector<64x32xf32>
    %222 = vector.shape_cast %221 : vector<64x32xf32> to vector<8x8x32xf32>
    %c0_43 = arith.constant 0 : index
    %c0_44 = arith.constant 0 : index
    %c0_45 = arith.constant 0 : index
    %223 = vector.load %arg6[%c0_43, %c0_44, %c0_45] : memref<8x8x32xf32, #tpu.memory_space<vmem>>, vector<8x8x32xf32>
    tpu.vector_store %arg6[%c0_43, %c0_44, %c0_45], %222 {strides = array<i32>} : memref<8x8x32xf32, #tpu.memory_space<vmem>>, vector<8x8x32xf32>,
    return
  }
  func.func @transform_0(%arg0: i32) -> (i32, i32) {
    %c0_i32 = arith.constant 0 : i32
    %c0_i32_0 = arith.constant 0 : i32
    %c0_i32_1 = arith.constant 0 : i32
    return %c0_i32, %c0_i32_0 : i32, i32
  }
  func.func @transform_1(%arg0: i32) -> (i32, i32, i32, i32) {
    %c0_i32 = arith.constant 0 : i32
    %c0_i32_0 = arith.constant 0 : i32
    %c0_i32_1 = arith.constant 0 : i32
    %c0_i32_2 = arith.constant 0 : i32
    return %arg0, %c0_i32, %c0_i32_0, %c0_i32_1 : i32, i32, i32, i32
  }
  func.func @transform_2(%arg0: i32) -> (i32, i32, i32) {
    %c0_i32 = arith.constant 0 : i32
    %c0_i32_0 = arith.constant 0 : i32
    %c0_i32_1 = arith.constant 0 : i32
    return %arg0, %c0_i32, %c0_i32_0 : i32, i32, i32
  }
  func.func @transform_3(%arg0: i32) -> (i32, i32) {
    %c0_i32 = arith.constant 0 : i32
    %c0_i32_0 = arith.constant 0 : i32
    %c0_i32_1 = arith.constant 0 : i32
    return %c0_i32, %c0_i32_0 : i32, i32
  }
  func.func @transform_4(%arg0: i32) -> (i32, i32) {
    %c0_i32 = arith.constant 0 : i32
    %c0_i32_0 = arith.constant 0 : i32
    %c0_i32_1 = arith.constant 0 : i32
    return %c0_i32, %c0_i32_0 : i32, i32
  }
  func.func @transform_5(%arg0: i32) -> (i32, i32, i32) {
    %c0_i32 = arith.constant 0 : i32
    %c0_i32_0 = arith.constant 0 : i32
    %c0_i32_1 = arith.constant 0 : i32
    return %arg0, %c0_i32, %c0_i32_0 : i32, i32, i32
  }
}

</mosaic_0001>

<bundles_post_ra>
// kernel: transformer_decoder_block.1
= control target key start
LH: loop header
LB: loop body
LE: loop exit
PB: predicated region body
PF: predicated region fallthrough
CT: control target
= control target key end

     0   :  { %10 = vsyncpa [#allocation3], 0  ;;  %s16551_s0 = inlined_call_operand.vmem [shape: s8[8,8], index: 0, kind: input, shape index: {}]   ;;  %s16552_s1 = inlined_call_operand.vmem [shape: f32[16,3,8,32], index: 1, kind: input, shape index: {}]   ;;  %s16553_s2 = inlined_call_operand.vmem [shape: f32[16,8,32], index: 2, kind: input, shape index: {}]   ;;  %s16554_s3 = inlined_call_operand.vmem [shape: f32[224,128], index: 3, kind: input, shape index: {}]   ;;  %s16555_s4 = inlined_call_operand.vmem [shape: f32[10,128], index: 4, kind: input, shape index: {}]   ;;  %s16556_s5 = inlined_call_operand.hbm [shape: f32[16,8,32], index: 5, kind: output, shape index: {}]  }
   0x1   :  { %12 = vsyncpa [#allocation3 + $0x1], 0  ;;  %s13983_s18 = smov 0   ;;  %s13985_s19 = smov 0  }
   0x2   :  { %s13987_s20 = smov 0   ;;  %s13989_s21 = smov 0  }
   0x3 LB: > { %s14004_s22 = sadd.s32 4294967295, %s13940_s21   ;;  %s12155_s23 = sadd.s32 4294967294, %s13940_s21   ;;  %s13940_s21 = sphi %s13989_s21, %s16621_s21   ;;  %s13936_s20 = sphi %s13987_s20, %s16620_s20   ;;  %s13932_s19 = sphi %s13985_s19, %s16619_s19   ;;  %s13928_s18 = sphi %s13983_s18, %s16618_s18  }
   0x4   : > { %s14008_s24 = sadd.s32 1, %s13940_s21   ;;  %s140_s25 = sadd.s32 1, %s13936_s20 }
   0x5   : > { %s137_s26 = ssub.s32 %s13940_s21, %s14008_s24  ;;  %p150_p0 = scmp.ne.s32.totalorder %s13936_s20, %s13932_s19 }
   0x6   : > { %p138_p1 = scmp.eq.s32.totalorder %s137_s26, 0  ;;  %p151_p2 = scmp.eq.s32.totalorder %s14004_s22, 1 }
   0x7   : > { %p156_p3 = scmp.ne.s32.totalorder %s13932_s19, %s13928_s18  ;;  %p157_p4 = scmp.eq.s32.totalorder %s12155_s23, 1 }
   0x8   : > { %s14019_s27 = scalar_select %p138_p1, %s13936_s20, %s140_s25  }
   0x9   : > { %p14021_p5 = por %p151_p2, %p150_p0  ;;  %p14025_p6 = por %p157_p4, %p156_p3 }
   0xa   : > { %p12158_p7 = scmp.ge.s32.totalorder %s13940_s21, 1  ;;  %p203_p8 = scmp.lt.s32.totalorder %s13940_s21, 3 }
   0xc   : > { %p204_p9 = pnand %p12158_p7, %p203_p8 }
   0xe   : > { %207 = sbr.rel (%p204_p9) target bundleno = 3954 (0xf72), region = 40 }
  0x15   : > { %s12160_s30 = sshll.u32 %s14004_s22, 3  ;;  %v16557_v0 = vmov 0.0   ;;  %vm13943_vm0 = vmmov 0   ;;  %vm589_vm1 = vcmask 64512   ;;  %s13944_s14 = smov 112   ;;  %vm5819_vm4 = vcmask 130048  }
  0x16   : > { %12702 = vmatprep.subr.mxu0 %v16557_v0  ;;  %p238_p10 = scmp.lt.s32.totalorder %s12160_s30, 15  ;;  %12704 = vmatprep.mubr.msk.f32.mxu0 %vm13943_vm0, %v16557_v0  ;;  %s13945_s15 = smov 120   ;;  %vm5828_vm5 = vcmask 195584   ;;  %vm5841_vm6 = vcmask 261120  }
  0x17   : > { %12707 = vmatprep.subr.mxu1 %v16557_v0  ;;  %12709 = vmatprep.mubr.msk.f32.mxu1 %vm13943_vm0, %v16557_v0  ;;  %s13946_s16 = smov 104   ;;  %s13949_s17 = smov 16  }
  0x18   : > { %s16623_s30 = smov (!%p238_p10, %s12160_s30), 15  ;;  %s13950_s23 = smov 24  }
  0x19   : > { %s12163_s6 = sshll.u32 %s16623_s30, 3  ;;  %s13502_s7 = smul.u32 24, %s16623_s30 }
  0x1a   : > { %s14041_s10 = scalar_lea.vmem %s16553_s2, %s12163_s6  ;;  %s234_s8 = sand.u32 1, %s13932_s19  }
  0x1b   : > { %v525_v1 = vld [vmem:[%s14041_s10] sm:$0xff]  ;;  %s14047_s13 = scalar_lea.vmem %s16552_s1, %s13502_s7  ;;  %v14069_v4 = vld [vmem:[%s14041_s10 + $0x8] sm:$0xff]  ;;  %v14087_v6 = vld [vmem:[%s14041_s10 + $0x10] sm:$0xff]  ;;  %s13948_s7 = smov 8  }
  0x1c   : > { %557 = vrot.lane.b32.xlu0 %v525_v1, %s13944_s14  ;;  %541 = vrot.lane.b32.xlu1 %v525_v1, %s13945_s15  ;;  %v285_v2 = vld [vmem:[%s14047_s13] sm:$0xff]  ;;  %v14062_v3 = vld [vmem:[%s14047_s13 + $0x18] sm:$0xff]  ;;  %s12159_s9 = sshll.u32 %s234_s8, 6  ;;  %s12385_s12 = sshll.u32 %s14004_s22, 10 }
  0x1d   : > { %12703 = vmatpush3.xpose.msk.msra.mxu0 %vm589_vm1, %v285_v2  ;;  %v14080_v5 = vld [vmem:[%s14047_s13 + $0x30] sm:$0xff]  ;;  %v14098_v7 = vld [vmem:[%s14047_s13 + $0x48] sm:$0xff]  ;;  %v14105_v8 = vld [vmem:[%s14041_s10 + $0x18] sm:$0xff]  ;;  %s16462_s11 = scalar_lea.vmem [#allocation2], %s12159_s9  ;;  %s16498_s26 = scalar_lea.hbm %s16556_s5, %s12385_s12 }
  0x1e   : > { %12712 = vmatprep.subr.mxu0 %v16557_v0  ;;  %v14116_v9 = vld [vmem:[%s14047_s13 + $0x60] sm:$0xff]  ;;  %v14134_v11 = vld [vmem:[%s14047_s13 + $0x78] sm:$0xff]  ;;  %v14141_v12 = vld [vmem:[%s14041_s10 + $0x28] sm:$0xff]  ;;  %s16509_s22 = scalar_lea.sflag [#allocation3], %s234_s8 }
  0x1f   : > { %v14123_v10 = vld [vmem:[%s14041_s10 + $0x20] sm:$0xff]  ;;  %v14152_v13 = vld [vmem:[%s14047_s13 + $0x90] sm:$0xff]  ;;  %v14170_v15 = vld [vmem:[%s14047_s13 + $0xa8] sm:$0xff] }
  0x20   : > { %573 = vrot.lane.b32.xlu1 %v525_v1, %s13946_s16  ;;  %317 = vrot.lane.b32.xlu0 %v285_v2, %s13945_s15  ;;  %v14159_v14 = vld [vmem:[%s14041_s10 + $0x30] sm:$0xff]  ;;  %v14177_v16 = vld [vmem:[%s14041_s10 + $0x38] sm:$0xff] }
  0x21   : > { %12705 = vmatmul.mubr.msk.f32.vlgmr.msra.gmra.mrb[0].mxu0 %vm589_vm1, %v525_v1  ;;  %v14188_v17 = vld [vmem:[%s14047_s13 + $0x8] sm:$0xff]  ;;  %v289_v18 = vld [vmem:[%s14047_s13 + $0x20] sm:$0xff]  ;;  %v292_v19 = vld [vmem:[%s14047_s13 + $0x38] sm:$0xff] }
  0x22   : > { %12714 = vmatprep.mubr.msk.f32.mxu0 %vm13943_vm0, %v16557_v0  ;;  %v295_v20 = vld [vmem:[%s14047_s13 + $0x50] sm:$0xff]  ;;  %v14209_v23 = vld [vmem:[%s14047_s13 + $0x68] sm:$0xff]  ;;  %v301_v30 = vld [vmem:[%s14047_s13 + $0x80] sm:$0xff] }
  0x23   : > { %v14263_v37 = vld [vmem:[%s14047_s13 + $0x98] sm:$0xff] }
  0x24   : > { %349 = vrot.lane.b32.xlu1 %v285_v2, %s13946_s16  ;;  %333 = vrot.lane.b32.xlu0 %v285_v2, %s13944_s14 }
  0x28   : > { %335 = vrot.lane.b32.xlu1 %v14062_v3, %s13944_s14  ;;  %319 = vrot.lane.b32.xlu0 %v14062_v3, %s13945_s15 }
  0x2c   : > { %351 = vrot.lane.b32.xlu1 %v14062_v3, %s13946_s16  ;;  %543 = vrot.lane.b32.xlu0 %v14069_v4, %s13945_s15 }
  0x30   : > { %575 = vrot.lane.b32.xlu1 %v14069_v4, %s13946_s16  ;;  %559 = vrot.lane.b32.xlu0 %v14069_v4, %s13944_s14 }
  0x34   : > { %337 = vrot.lane.b32.xlu1 %v14080_v5, %s13944_s14  ;;  %321 = vrot.lane.b32.xlu0 %v14080_v5, %s13945_s15 }
  0x38   : > { %353 = vrot.lane.b32.xlu1 %v14080_v5, %s13946_s16  ;;  %545 = vrot.lane.b32.xlu0 %v14087_v6, %s13945_s15 }
  0x3c   : > { %577 = vrot.lane.b32.xlu1 %v14087_v6, %s13946_s16  ;;  %561 = vrot.lane.b32.xlu0 %v14087_v6, %s13944_s14 }
  0x40   : > { %339 = vrot.lane.b32.xlu1 %v14098_v7, %s13944_s14  ;;  %323 = vrot.lane.b32.xlu0 %v14098_v7, %s13945_s15 }
  0x44   : > { %355 = vrot.lane.b32.xlu1 %v14098_v7, %s13946_s16  ;;  %547 = vrot.lane.b32.xlu0 %v14105_v8, %s13945_s15 }
  0x48   : > { %579 = vrot.lane.b32.xlu1 %v14105_v8, %s13946_s16  ;;  %563 = vrot.lane.b32.xlu0 %v14105_v8, %s13944_s14 }
  0x4c   : > { %341 = vrot.lane.b32.xlu1 %v14116_v9, %s13944_s14  ;;  %325 = vrot.lane.b32.xlu0 %v14116_v9, %s13945_s15 }
  0x50   : > { %357 = vrot.lane.b32.xlu1 %v14116_v9, %s13946_s16  ;;  %549 = vrot.lane.b32.xlu0 %v14123_v10, %s13945_s15 }
  0x54   : > { %581 = vrot.lane.b32.xlu1 %v14123_v10, %s13946_s16  ;;  %565 = vrot.lane.b32.xlu0 %v14123_v10, %s13944_s14 }
  0x58   : > { %343 = vrot.lane.b32.xlu1 %v14134_v11, %s13944_s14  ;;  %327 = vrot.lane.b32.xlu0 %v14134_v11, %s13945_s15 }
  0x5c   : > { %359 = vrot.lane.b32.xlu1 %v14134_v11, %s13946_s16  ;;  %551 = vrot.lane.b32.xlu0 %v14141_v12, %s13945_s15 }
  0x60   : > { %583 = vrot.lane.b32.xlu1 %v14141_v12, %s13946_s16  ;;  %567 = vrot.lane.b32.xlu0 %v14141_v12, %s13944_s14 }
  0x64   : > { %345 = vrot.lane.b32.xlu1 %v14152_v13, %s13944_s14  ;;  %329 = vrot.lane.b32.xlu0 %v14152_v13, %s13945_s15 }
  0x68   : > { %361 = vrot.lane.b32.xlu1 %v14152_v13, %s13946_s16  ;;  %553 = vrot.lane.b32.xlu0 %v14159_v14, %s13945_s15 }
  0x6c   : > { %585 = vrot.lane.b32.xlu1 %v14159_v14, %s13946_s16  ;;  %569 = vrot.lane.b32.xlu0 %v14159_v14, %s13944_s14 }
  0x70   : > { %347 = vrot.lane.b32.xlu1 %v14170_v15, %s13944_s14  ;;  %331 = vrot.lane.b32.xlu0 %v14170_v15, %s13945_s15 }
  0x74   : > { %363 = vrot.lane.b32.xlu1 %v14170_v15, %s13946_s16  ;;  %555 = vrot.lane.b32.xlu0 %v14177_v16, %s13945_s15 }
  0x78   : > { %587 = vrot.lane.b32.xlu1 %v14177_v16, %s13946_s16  ;;  %571 = vrot.lane.b32.xlu0 %v14177_v16, %s13944_s14 }
  0x7c   : > { %397 = vrot.lane.b32.xlu0 %v14188_v17, %s13944_s14  ;;  %373 = vrot.lane.b32.xlu1 %v14188_v17, %s13945_s15 }
  0x80   : > { %421 = vrot.lane.b32.xlu0 %v14188_v17, %s13946_s16  ;;  %375 = vrot.lane.b32.xlu1 %v289_v18, %s13945_s15 }
  0x84   : > { %399 = vrot.lane.b32.xlu0 %v289_v18, %s13944_s14  ;;  %377 = vrot.lane.b32.xlu1 %v292_v19, %s13945_s15 }
  0x88   : > { %423 = vrot.lane.b32.xlu0 %v289_v18, %s13946_s16  ;;  %425 = vrot.lane.b32.xlu1 %v292_v19, %s13946_s16 }
  0x8c   : > { %401 = vrot.lane.b32.xlu0 %v292_v19, %s13944_s14  ;;  %379 = vrot.lane.b32.xlu1 %v295_v20, %s13945_s15 }
  0x8e   : > { %v558_v21 = vpop.permute.xlu0 %557  ;;  %v542_v22 = vpop.permute.xlu1 %541 }
  0x90   : > { %403 = vrot.lane.b32.xlu0 %v295_v20, %s13944_s14  ;;  %427 = vrot.lane.b32.xlu1 %v295_v20, %s13946_s16 }
  0x92   : > { %v574_v24 = vpop.permute.xlu1 %573  ;;  %v318_v25 = vpop.permute.xlu0 %317 }
  0x93   : > { %12708 = vmatpush3.xpose.msk.msra.mxu1 %vm589_vm1, %v318_v25 }
  0x94   : > { %12717 = vmatprep.subr.mxu1 %v16557_v0  ;;  %381 = vrot.lane.b32.xlu1 %v14209_v23, %s13945_s15 }
  0x96   : > { %v350_v26 = vpop.permute.xlu1 %349  ;;  %12710 = vmatmul.mubr.msk.f32.vlgmr.msra.gmra.mrb[0].mxu1 %vm589_vm1, %v542_v22  ;;  %v334_v27 = vpop.permute.xlu0 %333 }
  0x97   : > { %12713 = vmatpush3.xpose.msk.msra.mxu0 %vm589_vm1, %v334_v27  ;;  %12718 = vmatpush3.xpose.msk.msra.mxu1 %vm589_vm1, %v350_v26 }
  0x98   : > { %12719 = vmatprep.mubr.msk.f32.mxu1 %vm13943_vm0, %v16557_v0  ;;  %12722 = vmatprep.subr.mxu0 %v16557_v0 }
  0x99   : > { %12727 = vmatprep.subr.mxu1 %v16557_v0  ;;  %405 = vrot.lane.b32.xlu1 %v14209_v23, %s13944_s14 }
  0x9a   : > { %v336_v28 = vpop.permute.xlu1 %335  ;;  %12720 = vmatmul.mubr.msk.f32.vlgmr.msra.gmra.mrb[2].mxu1 %vm589_vm1, %v574_v24  ;;  %v320_v29 = vpop.permute.xlu0 %319  ;;  %12715 = vmatmul.mubr.msk.f32.vlgmr.msra.gmra.mrb[2].mxu0 %vm589_vm1, %v558_v21 }
  0x9b   : > { %12723 = vmatpush3.xpose.msk.msra.mxu0 %vm589_vm1, %v14062_v3  ;;  %12724 = vmatprep.mubr.msk.f32.mxu0 %vm13943_vm0, %v16557_v0 }
  0x9c   : > { %12728 = vmatpush3.xpose.msk.msra.mxu1 %vm589_vm1, %v320_v29  ;;  %12732 = vmatprep.subr.mxu0 %v16557_v0 }
  0x9d   : > { %12729 = vmatprep.mubr.msk.f32.mxu1 %vm13943_vm0, %v16557_v0  ;;  %12737 = vmatprep.subr.mxu1 %v16557_v0 }
  0x9e   : > { %v352_v31 = vpop.permute.xlu1 %351  ;;  %v544_v32 = vpop.permute.xlu0 %543  ;;  %12725 = vmatmul.mubr.msk.f32.vlgmr.msra.gmra.mrb[4].mxu0 %vm589_vm1, %v14069_v4  ;;  %383 = vrot.lane.b32.xlu1 %v301_v30, %s13945_s15 }
  0x9f   : > { %12733 = vmatpush3.xpose.msk.msra.mxu0 %vm589_vm1, %v336_v28  ;;  %12730 = vmatmul.mubr.msk.f32.vlgmr.msra.gmra.mrb[4].mxu1 %vm589_vm1, %v544_v32 }
  0xa0   : > { %12734 = vmatprep.mubr.msk.f32.mxu0 %vm13943_vm0, %v16557_v0  ;;  %12738 = vmatpush3.xpose.msk.msra.mxu1 %vm589_vm1, %v352_v31 }
  0xa1   : > { %12742 = vmatprep.subr.mxu0 %v16557_v0  ;;  %12739 = vmatprep.mubr.msk.f32.mxu1 %vm13943_vm0, %v16557_v0 }
  0xa2   : > { %v576_v33 = vpop.permute.xlu1 %575  ;;  %v560_v34 = vpop.permute.xlu0 %559  ;;  %12747 = vmatprep.subr.mxu1 %v16557_v0  ;;  %407 = vrot.lane.b32.xlu1 %v301_v30, %s13944_s14 }
  0xa3   : > { %12735 = vmatmul.mubr.msk.f32.vlgmr.msra.gmra.mrb[6].mxu0 %vm589_vm1, %v560_v34  ;;  %12740 = vmatmul.mubr.msk.f32.vlgmr.msra.gmra.mrb[6].mxu1 %vm589_vm1, %v576_v33 }
  0xa4   : > { %12743 = vmatpush3.xpose.msk.msra.mxu0 %vm589_vm1, %v14080_v5  ;;  %12744 = vmatprep.mubr.msk.f32.mxu0 %vm13943_vm0, %v16557_v0  ;;  %v253_v5 = vld [vmem:[%s16551_s0] sm:$0x3] }
  0xa5   : > { %12749 = vmatprep.mubr.msk.f32.mxu1 %vm13943_vm0, %v16557_v0  ;;  %12752 = vmatprep.subr.mxu0 %v16557_v0  ;;  %vm254_vm2 = vnez %v253_v5 }
  0xa6   : > { %v338_v35 = vpop.permute.xlu1 %337  ;;  %v322_v36 = vpop.permute.xlu0 %321  ;;  %431 = vrot.lane.b32.xlu1 %v301_v30, %s13946_s16 }
  0xa7   : > { %12745 = vmatmul.mubr.msk.f32.vlgmr.msra.gmra.mrb[8].mxu0 %vm589_vm1, %v14087_v6  ;;  %12748 = vmatpush3.xpose.msk.msra.mxu1 %vm589_vm1, %v322_v36 }
  0xa8   : > { %12757 = vmatprep.subr.mxu1 %v16557_v0  ;;  %12753 = vmatpush3.xpose.msk.msra.mxu0 %vm589_vm1, %v338_v35 }
  0xa9   : > { %12754 = vmatprep.mubr.msk.f32.mxu0 %vm13943_vm0, %v16557_v0  ;;  %12762 = vmatprep.subr.mxu0 %v16557_v0 }
  0xaa   : > { %v354_v38 = vpop.permute.xlu1 %353  ;;  %v546_v39 = vpop.permute.xlu0 %545  ;;  %385 = vrot.lane.b32.xlu1 %v14263_v37, %s13945_s15 }
  0xab   : > { %12750 = vmatmul.mubr.msk.f32.vlgmr.msra.gmra.mrb[8].mxu1 %vm589_vm1, %v546_v39 }
  0xac   : > { %12758 = vmatpush3.xpose.msk.msra.mxu1 %vm589_vm1, %v354_v38  ;;  %12759 = vmatprep.mubr.msk.f32.mxu1 %vm13943_vm0, %v16557_v0 }
  0xad   : > { %12767 = vmatprep.subr.mxu1 %v16557_v0 }
  0xae   : > { %v578_v40 = vpop.permute.xlu1 %577  ;;  %v562_v41 = vpop.permute.xlu0 %561  ;;  %409 = vrot.lane.b32.xlu1 %v14263_v37, %s13944_s14 }
  0xaf   : > { %12755 = vmatmul.mubr.msk.f32.vlgmr.msra.gmra.mrb[10].mxu0 %vm589_vm1, %v562_v41  ;;  %12760 = vmatmul.mubr.msk.f32.vlgmr.msra.gmra.mrb[10].mxu1 %vm589_vm1, %v578_v40 }
  0xb0   : > { %12763 = vmatpush3.xpose.msk.msra.mxu0 %vm589_vm1, %v14098_v7  ;;  %12764 = vmatprep.mubr.msk.f32.mxu0 %vm13943_vm0, %v16557_v0 }
  0xb1   : > { %12769 = vmatprep.mubr.msk.f32.mxu1 %vm13943_vm0, %v16557_v0  ;;  %12772 = vmatprep.subr.mxu0 %v16557_v0 }
  0xb2   : > { %v340_v42 = vpop.permute.xlu1 %339  ;;  %v324_v43 = vpop.permute.xlu0 %323 }
  0xb3   : > { %12765 = vmatmul.mubr.msk.f32.vlgmr.msra.gmra.mrb[12].mxu0 %vm589_vm1, %v14105_v8  ;;  %12768 = vmatpush3.xpose.msk.msra.mxu1 %vm589_vm1, %v324_v43 }
  0xb4   : > { %12777 = vmatprep.subr.mxu1 %v16557_v0  ;;  %12773 = vmatpush3.xpose.msk.msra.mxu0 %vm589_vm1, %v340_v42 }
  0xb5   : > { %12774 = vmatprep.mubr.msk.f32.mxu0 %vm13943_vm0, %v16557_v0  ;;  %12782 = vmatprep.subr.mxu0 %v16557_v0 }
  0xb6   : > { %v356_v44 = vpop.permute.xlu1 %355  ;;  %v548_v45 = vpop.permute.xlu0 %547 }
  0xb7   : > { %12770 = vmatmul.mubr.msk.f32.vlgmr.msra.gmra.mrb[12].mxu1 %vm589_vm1, %v548_v45 }
  0xb8   : > { %12778 = vmatpush3.xpose.msk.msra.mxu1 %vm589_vm1, %v356_v44  ;;  %12779 = vmatprep.mubr.msk.f32.mxu1 %vm13943_vm0, %v16557_v0 }
  0xb9   : > { %12787 = vmatprep.subr.mxu1 %v16557_v0 }
  0xba   : > { %v580_v46 = vpop.permute.xlu1 %579  ;;  %v564_v47 = vpop.permute.xlu0 %563 }
  0xbb   : > { %12775 = vmatmul.mubr.msk.f32.vlgmr.msra.gmra.mrb[14].mxu0 %vm589_vm1, %v564_v47  ;;  %12780 = vmatmul.mubr.msk.f32.vlgmr.msra.gmra.mrb[14].mxu1 %vm589_vm1, %v580_v46 }
  0xbc   : > { %12783 = vmatpush3.xpose.msk.msra.mxu0 %vm589_vm1, %v14116_v9  ;;  %12784 = vmatprep.mubr.msk.f32.mxu0 %vm13943_vm0, %v16557_v0 }
  0xbd   : > { %12789 = vmatprep.mubr.msk.f32.mxu1 %vm13943_vm0, %v16557_v0  ;;  %12792 = vmatprep.subr.mxu0 %v16557_v0 }
  0xbe   : > { %v342_v48 = vpop.permute.xlu1 %341  ;;  %v326_v49 = vpop.permute.xlu0 %325 }
  0xbf   : > { %12785 = vmatmul.mubr.msk.f32.vlgmr.msra.gmra.mrb[16].mxu0 %vm589_vm1, %v14123_v10  ;;  %12788 = vmatpush3.xpose.msk.msra.mxu1 %vm589_vm1, %v326_v49  ;;  %v13947_v10 = vmov 0  }
  0xc0   : > { %12797 = vmatprep.subr.mxu1 %v16557_v0  ;;  %12793 = vmatpush3.xpose.msk.msra.mxu0 %vm589_vm1, %v342_v48 }
  0xc1   : > { %12794 = vmatprep.mubr.msk.f32.mxu0 %vm13943_vm0, %v16557_v0  ;;  %12802 = vmatprep.subr.mxu0 %v16557_v0 }
  0xc2   : > { %v358_v50 = vpop.permute.xlu1 %357  ;;  %v550_v51 = vpop.permute.xlu0 %549 }
  0xc3   : > { %12790 = vmatmul.mubr.msk.f32.vlgmr.msra.gmra.mrb[16].mxu1 %vm589_vm1, %v550_v51 }
  0xc4   : > { %12798 = vmatpush3.xpose.msk.msra.mxu1 %vm589_vm1, %v358_v50  ;;  %12799 = vmatprep.mubr.msk.f32.mxu1 %vm13943_vm0, %v16557_v0 }
  0xc5   : > { %12807 = vmatprep.subr.mxu1 %v16557_v0 }
  0xc6   : > { %v582_v52 = vpop.permute.xlu1 %581  ;;  %v566_v53 = vpop.permute.xlu0 %565 }
  0xc7   : > { %12795 = vmatmul.mubr.msk.f32.vlgmr.msra.gmra.mrb[18].mxu0 %vm589_vm1, %v566_v53  ;;  %12800 = vmatmul.mubr.msk.f32.vlgmr.msra.gmra.mrb[18].mxu1 %vm589_vm1, %v582_v52 }
  0xc8   : > { %12803 = vmatpush3.xpose.msk.msra.mxu0 %vm589_vm1, %v14134_v11  ;;  %12804 = vmatprep.mubr.msk.f32.mxu0 %vm13943_vm0, %v16557_v0  ;;  %v2958_v11 = vsel %vm254_vm2, 16843009, %v13947_v10 }
  0xc9   : > { %12809 = vmatprep.mubr.msk.f32.mxu1 %vm13943_vm0, %v16557_v0  ;;  %12812 = vmatprep.subr.mxu0 %v16557_v0 }
  0xca   : > { %v344_v54 = vpop.permute.xlu1 %343  ;;  %v328_v55 = vpop.permute.xlu0 %327 }
  0xcb   : > { %12805 = vmatmul.mubr.msk.f32.vlgmr.msra.gmra.mrb[20].mxu0 %vm589_vm1, %v14141_v12  ;;  %12808 = vmatpush3.xpose.msk.msra.mxu1 %vm589_vm1, %v328_v55  ;;  %v2959_v12 = vunpack.c.0.s8 %v2958_v11 }
  0xcc   : > { %12817 = vmatprep.subr.mxu1 %v16557_v0  ;;  %12813 = vmatpush3.xpose.msk.msra.mxu0 %vm589_vm1, %v344_v54 }
  0xcd   : > { %12814 = vmatprep.mubr.msk.f32.mxu0 %vm13943_vm0, %v16557_v0  ;;  %12822 = vmatprep.subr.mxu0 %v16557_v0  ;;  %vm14400_vm3 = vcmp.ne.s32.totalorder %v2959_v12, 0 }
  0xce   : > { %v360_v56 = vpop.permute.xlu1 %359  ;;  %v552_v57 = vpop.permute.xlu0 %551 }
  0xcf   : > { %12810 = vmatmul.mubr.msk.f32.vlgmr.msra.gmra.mrb[20].mxu1 %vm589_vm1, %v552_v57 }
  0xd0   : > { %12818 = vmatpush3.xpose.msk.msra.mxu1 %vm589_vm1, %v360_v56  ;;  %12819 = vmatprep.mubr.msk.f32.mxu1 %vm13943_vm0, %v16557_v0 }
  0xd1   : > { %12827 = vmatprep.subr.mxu1 %v16557_v0 }
  0xd2   : > { %v584_v58 = vpop.permute.xlu1 %583  ;;  %v568_v59 = vpop.permute.xlu0 %567 }
  0xd3   : > { %12815 = vmatmul.mubr.msk.f32.vlgmr.msra.gmra.mrb[22].mxu0 %vm589_vm1, %v568_v59  ;;  %12820 = vmatmul.mubr.msk.f32.vlgmr.msra.gmra.mrb[22].mxu1 %vm589_vm1, %v584_v58 }
  0xd4   : > { %12823 = vmatpush3.xpose.msk.msra.mxu0 %vm589_vm1, %v14152_v13  ;;  %12829 = vmatprep.mubr.msk.f32.mxu1 %vm13943_vm0, %v16557_v0  ;;  %v16580_v13 = vmov 0 }
  0xd5   : > { %12824 = vmatprep.mubr.msk.f32.mxu0 %vm13943_vm0, %v16557_v0  ;;  %12832 = vmatprep.subr.mxu0 %v16557_v0  ;;  %v16581_v13 = vsel %vm14400_vm3, 4294967295, %v16580_v13 }
  0xd6   : > { %v346_v60 = vpop.permute.xlu1 %345  ;;  %v330_v61 = vpop.permute.xlu0 %329  ;;  %16582 = vst [vmem:[#allocation5_spill] sm:$0xff] %v16581_v13 }
  0xd7   : > { %12828 = vmatpush3.xpose.msk.msra.mxu1 %vm589_vm1, %v330_v61  ;;  %12825 = vmatmul.mubr.msk.f32.vlgmr.msra.gmra.mrb[24].mxu0 %vm589_vm1, %v14159_v14 }
  0xd8   : > { %12837 = vmatprep.subr.mxu1 %v16557_v0  ;;  %12833 = vmatpush3.xpose.msk.msra.mxu0 %vm589_vm1, %v346_v60 }
  0xd9   : > { %12834 = vmatprep.mubr.msk.f32.mxu0 %vm13943_vm0, %v16557_v0  ;;  %12842 = vmatprep.subr.mxu0 %v16557_v0 }
  0xda   : > { %v362_v62 = vpop.permute.xlu1 %361  ;;  %v554_v63 = vpop.permute.xlu0 %553 }
  0xdb   : > { %12830 = vmatmul.mubr.msk.f32.vlgmr.msra.gmra.mrb[24].mxu1 %vm589_vm1, %v554_v63 }
  0xdc   : > { %12838 = vmatpush3.xpose.msk.msra.mxu1 %vm589_vm1, %v362_v62  ;;  %12839 = vmatprep.mubr.msk.f32.mxu1 %vm13943_vm0, %v16557_v0 }
  0xdd   : > { %12847 = vmatprep.subr.mxu1 %v16557_v0 }
  0xde   : > { %v586_v1 = vpop.permute.xlu1 %585  ;;  %v570_v2 = vpop.permute.xlu0 %569 }
  0xdf   : > { %12835 = vmatmul.mubr.msk.f32.vlgmr.msra.gmra.mrb[26].mxu0 %vm589_vm1, %v570_v2  ;;  %12840 = vmatmul.mubr.msk.f32.vlgmr.msra.gmra.mrb[26].mxu1 %vm589_vm1, %v586_v1 }
  0xe0   : > { %12843 = vmatpush3.xpose.msk.msra.mxu0 %vm589_vm1, %v14170_v15  ;;  %12844 = vmatprep.mubr.msk.f32.mxu0 %vm13943_vm0, %v16557_v0 }
  0xe1   : > { %12849 = vmatprep.mubr.msk.f32.mxu1 %vm13943_vm0, %v16557_v0  ;;  %12852 = vmatprep.subr.mxu0 %v16557_v0 }
  0xe2   : > { %v348_v3 = vpop.permute.xlu1 %347  ;;  %v332_v4 = vpop.permute.xlu0 %331 }
  0xe3   : > { %12845 = vmatmul.mubr.msk.f32.vlgmr.msra.gmra.mrb[28].mxu0 %vm589_vm1, %v14177_v16  ;;  %12848 = vmatpush3.xpose.msk.msra.mxu1 %vm589_vm1, %v332_v4 }
  0xe4   : > { %12857 = vmatprep.subr.mxu1 %v16557_v0  ;;  %12853 = vmatpush3.xpose.msk.msra.mxu0 %vm589_vm1, %v348_v3 }
  0xe5   : > { %12854 = vmatprep.mubr.msk.f32.mxu0 %vm13943_vm0, %v16557_v0  ;;  %12862 = vmatprep.subr.mxu0 %v16557_v0 }
  0xe6   : > { %v364_v6 = vpop.permute.xlu1 %363  ;;  %v556_v7 = vpop.permute.xlu0 %555 }
  0xe7   : > { %12850 = vmatmul.mubr.msk.f32.vlgmr.msra.gmra.mrb[28].mxu1 %vm589_vm1, %v556_v7 }
  0xe8   : > { %12858 = vmatpush3.xpose.msk.msra.mxu1 %vm589_vm1, %v364_v6  ;;  %12859 = vmatprep.mubr.msk.f32.mxu1 %vm13943_vm0, %v16557_v0 }
  0xe9   : > { %12867 = vmatprep.subr.mxu1 %v16557_v0 }
  0xea   : > { %v588_v8 = vpop.permute.xlu1 %587  ;;  %v572_v9 = vpop.permute.xlu0 %571 }
  0xeb   : > { %12855 = vmatmul.mubr.msk.f32.vlgmr.msra.gmra.mrb[30].mxu0 %vm589_vm1, %v572_v9  ;;  %12860 = vmatmul.mubr.msk.f32.vlgmr.msra.gmra.mrb[30].mxu1 %vm589_vm1, %v588_v8 }
  0xec   : > { %12863 = vmatpush3.msra.mxu0 %v14188_v17  ;;  %12864 = vmatprep.mubr.msk.f32.mxu0 %vm13943_vm0, %v16557_v0 }
  0xed   : > { %12872 = vmatprep.subr.mxu0 %v16557_v0  ;;  %12869 = vmatprep.mubr.msk.f32.mxu1 %vm13943_vm0, %v16557_v0 }
  0xee   : > { %v374_v19 = vpop.permute.xlu1 %373  ;;  %v14427_v33 = vpop.permute.xlu0 %397 }
  0xef   : > { %12868 = vmatpush3.msra.mxu1 %v374_v19 }
  0xf0   : > { %12877 = vmatprep.subr.mxu1 %v16557_v0 }
  0xf2   : > { %v14449_v53 = vpop.permute.xlu0 %421 }
  0xf4   : > { %v660_v14 = vpop.f32.mrb[0].mxu0 }
  0xf5   : > { %v2963_v15 = vsel %vm14400_vm3, %v660_v14, -1e+20  ;;  %v12706_v16 = vpop.f32.mrb[1].mxu0 }
  0xf6   : > { %v14406_v18 = vmul.f32 0.35355338, %v2963_v15  ;;  %v14463_v62 = vpop.permute.xlu0 %399 }
  0xf8   : > { %v3027_v17 = vsel %vm589_vm1, %v14406_v18, -inf }
  0xf9   : > { %3028 = vmax.xlane.f32.xlu0 %v3027_v17 }
  0xfa   : > { %v14477_v12 = vpop.permute.xlu0 %423 }
 0x10f   : > { %429 = vrot.lane.b32.xlu0 %v14209_v23, %s13946_s16 }
 0x169   : > { %v734_v20 = vpop.f32.mrb[0].mxu1 }
 0x16a   : > { %v2964_v21 = vsel %vm14400_vm3, %v734_v20, -1e+20  ;;  %v12711_v22 = vpop.f32.mrb[1].mxu1 }
 0x16b   : > { %v14415_v24 = vmul.f32 0.35355338, %v2964_v21 }
 0x16d   : > { %v882_v25 = vpop.f32.mrb[2].mxu1  ;;  %v808_v26 = vpop.f32.mrb[2].mxu0  ;;  %v3030_v27 = vsel %vm589_vm1, %v14415_v24, -inf }
 0x16e   : > { %v2966_v28 = vsel %vm14400_vm3, %v882_v25, -1e+20  ;;  %v2965_v23 = vsel %vm14400_vm3, %v808_v26, -1e+20  ;;  %3031 = vmax.xlane.f32.xlu1 %v3030_v27  ;;  %v12716_v29 = vpop.f32.mrb[3].mxu0  ;;  %v12721_v30 = vpop.f32.mrb[3].mxu1 }
 0x16f   : > { %v14423_v31 = vmul.f32 0.35355338, %v2965_v23  ;;  %v14425_v32 = vmul.f32 0.35355338, %v2966_v28  ;;  %v14491_v25 = vpop.permute.xlu0 %401 }
 0x171   : > { %v956_v34 = vpop.f32.mrb[4].mxu0  ;;  %v3033_v35 = vsel %vm589_vm1, %v14423_v31, -inf  ;;  %v3036_v44 = vsel %vm589_vm1, %v14425_v32, -inf }
 0x172   : > { %v2967_v36 = vsel %vm14400_vm3, %v956_v34, -1e+20  ;;  %3034 = vmax.xlane.f32.xlu0 %v3033_v35  ;;  %v1030_v38 = vpop.f32.mrb[4].mxu1  ;;  %v12726_v39 = vpop.f32.mrb[5].mxu0 }
 0x173   : > { %v14433_v40 = vmul.f32 0.35355338, %v2967_v36  ;;  %v2968_v41 = vsel %vm14400_vm3, %v1030_v38, -1e+20  ;;  %v12731_v42 = vpop.f32.mrb[5].mxu1 }
 0x174   : > { %v14437_v43 = vmul.f32 0.35355338, %v2968_v41  ;;  %v14505_v42 = vpop.permute.xlu0 %403 }
 0x175   : > { %v3039_v45 = vsel %vm589_vm1, %v14433_v40, -inf }
 0x176   : > { %3037 = vmax.xlane.f32.xlu0 %v3036_v44  ;;  %3040 = vmax.xlane.f32.xlu1 %v3039_v45  ;;  %v1104_v46 = vpop.f32.mrb[6].mxu0  ;;  %v1178_v47 = vpop.f32.mrb[6].mxu1  ;;  %v3042_v48 = vsel %vm589_vm1, %v14437_v43, -inf }
 0x177   : > { %v2969_v49 = vsel %vm14400_vm3, %v1104_v46, -1e+20  ;;  %v2970_v50 = vsel %vm14400_vm3, %v1178_v47, -1e+20  ;;  %v12736_v51 = vpop.f32.mrb[7].mxu0  ;;  %v12741_v52 = vpop.f32.mrb[7].mxu1 }
 0x178   : > { %v14451_v54 = vmul.f32 0.35355338, %v2969_v49  ;;  %v14453_v55 = vmul.f32 0.35355338, %v2970_v50 }
 0x17a   : > { %3043 = vmax.xlane.f32.xlu0 %v3042_v48  ;;  %v1252_v56 = vpop.f32.mrb[8].mxu0  ;;  %v3045_v57 = vsel %vm589_vm1, %v14451_v54, -inf  ;;  %v3048_v59 = vsel %vm589_vm1, %v14453_v55, -inf }
 0x17b   : > { %v2971_v58 = vsel %vm14400_vm3, %v1252_v56, -1e+20  ;;  %3046 = vmax.xlane.f32.xlu1 %v3045_v57  ;;  %v12746_v60 = vpop.f32.mrb[9].mxu0 }
 0x17c   : > { %v14461_v61 = vmul.f32 0.35355338, %v2971_v58 }
 0x17e   : > { %v1326_v63 = vpop.f32.mrb[8].mxu1  ;;  %3049 = vmax.xlane.f32.xlu0 %v3048_v59  ;;  %v3051_v1 = vsel %vm589_vm1, %v14461_v61, -inf }
 0x17f   : > { %v2972_v2 = vsel %vm14400_vm3, %v1326_v63, -1e+20  ;;  %3052 = vmax.xlane.f32.xlu1 %v3051_v1  ;;  %v12751_v3 = vpop.f32.mrb[9].mxu1 }
 0x180   : > { %v14469_v4 = vmul.f32 0.35355338, %v2972_v2 }
 0x182   : > { %v1400_v5 = vpop.f32.mrb[10].mxu0  ;;  %v1474_v6 = vpop.f32.mrb[10].mxu1  ;;  %v3054_v7 = vsel %vm589_vm1, %v14469_v4, -inf }
 0x183   : > { %v2973_v8 = vsel %vm14400_vm3, %v1400_v5, -1e+20  ;;  %v2974_v9 = vsel %vm14400_vm3, %v1474_v6, -1e+20  ;;  %3055 = vmax.xlane.f32.xlu0 %v3054_v7  ;;  %v12756_v10 = vpop.f32.mrb[11].mxu0  ;;  %v12761_v11 = vpop.f32.mrb[11].mxu1 }
 0x184   : > { %v14479_v14 = vmul.f32 0.35355338, %v2973_v8  ;;  %v14481_v15 = vmul.f32 0.35355338, %v2974_v9 }
 0x186   : > { %v1548_v16 = vpop.f32.mrb[12].mxu0  ;;  %v3060_v17 = vsel %vm589_vm1, %v14481_v15, -inf  ;;  %v3057_v19 = vsel %vm589_vm1, %v14479_v14, -inf  ;;  %v3029_v52 = vpop.xlane.xlu0 %3028 }
 0x187   : > { %v2975_v20 = vsel %vm14400_vm3, %v1548_v16, -1e+20  ;;  %3061 = vmax.xlane.f32.xlu0 %v3060_v17  ;;  %3058 = vmax.xlane.f32.xlu1 %v3057_v19  ;;  %v12766_v21 = vpop.f32.mrb[13].mxu0  ;;  %v3123_v63 = vsub.f32 %v14406_v18, %v3029_v52 }
 0x188   : > { %v14489_v22 = vmul.f32 0.35355338, %v2975_v20 }
 0x189   : > { %v3155_v11 = vmul.f32 1.442695, %v3123_v63 }
 0x18a   : > { %v1622_v26 = vpop.f32.mrb[12].mxu1  ;;  %v3063_v27 = vsel %vm589_vm1, %v14489_v22, -inf }
 0x18b   : > { %v2976_v28 = vsel %vm14400_vm3, %v1622_v26, -1e+20  ;;  %3064 = vmax.xlane.f32.xlu1 %v3063_v27  ;;  %v12771_v23 = vpop.f32.mrb[13].mxu1  ;;  %13552 = vpow2.f32 %v3155_v11 }
 0x18c   : > { %v14497_v29 = vmul.f32 0.35355338, %v2976_v28 }
 0x18e   : > { %v1696_v30 = vpop.f32.mrb[14].mxu0  ;;  %v1770_v34 = vpop.f32.mrb[14].mxu1  ;;  %v3066_v35 = vsel %vm589_vm1, %v14497_v29, -inf }
 0x18f   : > { %v2977_v36 = vsel %vm14400_vm3, %v1696_v30, -1e+20  ;;  %v2978_v38 = vsel %vm14400_vm3, %v1770_v34, -1e+20  ;;  %3067 = vmax.xlane.f32.xlu0 %v3066_v35  ;;  %v12776_v39 = vpop.f32.mrb[15].mxu0  ;;  %v12781_v41 = vpop.f32.mrb[15].mxu1 }
 0x190   : > { %v14507_v44 = vmul.f32 0.35355338, %v2977_v36  ;;  %v14509_v45 = vmul.f32 0.35355338, %v2978_v38 }
 0x192   : > { %v1844_v46 = vpop.f32.mrb[16].mxu0  ;;  %v3072_v47 = vsel %vm589_vm1, %v14509_v45, -inf  ;;  %v3069_v48 = vsel %vm589_vm1, %v14507_v44, -inf }
 0x193   : > { %v2979_v49 = vsel %vm14400_vm3, %v1844_v46, -1e+20  ;;  %3073 = vmax.xlane.f32.xlu0 %v3072_v47  ;;  %3070 = vmax.xlane.f32.xlu1 %v3069_v48  ;;  %v12786_v50 = vpop.f32.mrb[17].mxu0 }
 0x194   : > { %v14517_v51 = vmul.f32 0.35355338, %v2979_v49 }
 0x196   : > { %v1918_v56 = vpop.f32.mrb[16].mxu1  ;;  %v3075_v57 = vsel %vm589_vm1, %v14517_v51, -inf }
 0x197   : > { %v2980_v58 = vsel %vm14400_vm3, %v1918_v56, -1e+20  ;;  %3076 = vmax.xlane.f32.xlu1 %v3075_v57  ;;  %v12791_v59 = vpop.f32.mrb[17].mxu1  ;;  %v14564_v56 = vpop.eup %13552 }
 0x198   : > { %v14523_v60 = vmul.f32 0.35355338, %v2980_v58 }
 0x19a   : > { %v1992_v1 = vpop.f32.mrb[18].mxu0  ;;  %v2066_v2 = vpop.f32.mrb[18].mxu1  ;;  %v3078_v3 = vsel %vm589_vm1, %v14523_v60, -inf }
 0x19b   : > { %v2981_v5 = vsel %vm14400_vm3, %v1992_v1, -1e+20  ;;  %v2982_v6 = vsel %vm14400_vm3, %v2066_v2, -1e+20  ;;  %3079 = vmax.xlane.f32.xlu0 %v3078_v3  ;;  %v12796_v7 = vpop.f32.mrb[19].mxu0  ;;  %v12801_v8 = vpop.f32.mrb[19].mxu1 }
 0x19c   : > { %v14532_v9 = vmul.f32 0.35355338, %v2981_v5  ;;  %v14534_v10 = vmul.f32 0.35355338, %v2982_v6  ;;  %v3219_v1 = vsel %vm589_vm1, %v14564_v56, 0.0 }
 0x19e   : > { %v2140_v18 = vpop.f32.mrb[20].mxu0  ;;  %v3084_v16 = vsel %vm589_vm1, %v14534_v10, -inf  ;;  %v3081_v17 = vsel %vm589_vm1, %v14532_v9, -inf }
 0x19f   : > { %v2983_v19 = vsel %vm14400_vm3, %v2140_v18, -1e+20  ;;  %3085 = vmax.xlane.f32.xlu0 %v3084_v16  ;;  %3082 = vmax.xlane.f32.xlu1 %v3081_v17  ;;  %v12806_v20 = vpop.f32.mrb[21].mxu0 }
 0x1a0   : > { %v14542_v21 = vmul.f32 0.35355338, %v2983_v19 }
 0x1a2   : > { %v2214_v26 = vpop.f32.mrb[20].mxu1  ;;  %v3087_v27 = vsel %vm589_vm1, %v14542_v21, -inf }
 0x1a3   : > { %v2984_v28 = vsel %vm14400_vm3, %v2214_v26, -1e+20  ;;  %3088 = vmax.xlane.f32.xlu1 %v3087_v27  ;;  %v12811_v23 = vpop.f32.mrb[21].mxu1  ;;  %v14588_v27 = vpop.permute.xlu1 %375 }
 0x1a4   : > { %v14548_v30 = vmul.f32 0.35355338, %v2984_v28 }
 0x1a6   : > { %v2288_v34 = vpop.f32.mrb[22].mxu0  ;;  %v2362_v35 = vpop.f32.mrb[22].mxu1  ;;  %v3090_v36 = vsel %vm589_vm1, %v14548_v30, -inf }
 0x1a7   : > { %v2985_v38 = vsel %vm14400_vm3, %v2288_v34, -1e+20  ;;  %v2986_v39 = vsel %vm14400_vm3, %v2362_v35, -1e+20  ;;  %3091 = vmax.xlane.f32.xlu0 %v3090_v36  ;;  %v12816_v41 = vpop.f32.mrb[23].mxu0  ;;  %v12821_v46 = vpop.f32.mrb[23].mxu1 }
 0x1a8   : > { %v14556_v47 = vmul.f32 0.35355338, %v2985_v38  ;;  %v14558_v48 = vmul.f32 0.35355338, %v2986_v39  ;;  %v14600_v46 = vpop.permute.xlu1 %377 }
 0x1aa   : > { %v3096_v49 = vsel %vm589_vm1, %v14558_v48, -inf  ;;  %v3093_v50 = vsel %vm589_vm1, %v14556_v47, -inf  ;;  %v2436_v52 = vpop.f32.mrb[24].mxu0 }
 0x1ab   : > { %3097 = vmax.xlane.f32.xlu0 %v3096_v49  ;;  %3094 = vmax.xlane.f32.xlu1 %v3093_v50  ;;  %v2987_v57 = vsel %vm14400_vm3, %v2436_v52, -1e+20  ;;  %v12826_v58 = vpop.f32.mrb[25].mxu0 }
 0x1ac   : > { %v14568_v59 = vmul.f32 0.35355338, %v2987_v57 }
 0x1ae   : > { %v2510_v63 = vpop.f32.mrb[24].mxu1  ;;  %v3099_v6 = vsel %vm589_vm1, %v14568_v59, -inf }
 0x1af   : > { %v2988_v2 = vsel %vm14400_vm3, %v2510_v63, -1e+20  ;;  %3220 = vadd.xlane.f32.xlu1 %v3219_v1  ;;  %v12831_v3 = vpop.f32.mrb[25].mxu1 }
 0x1b0   : > { %v14574_v5 = vmul.f32 0.35355338, %v2988_v2 }
 0x1b2   : > { %v2584_v7 = vpop.f32.mrb[26].mxu0  ;;  %v2658_v8 = vpop.f32.mrb[26].mxu1  ;;  %v3102_v11 = vsel %vm589_vm1, %v14574_v5, -inf }
 0x1b3   : > { %v2989_v18 = vsel %vm14400_vm3, %v2584_v7, -1e+20  ;;  %v2990_v16 = vsel %vm14400_vm3, %v2658_v8, -1e+20  ;;  %3103 = vmax.xlane.f32.xlu0 %v3102_v11  ;;  %3100 = vmax.xlane.f32.xlu1 %v3099_v6  ;;  %v12836_v17 = vpop.f32.mrb[27].mxu0  ;;  %v12841_v19 = vpop.f32.mrb[27].mxu1 }
 0x1b4   : > { %v14584_v20 = vmul.f32 0.35355338, %v2989_v18  ;;  %v14586_v26 = vmul.f32 0.35355338, %v2990_v16  ;;  %v14616_v11 = vpop.permute.xlu1 %425 }
 0x1b6   : > { %v2732_v28 = vpop.f32.mrb[28].mxu0  ;;  %v3108_v23 = vsel %vm589_vm1, %v14586_v26, -inf  ;;  %v3105_v34 = vsel %vm589_vm1, %v14584_v20, -inf }
 0x1b7   : > { %v2991_v35 = vsel %vm14400_vm3, %v2732_v28, -1e+20  ;;  %3109 = vmax.xlane.f32.xlu0 %v3108_v23  ;;  %3106 = vmax.xlane.f32.xlu1 %v3105_v34  ;;  %v12846_v36 = vpop.f32.mrb[29].mxu0 }
 0x1b8   : > { %v14596_v38 = vmul.f32 0.35355338, %v2991_v35  ;;  %v14622_v17 = vpop.permute.xlu1 %379 }
 0x1ba   : > { %v2806_v39 = vpop.f32.mrb[28].mxu1  ;;  %v3111_v41 = vsel %vm589_vm1, %v14596_v38, -inf }
 0x1bb   : > { %v2992_v49 = vsel %vm14400_vm3, %v2806_v39, -1e+20  ;;  %3112 = vmax.xlane.f32.xlu1 %v3111_v41  ;;  %v12851_v50 = vpop.f32.mrb[29].mxu1 }
 0x1bc   : > { %v14604_v52 = vmul.f32 0.35355338, %v2992_v49  ;;  %v14624_v19 = vpop.permute.xlu1 %427  ;;  %v14642_v49 = vpop.permute.xlu0 %429 }
 0x1be   : > { %v2880_v57 = vpop.f32.mrb[30].mxu0  ;;  %v2954_v58 = vpop.f32.mrb[30].mxu1  ;;  %v3114_v63 = vsel %vm589_vm1, %v14604_v52, -inf }
 0x1bf   : > { %v2993_v1 = vsel %vm14400_vm3, %v2880_v57, -1e+20  ;;  %v2994_v2 = vsel %vm14400_vm3, %v2954_v58, -1e+20  ;;  %3115 = vmax.xlane.f32.xlu0 %v3114_v63  ;;  %v12861_v3 = vpop.f32.mrb[31].mxu1  ;;  %v12856_v6 = vpop.f32.mrb[31].mxu0 }
 0x1c0   : > { %v14612_v7 = vmul.f32 0.35355338, %v2993_v1  ;;  %v14614_v8 = vmul.f32 0.35355338, %v2994_v2  ;;  %v14626_v28 = vpop.permute.xlu1 %381 }
 0x1c2   : > { %v3120_v18 = vsel %vm589_vm1, %v14614_v8, -inf  ;;  %v3117_v16 = vsel %vm589_vm1, %v14612_v7, -inf }
 0x1c3   : > { %3121 = vmax.xlane.f32.xlu0 %v3120_v18  ;;  %3118 = vmax.xlane.f32.xlu1 %v3117_v16 }
 0x1c4   : > { %v14628_v23 = vpop.permute.xlu1 %405 }
 0x1c8   : > { %v14632_v34 = vpop.permute.xlu1 %383 }
 0x1cc   : > { %v14634_v35 = vpop.permute.xlu1 %407 }
 0x1d0   : > { %v14636_v36 = vpop.permute.xlu1 %431 }
 0x1d4   : > { %v14638_v39 = vpop.permute.xlu1 %385 }
 0x1d8   : > { %v14640_v41 = vpop.permute.xlu1 %409 }
 0x1d9   : > { %433 = vrot.lane.b32.xlu0 %v14263_v37, %s13946_s16  ;;  %16583 = vst [vmem:[#allocation6_spill] sm:$0xff] %v14640_v41 }
 0x1fb   : > { %v3032_v50 = vpop.xlane.xlu1 %3031 }
 0x1fc   : > { %v3124_v57 = vsub.f32 %v14415_v24, %v3032_v50 }
 0x1fe   : > { %v3157_v58 = vmul.f32 1.442695, %v3124_v57 }
 0x1ff   : > { %v3035_v63 = vpop.xlane.xlu0 %3034 }
 0x200   : > { %13554 = vpow2.f32 %v3157_v58  ;;  %v3125_v37 = vsub.f32 %v14423_v31, %v3035_v63 }
 0x202   : > { %v3159_v1 = vmul.f32 1.442695, %v3125_v37 }
 0x203   : > { %v3038_v2 = vpop.xlane.xlu0 %3037  ;;  %v3041_v3 = vpop.xlane.xlu1 %3040 }
 0x204   : > { %13556 = vpow2.f32 %v3159_v1  ;;  %v3126_v6 = vsub.f32 %v14425_v32, %v3038_v2  ;;  %v3127_v18 = vsub.f32 %v14433_v40, %v3041_v3 }
 0x206   : > { %v3161_v16 = vmul.f32 1.442695, %v3126_v6  ;;  %v3163_v0 = vmul.f32 1.442695, %v3127_v18 }
 0x207   : > { %v3044_v13 = vpop.xlane.xlu0 %3043 }
 0x208   : > { %13558 = vpow2.f32 %v3161_v16  ;;  %v3128_v41 = vsub.f32 %v14437_v43, %v3044_v13  ;;  %v3047_v24 = vpop.xlane.xlu1 %3046 }
 0x209   : > { %13560 = vpow2.f32 %v3163_v0  ;;  %v3129_v50 = vsub.f32 %v14451_v54, %v3047_v24 }
 0x20a   : > { %v14650_v57 = vpop.eup %13554  ;;  %v3165_v31 = vmul.f32 1.442695, %v3128_v41 }
 0x20b   : > { %v3167_v58 = vmul.f32 1.442695, %v3129_v50  ;;  %v3050_v63 = vpop.xlane.xlu0 %3049  ;;  %v3222_v32 = vsel %vm589_vm1, %v14650_v57, 0.0 }
 0x20c   : > { %13562 = vpow2.f32 %v3165_v31  ;;  %v3130_v40 = vsub.f32 %v14453_v55, %v3050_v63  ;;  %3223 = vadd.xlane.f32.xlu0 %v3222_v32  ;;  %v3053_v37 = vpop.xlane.xlu1 %3052 }
 0x20d   : > { %13564 = vpow2.f32 %v3167_v58  ;;  %v3131_v13 = vsub.f32 %v14461_v61, %v3053_v37 }
 0x20e   : > { %v14656_v43 = vpop.eup %13556  ;;  %v3169_v0 = vmul.f32 1.442695, %v3130_v40 }
 0x20f   : > { %v3171_v54 = vmul.f32 1.442695, %v3131_v13  ;;  %v3225_v41 = vsel %vm589_vm1, %v14656_v43, 0.0 }
 0x210   : > { %13566 = vpow2.f32 %v3169_v0  ;;  %v3056_v1 = vpop.xlane.xlu0 %3055  ;;  %3226 = vadd.xlane.f32.xlu1 %v3225_v41 }
 0x211   : > { %13568 = vpow2.f32 %v3171_v54  ;;  %v3132_v2 = vsub.f32 %v14469_v4, %v3056_v1 }
 0x212   : > { %v14661_v3 = vpop.eup %13558 }
 0x213   : > { %v14663_v55 = vpop.eup %13560  ;;  %v3173_v6 = vmul.f32 1.442695, %v3132_v2  ;;  %v3228_v61 = vsel %vm589_vm1, %v14661_v3, 0.0 }
 0x214   : > { %3229 = vadd.xlane.f32.xlu0 %v3228_v61  ;;  %v3062_v18 = vpop.xlane.xlu0 %3061  ;;  %v3059_v16 = vpop.xlane.xlu1 %3058  ;;  %v3231_v24 = vsel %vm589_vm1, %v14663_v55, 0.0 }
 0x215   : > { %13570 = vpow2.f32 %v3173_v6  ;;  %v3134_v50 = vsub.f32 %v14481_v15, %v3062_v18  ;;  %v3133_v31 = vsub.f32 %v14479_v14, %v3059_v16  ;;  %3232 = vadd.xlane.f32.xlu1 %v3231_v24 }
 0x216   : > { %v14671_v4 = vpop.eup %13562 }
 0x217   : > { %v14673_v58 = vpop.eup %13564  ;;  %v3177_v63 = vmul.f32 1.442695, %v3134_v50  ;;  %v3175_v32 = vmul.f32 1.442695, %v3133_v31  ;;  %v3234_v40 = vsel %vm589_vm1, %v14671_v4, 0.0 }
 0x218   : > { %3235 = vadd.xlane.f32.xlu0 %v3234_v40  ;;  %v3065_v37 = vpop.xlane.xlu1 %3064  ;;  %v3237_v13 = vsel %vm589_vm1, %v14673_v58, 0.0 }
 0x219   : > { %13572 = vpow2.f32 %v3177_v63  ;;  %v3135_v15 = vsub.f32 %v14489_v22, %v3065_v37  ;;  %3238 = vadd.xlane.f32.xlu1 %v3237_v13 }
 0x21a   : > { %v14680_v14 = vpop.eup %13566  ;;  %13574 = vpow2.f32 %v3175_v32 }
 0x21b   : > { %v14682_v0 = vpop.eup %13568  ;;  %v3179_v54 = vmul.f32 1.442695, %v3135_v15  ;;  %v3240_v41 = vsel %vm589_vm1, %v14680_v14, 0.0 }
 0x21c   : > { %3241 = vadd.xlane.f32.xlu0 %v3240_v41  ;;  %v3068_v1 = vpop.xlane.xlu0 %3067  ;;  %v3243_v2 = vsel %vm589_vm1, %v14682_v0, 0.0 }
 0x21d   : > { %13576 = vpow2.f32 %v3179_v54  ;;  %v3136_v6 = vsub.f32 %v14497_v29, %v3068_v1  ;;  %3244 = vadd.xlane.f32.xlu1 %v3243_v2 }
 0x21f   : > { %v14689_v22 = vpop.eup %13570  ;;  %v3181_v61 = vmul.f32 1.442695, %v3136_v6 }
 0x220   : > { %v3074_v18 = vpop.xlane.xlu0 %3073  ;;  %v3071_v16 = vpop.xlane.xlu1 %3070  ;;  %v3246_v24 = vsel %vm589_vm1, %v14689_v22, 0.0 }
 0x221   : > { %13578 = vpow2.f32 %v3181_v61  ;;  %v3138_v50 = vsub.f32 %v14509_v45, %v3074_v18  ;;  %v3137_v31 = vsub.f32 %v14507_v44, %v3071_v16  ;;  %3247 = vadd.xlane.f32.xlu0 %v3246_v24 }
 0x223   : > { %v14695_v63 = vpop.eup %13572  ;;  %v3185_v32 = vmul.f32 1.442695, %v3138_v50  ;;  %v3183_v40 = vmul.f32 1.442695, %v3137_v31 }
 0x224   : > { %v14697_v29 = vpop.eup %13574  ;;  %v3077_v37 = vpop.xlane.xlu1 %3076  ;;  %v3252_v13 = vsel %vm589_vm1, %v14695_v63, 0.0 }
 0x225   : > { %13580 = vpow2.f32 %v3185_v32  ;;  %v3139_v15 = vsub.f32 %v14517_v51, %v3077_v37  ;;  %3253 = vadd.xlane.f32.xlu0 %v3252_v13  ;;  %v3249_v45 = vsel %vm589_vm1, %v14697_v29, 0.0 }
 0x226   : > { %13582 = vpow2.f32 %v3183_v40  ;;  %3250 = vadd.xlane.f32.xlu1 %v3249_v45 }
 0x227   : > { %v14704_v44 = vpop.eup %13576  ;;  %v3187_v54 = vmul.f32 1.442695, %v3139_v15 }
 0x228   : > { %v3080_v41 = vpop.xlane.xlu0 %3079  ;;  %v3255_v1 = vsel %vm589_vm1, %v14704_v44, 0.0 }
 0x229   : > { %13584 = vpow2.f32 %v3187_v54  ;;  %v3140_v2 = vsub.f32 %v14523_v60, %v3080_v41  ;;  %3256 = vadd.xlane.f32.xlu0 %v3255_v1 }
 0x22b   : > { %v14709_v6 = vpop.eup %13578  ;;  %v3189_v51 = vmul.f32 1.442695, %v3140_v2 }
 0x22c   : > { %v3086_v61 = vpop.xlane.xlu0 %3085  ;;  %v3083_v18 = vpop.xlane.xlu1 %3082  ;;  %v3258_v16 = vsel %vm589_vm1, %v14709_v6, 0.0 }
 0x22d   : > { %13586 = vpow2.f32 %v3189_v51  ;;  %v3142_v24 = vsub.f32 %v14534_v10, %v3086_v61  ;;  %v3141_v50 = vsub.f32 %v14532_v9, %v3083_v18  ;;  %3259 = vadd.xlane.f32.xlu1 %v3258_v16 }
 0x22f   : > { %v14715_v31 = vpop.eup %13580  ;;  %v3193_v32 = vmul.f32 1.442695, %v3142_v24  ;;  %v3191_v40 = vmul.f32 1.442695, %v3141_v50 }
 0x230   : > { %v14717_v60 = vpop.eup %13582  ;;  %v3089_v37 = vpop.xlane.xlu1 %3088  ;;  %v3264_v13 = vsel %vm589_vm1, %v14715_v31, 0.0 }
 0x231   : > { %13588 = vpow2.f32 %v3193_v32  ;;  %v3143_v15 = vsub.f32 %v14542_v21, %v3089_v37  ;;  %v3261_v45 = vsel %vm589_vm1, %v14717_v60, 0.0  ;;  %3265 = vadd.xlane.f32.xlu1 %v3264_v13 }
 0x232   : > { %13590 = vpow2.f32 %v3191_v40  ;;  %3262 = vadd.xlane.f32.xlu0 %v3261_v45 }
 0x233   : > { %v14724_v9 = vpop.eup %13584  ;;  %v3195_v10 = vmul.f32 1.442695, %v3143_v15 }
 0x234   : > { %v3092_v54 = vpop.xlane.xlu0 %3091  ;;  %v3267_v41 = vsel %vm589_vm1, %v14724_v9, 0.0 }
 0x235   : > { %13592 = vpow2.f32 %v3195_v10  ;;  %v3144_v1 = vsub.f32 %v14548_v30, %v3092_v54 }
 0x236   : > { %3268 = vadd.xlane.f32.xlu0 %v3267_v41 }
 0x237   : > { %v14729_v2 = vpop.eup %13586  ;;  %v3197_v21 = vmul.f32 1.442695, %v3144_v1 }
 0x238   : > { %v3098_v51 = vpop.xlane.xlu0 %3097  ;;  %v3095_v61 = vpop.xlane.xlu1 %3094  ;;  %v3270_v18 = vsel %vm589_vm1, %v14729_v2, 0.0 }
 0x239   : > { %13594 = vpow2.f32 %v3197_v21  ;;  %v3146_v16 = vsub.f32 %v14558_v48, %v3098_v51  ;;  %v3145_v24 = vsub.f32 %v14556_v47, %v3095_v61  ;;  %3271 = vadd.xlane.f32.xlu1 %v3270_v18 }
 0x23b   : > { %v14735_v50 = vpop.eup %13588  ;;  %v3199_v32 = vmul.f32 1.442695, %v3145_v24  ;;  %v3201_v30 = vmul.f32 1.442695, %v3146_v16 }
 0x23c   : > { %v14737_v40 = vpop.eup %13590  ;;  %v3221_v37 = vpop.xlane.xlu1 %3220  ;;  %v3276_v13 = vsel %vm589_vm1, %v14735_v50, 0.0 }
 0x23d   : > { %v3273_v15 = vsel %vm589_vm1, %v14737_v40, 0.0  ;;  %3277 = vadd.xlane.f32.xlu1 %v3276_v13  ;;  %13596 = vpow2.f32 %v3199_v32 }
 0x23e   : > { %3274 = vadd.xlane.f32.xlu0 %v3273_v15  ;;  %13598 = vrcp.f32 %v3221_v37 }
 0x23f   : > { %v14743_v48 = vpop.eup %13592  ;;  %13600 = vpow2.f32 %v3201_v30 }
 0x240   : > { %v3104_v47 = vpop.xlane.xlu0 %3103  ;;  %v14745_v45 = vpop.xlane.xlu1 %3100  ;;  %v3279_v10 = vsel %vm589_vm1, %v14743_v48, 0.0 }
 0x241   : > { %v3148_v54 = vsub.f32 %v14574_v5, %v3104_v47  ;;  %3280 = vadd.xlane.f32.xlu1 %v3279_v10 }
 0x243   : > { %v14750_v41 = vpop.eup %13594  ;;  %v3205_v1 = vmul.f32 1.442695, %v3148_v54  ;;  %v16584_v54 = vmov 0.0  }
 0x244   : > { %v3110_v21 = vpop.xlane.xlu0 %3109  ;;  %v3107_v51 = vpop.xlane.xlu1 %3106  ;;  %v3282_v61 = vsel %vm589_vm1, %v14750_v41, 0.0 }
 0x245   : > { %13602 = vpow2.f32 %v3205_v1  ;;  %v3150_v18 = vsub.f32 %v14586_v26, %v3110_v21  ;;  %v3149_v16 = vsub.f32 %v14584_v20, %v3107_v51  ;;  %3283 = vadd.xlane.f32.xlu1 %v3282_v61 }
 0x247   : > { %v3207_v24 = vmul.f32 1.442695, %v3149_v16  ;;  %v14756_v32 = vpop.eup %13596  ;;  %v3209_v30 = vmul.f32 1.442695, %v3150_v18  ;;  %v14778_v16 = vld [vmem:[%s14047_s13 + $0xb0] sm:$0xff] }
 0x248   : > { %v13599_v5 = vpop.eup %13598  ;;  %v3285_v37 = vsel %vm589_vm1, %v14756_v32, 0.0  ;;  %v3113_v47 = vpop.xlane.xlu1 %3112 }
 0x249   : > { %v14760_v13 = vpop.eup %13600  ;;  %13604 = vpow2.f32 %v3207_v24  ;;  %3286 = vadd.xlane.f32.xlu0 %v3285_v37  ;;  %v3347_v15 = vmul.f32 %v13599_v5, %v14564_v56 }
 0x24a   : > { %13606 = vpow2.f32 %v3209_v30  ;;  %v3288_v10 = vsel %vm589_vm1, %v14760_v13, 0.0 }
 0x24b   : > { %12865 = vmatmul.mubr.msk.f32.vlgmr.msra.gmra.mrb[32].mxu0 %vm589_vm1, %v3347_v15 }
 0x24c   : > { %v3116_v20 = vpop.xlane.xlu0 %3115  ;;  %12873 = vmatpush3.msra.mxu0 %v14427_v33  ;;  %12874 = vmatprep.mubr.msk.f32.mxu0 %vm13943_vm0, %v16584_v54 }
 0x24d   : > { %v3152_v26 = vsub.f32 %v14604_v52, %v3116_v20  ;;  %3289 = vadd.xlane.f32.xlu0 %v3288_v10  ;;  %12882 = vmatprep.subr.mxu0 %v16584_v54 }
 0x24f   : > { %v14771_v56 = vpop.eup %13602  ;;  %v3213_v1 = vmul.f32 1.442695, %v3152_v26 }
 0x250   : > { %v3122_v21 = vpop.xlane.xlu0 %3121  ;;  %v3119_v51 = vpop.xlane.xlu1 %3118  ;;  %v3294_v33 = vsel %vm589_vm1, %v14771_v56, 0.0 }
 0x251   : > { %13608 = vpow2.f32 %v3213_v1  ;;  %v3154_v52 = vsub.f32 %v14614_v8, %v3122_v21  ;;  %v3153_v61 = vsub.f32 %v14612_v7, %v3119_v51  ;;  %3295 = vadd.xlane.f32.xlu0 %v3294_v33  ;;  %v3147_v1 = vsub.f32 %v14568_v59, %v14745_v45 }
 0x252   : > { %v3151_v33 = vsub.f32 %v14596_v38, %v3113_v47 }
 0x253   : > { %v3215_v18 = vmul.f32 1.442695, %v3153_v61  ;;  %v14780_v24 = vpop.eup %13604  ;;  %v3217_v30 = vmul.f32 1.442695, %v3154_v52  ;;  %v3203_v51 = vmul.f32 1.442695, %v3147_v1 }
 0x254   : > { %v3297_v5 = vsel %vm589_vm1, %v14780_v24, 0.0  ;;  %v14784_v37 = vpop.eup %13606  ;;  %v3211_v52 = vmul.f32 1.442695, %v3151_v33  ;;  %v14817_v38 = vpop.permute.xlu0 %433 }
 0x255   : > { %13610 = vpow2.f32 %v3215_v18  ;;  %3298 = vadd.xlane.f32.xlu0 %v3297_v5  ;;  %v3300_v7 = vsel %vm589_vm1, %v14784_v37, 0.0 }
 0x256   : > { %387 = vrot.lane.b32.xlu1 %v14778_v16, %s13945_s15  ;;  %13612 = vpow2.f32 %v3217_v30 }
 0x257   : > { %13614 = vpow2.f32 %v3203_v51 }
 0x258   : > { %13616 = vpow2.f32 %v3211_v52 }
 0x259   : > { %3301 = vadd.xlane.f32.xlu0 %v3300_v7 }
 0x25b   : > { %v14790_v8 = vpop.eup %13608 }
 0x25c   : > { %v3306_v15 = vsel %vm589_vm1, %v14790_v8, 0.0 }
 0x25d   : > { %3307 = vadd.xlane.f32.xlu0 %v3306_v15 }
 0x25f   : > { %v14794_v20 = vpop.eup %13610 }
 0x260   : > { %v3309_v26 = vsel %vm589_vm1, %v14794_v20, 0.0  ;;  %v14798_v10 = vpop.eup %13612 }
 0x261   : > { %3310 = vadd.xlane.f32.xlu0 %v3309_v26  ;;  %v3312_v21 = vsel %vm589_vm1, %v14798_v10, 0.0  ;;  %v14805_v61 = vpop.eup %13614 }
 0x262   : > { %v3291_v18 = vsel %vm589_vm1, %v14805_v61, 0.0  ;;  %v14809_v30 = vpop.eup %13616 }
 0x263   : > { %v3303_v59 = vsel %vm589_vm1, %v14809_v30, 0.0 }
 0x265   : > { %3313 = vadd.xlane.f32.xlu0 %v3312_v21 }
 0x27a   : > { %3292 = vadd.xlane.f32.xlu1 %v3291_v18 }
 0x27b   : > { %411 = vrot.lane.b32.xlu0 %v14778_v16, %s13944_s14 }
 0x27e   : > { %3304 = vadd.xlane.f32.xlu1 %v3303_v59  ;;  %v13856_v59 = vld [vmem:[%s14047_s13 + $0x20] sm:$0xff] }
 0x28f   : > { %435 = vrot.lane.b32.xlu1 %v14778_v16, %s13946_s16 }
 0x299   : > { %v3224_v45 = vpop.xlane.xlu0 %3223 }
 0x29a   : > { %13618 = vrcp.f32 %v3224_v45 }
 0x29d   : > { %v3227_v47 = vpop.xlane.xlu1 %3226 }
 0x29e   : > { %13620 = vrcp.f32 %v3227_v47 }
 0x2a1   : > { %v3230_v5 = vpop.xlane.xlu0 %3229 }
 0x2a2   : > { %13622 = vrcp.f32 %v3230_v5  ;;  %v3233_v7 = vpop.xlane.xlu1 %3232 }
 0x2a3   : > { %13624 = vrcp.f32 %v3233_v7 }
 0x2a4   : > { %v13619_v15 = vpop.eup %13618 }
 0x2a5   : > { %v3236_v26 = vpop.xlane.xlu0 %3235  ;;  %v3348_v1 = vmul.f32 %v13619_v15, %v14650_v57 }
 0x2a6   : > { %13626 = vrcp.f32 %v3236_v26  ;;  %v3239_v21 = vpop.xlane.xlu1 %3238 }
 0x2a7   : > { %13628 = vrcp.f32 %v3239_v21  ;;  %12870 = vmatmul.mubr.msk.f32.vlgmr.msra.gmra.mrb[32].mxu1 %vm589_vm1, %v3348_v1  ;;  %v13857_v1 = vld [vmem:[%s14047_s13 + $0x38] sm:$0xff] }
 0x2a8   : > { %v13621_v51 = vpop.eup %13620  ;;  %12878 = vmatpush3.msra.mxu1 %v14449_v53  ;;  %12879 = vmatprep.mubr.msk.f32.mxu1 %vm13943_vm0, %v16584_v54 }
 0x2a9   : > { %v3242_v33 = vpop.xlane.xlu0 %3241  ;;  %v3349_v52 = vmul.f32 %v13621_v51, %v14656_v43  ;;  %12887 = vmatprep.subr.mxu1 %v16584_v54 }
 0x2aa   : > { %13630 = vrcp.f32 %v3242_v33  ;;  %v3245_v18 = vpop.xlane.xlu1 %3244 }
 0x2ab   : > { %13632 = vrcp.f32 %v3245_v18  ;;  %12875 = vmatmul.mubr.msk.f32.vlgmr.msra.gmra.mrb[34].mxu0 %vm589_vm1, %v3349_v52 }
 0x2ac   : > { %v13623_v57 = vpop.eup %13622  ;;  %12883 = vmatpush3.msra.mxu0 %v13856_v59  ;;  %12884 = vmatprep.mubr.msk.f32.mxu0 %vm13943_vm0, %v16584_v54 }
 0x2ad   : > { %v13625_v53 = vpop.eup %13624  ;;  %12892 = vmatprep.subr.mxu0 %v16584_v54  ;;  %v3350_v45 = vmul.f32 %v13623_v57, %v14661_v3 }
 0x2ae   : > { %v3248_v47 = vpop.xlane.xlu0 %3247  ;;  %v3351_v43 = vmul.f32 %v13625_v53, %v14663_v55 }
 0x2af   : > { %13634 = vrcp.f32 %v3248_v47  ;;  %12880 = vmatmul.mubr.msk.f32.vlgmr.msra.gmra.mrb[34].mxu1 %vm589_vm1, %v3350_v45 }
 0x2b0   : > { %v13627_v5 = vpop.eup %13626  ;;  %12885 = vmatmul.mubr.msk.f32.vlgmr.msra.gmra.mrb[36].mxu0 %vm589_vm1, %v3351_v43  ;;  %12888 = vmatpush3.msra.mxu1 %v14588_v27  ;;  %v13859_v43 = vld [vmem:[%s14047_s13 + $0x68] sm:$0xff] }
 0x2b1   : > { %v13629_v7 = vpop.eup %13628  ;;  %12893 = vmatpush3.msra.mxu0 %v14463_v62  ;;  %12889 = vmatprep.mubr.msk.f32.mxu1 %vm13943_vm0, %v16584_v54  ;;  %v3352_v15 = vmul.f32 %v13627_v5, %v14671_v4 }
 0x2b2   : > { %12897 = vmatprep.subr.mxu1 %v16584_v54  ;;  %v3254_v3 = vpop.xlane.xlu0 %3253  ;;  %12894 = vmatprep.mubr.msk.f32.mxu0 %vm13943_vm0, %v16584_v54  ;;  %v3353_v55 = vmul.f32 %v13629_v7, %v14673_v58 }
 0x2b3   : > { %13636 = vrcp.f32 %v3254_v3  ;;  %v3251_v26 = vpop.xlane.xlu1 %3250  ;;  %12890 = vmatmul.mubr.msk.f32.vlgmr.msra.gmra.mrb[36].mxu1 %vm589_vm1, %v3352_v15  ;;  %12902 = vmatprep.subr.mxu0 %v16584_v54 }
 0x2b4   : > { %v13631_v62 = vpop.eup %13630  ;;  %13638 = vrcp.f32 %v3251_v26  ;;  %12898 = vmatpush3.msra.mxu1 %v14477_v12  ;;  %12895 = vmatmul.mubr.msk.f32.vlgmr.msra.gmra.mrb[38].mxu0 %vm589_vm1, %v3353_v55 }
 0x2b5   : > { %v13633_v27 = vpop.eup %13632  ;;  %12899 = vmatprep.mubr.msk.f32.mxu1 %vm13943_vm0, %v16584_v54  ;;  %12907 = vmatprep.subr.mxu1 %v16584_v54  ;;  %v3354_v4 = vmul.f32 %v13631_v62, %v14680_v14 }
 0x2b6   : > { %v3257_v58 = vpop.xlane.xlu0 %3256  ;;  %12903 = vmatpush3.msra.mxu0 %v13857_v1  ;;  %12904 = vmatprep.mubr.msk.f32.mxu0 %vm13943_vm0, %v16584_v54  ;;  %v3355_v21 = vmul.f32 %v13633_v27, %v14682_v0 }
 0x2b7   : > { %13640 = vrcp.f32 %v3257_v58  ;;  %12900 = vmatmul.mubr.msk.f32.vlgmr.msra.gmra.mrb[38].mxu1 %vm589_vm1, %v3354_v4  ;;  %12912 = vmatprep.subr.mxu0 %v16584_v54  ;;  %v13861_v4 = vld [vmem:[%s14047_s13 + $0x98] sm:$0xff] }
 0x2b8   : > { %12908 = vmatpush3.msra.mxu1 %v14600_v46  ;;  %12905 = vmatmul.mubr.msk.f32.vlgmr.msra.gmra.mrb[40].mxu0 %vm589_vm1, %v3355_v21 }
 0x2b9   : > { %v13635_v12 = vpop.eup %13634  ;;  %12913 = vmatpush3.msra.mxu0 %v14491_v25  ;;  %12909 = vmatprep.mubr.msk.f32.mxu1 %vm13943_vm0, %v16584_v54 }
 0x2ba   : > { %v3260_v14 = vpop.xlane.xlu1 %3259  ;;  %12917 = vmatprep.subr.mxu1 %v16584_v54  ;;  %v3356_v0 = vmul.f32 %v13635_v12, %v14689_v22  ;;  %12914 = vmatprep.mubr.msk.f32.mxu0 %vm13943_vm0, %v16584_v54 }
 0x2bb   : > { %13642 = vrcp.f32 %v3260_v14  ;;  %12922 = vmatprep.subr.mxu0 %v16584_v54 }
 0x2bc   : > { %12910 = vmatmul.mubr.msk.f32.vlgmr.msra.gmra.mrb[40].mxu1 %vm589_vm1, %v3356_v0 }
 0x2bd   : > { %v13637_v46 = vpop.eup %13636  ;;  %12918 = vmatpush3.msra.mxu1 %v14616_v11  ;;  %12919 = vmatprep.mubr.msk.f32.mxu1 %vm13943_vm0, %v16584_v54  ;;  %v13858_v11 = vld [vmem:[%s14047_s13 + $0x50] sm:$0xff] }
 0x2be   : > { %v13639_v25 = vpop.eup %13638  ;;  %v3266_v51 = vpop.xlane.xlu1 %3265  ;;  %12927 = vmatprep.subr.mxu1 %v16584_v54  ;;  %v3358_v22 = vmul.f32 %v13637_v46, %v14695_v63 }
 0x2bf   : > { %v3263_v33 = vpop.xlane.xlu0 %3262  ;;  %13644 = vrcp.f32 %v3266_v51  ;;  %v3357_v52 = vmul.f32 %v13639_v25, %v14697_v29 }
 0x2c0   : > { %13646 = vrcp.f32 %v3263_v33  ;;  %12920 = vmatmul.mubr.msk.f32.vlgmr.msra.gmra.mrb[42].mxu1 %vm589_vm1, %v3358_v22 }
 0x2c1   : > { %v13641_v18 = vpop.eup %13640  ;;  %12915 = vmatmul.mubr.msk.f32.vlgmr.msra.gmra.mrb[42].mxu0 %vm589_vm1, %v3357_v52  ;;  %12928 = vmatpush3.msra.mxu1 %v14622_v17 }
 0x2c2   : > { %12923 = vmatpush3.msra.mxu0 %v13858_v11  ;;  %12924 = vmatprep.mubr.msk.f32.mxu0 %vm13943_vm0, %v16584_v54  ;;  %v3359_v57 = vmul.f32 %v13641_v18, %v14704_v44  ;;  %v16585_v18 = vld [vmem:[#allocation6_spill] sm:$0xff] }
 0x2c3   : > { %v3269_v63 = vpop.xlane.xlu0 %3268  ;;  %12932 = vmatprep.subr.mxu0 %v16584_v54  ;;  %12929 = vmatprep.mubr.msk.f32.mxu1 %vm13943_vm0, %v16584_v54 }
 0x2c4   : > { %13648 = vrcp.f32 %v3269_v63  ;;  %12937 = vmatprep.subr.mxu1 %v16584_v54 }
 0x2c5   : > { %v13643_v29 = vpop.eup %13642  ;;  %12925 = vmatmul.mubr.msk.f32.vlgmr.msra.gmra.mrb[44].mxu0 %vm589_vm1, %v3359_v57 }
 0x2c6   : > { %12933 = vmatpush3.msra.mxu0 %v14505_v42  ;;  %v3272_v17 = vpop.xlane.xlu1 %3271  ;;  %v3360_v59 = vmul.f32 %v13643_v29, %v14709_v6  ;;  %12934 = vmatprep.mubr.msk.f32.mxu0 %vm13943_vm0, %v16584_v54 }
 0x2c7   : > { %13650 = vrcp.f32 %v3272_v17  ;;  %12942 = vmatprep.subr.mxu0 %v16584_v54 }
 0x2c8   : > { %12930 = vmatmul.mubr.msk.f32.vlgmr.msra.gmra.mrb[44].mxu1 %vm589_vm1, %v3360_v59  ;;  %v278_v59 = vld [vmem:[%s16554_s3 + $0xa8] sm:$0xff] }
 0x2c9   : > { %v13645_v44 = vpop.eup %13644  ;;  %12938 = vmatpush3.msra.mxu1 %v14624_v19  ;;  %12939 = vmatprep.mubr.msk.f32.mxu1 %vm13943_vm0, %v16584_v54 }
 0x2ca   : > { %v13647_v53 = vpop.eup %13646  ;;  %v3278_v42 = vpop.xlane.xlu1 %3277  ;;  %12947 = vmatprep.subr.mxu1 %v16584_v54  ;;  %v3362_v6 = vmul.f32 %v13645_v44, %v14715_v31 }
 0x2cb   : > { %v3275_v45 = vpop.xlane.xlu0 %3274  ;;  %13652 = vrcp.f32 %v3278_v42  ;;  %v3361_v47 = vmul.f32 %v13647_v53, %v14717_v60 }
 0x2cc   : > { %13654 = vrcp.f32 %v3275_v45  ;;  %12940 = vmatmul.mubr.msk.f32.vlgmr.msra.gmra.mrb[46].mxu1 %vm589_vm1, %v3362_v6  ;;  %v280_v6 = vld [vmem:[%s16554_s3 + $0xb8] sm:$0xff] }
 0x2cd   : > { %12935 = vmatmul.mubr.msk.f32.vlgmr.msra.gmra.mrb[46].mxu0 %vm589_vm1, %v3361_v47  ;;  %12948 = vmatpush3.msra.mxu1 %v14626_v28 }
 0x2ce   : > { %v13649_v19 = vpop.eup %13648  ;;  %12943 = vmatpush3.msra.mxu0 %v13859_v43  ;;  %v3281_v5 = vpop.xlane.xlu1 %3280  ;;  %12944 = vmatprep.mubr.msk.f32.mxu0 %vm13943_vm0, %v16584_v54 }
 0x2cf   : > { %13656 = vrcp.f32 %v3281_v5  ;;  %12952 = vmatprep.subr.mxu0 %v16584_v54  ;;  %v3363_v31 = vmul.f32 %v13649_v19, %v14724_v9  ;;  %12949 = vmatprep.mubr.msk.f32.mxu1 %vm13943_vm0, %v16584_v54 }
 0x2d0   : > { %12957 = vmatprep.subr.mxu1 %v16584_v54 }
 0x2d1   : > { %v13651_v60 = vpop.eup %13650  ;;  %12945 = vmatmul.mubr.msk.f32.vlgmr.msra.gmra.mrb[48].mxu0 %vm589_vm1, %v3363_v31 }
 0x2d2   : > { %12953 = vmatpush3.msra.mxu0 %v14628_v23  ;;  %v3284_v28 = vpop.xlane.xlu1 %3283  ;;  %v3364_v7 = vmul.f32 %v13651_v60, %v14729_v2  ;;  %12954 = vmatprep.mubr.msk.f32.mxu0 %vm13943_vm0, %v16584_v54 }
 0x2d3   : > { %13658 = vrcp.f32 %v3284_v28  ;;  %12962 = vmatprep.subr.mxu0 %v16584_v54 }
 0x2d4   : > { %12950 = vmatmul.mubr.msk.f32.vlgmr.msra.gmra.mrb[48].mxu1 %vm589_vm1, %v3364_v7 }
 0x2d5   : > { %v13653_v9 = vpop.eup %13652  ;;  %12958 = vmatpush3.msra.mxu1 %v14642_v49  ;;  %12959 = vmatprep.mubr.msk.f32.mxu1 %vm13943_vm0, %v16584_v54  ;;  %v13860_v49 = vld [vmem:[%s14047_s13 + $0x80] sm:$0xff] }
 0x2d6   : > { %v13655_v15 = vpop.eup %13654  ;;  %12967 = vmatprep.subr.mxu1 %v16584_v54  ;;  %v3366_v23 = vmul.f32 %v13653_v9, %v14735_v50  ;;  %v3287_v2 = vpop.xlane.xlu0 %3286 }
 0x2d7   : > { %v3365_v3 = vmul.f32 %v13655_v15, %v14737_v40  ;;  %13660 = vrcp.f32 %v3287_v2  ;;  %v388_v12 = vpop.permute.xlu1 %387 }
 0x2d8   : > { %12960 = vmatmul.mubr.msk.f32.vlgmr.msra.gmra.mrb[50].mxu1 %vm589_vm1, %v3366_v23 }
 0x2d9   : > { %v13657_v55 = vpop.eup %13656  ;;  %12955 = vmatmul.mubr.msk.f32.vlgmr.msra.gmra.mrb[50].mxu0 %vm589_vm1, %v3365_v3  ;;  %12968 = vmatpush3.msra.mxu1 %v14632_v34 }
 0x2da   : > { %12963 = vmatpush3.msra.mxu0 %v13860_v49  ;;  %12964 = vmatprep.mubr.msk.f32.mxu0 %vm13943_vm0, %v16584_v54  ;;  %v3367_v26 = vmul.f32 %v13657_v55, %v14743_v48  ;;  %v3290_v62 = vpop.xlane.xlu0 %3289 }
 0x2db   : > { %12972 = vmatprep.subr.mxu0 %v16584_v54  ;;  %12969 = vmatprep.mubr.msk.f32.mxu1 %vm13943_vm0, %v16584_v54  ;;  %13662 = vrcp.f32 %v3290_v62 }
 0x2dc   : > { %12977 = vmatprep.subr.mxu1 %v16584_v54 }
 0x2dd   : > { %v13659_v50 = vpop.eup %13658  ;;  %12965 = vmatmul.mubr.msk.f32.vlgmr.msra.gmra.mrb[52].mxu0 %vm589_vm1, %v3367_v26 }
 0x2de   : > { %12973 = vmatpush3.msra.mxu0 %v14634_v35  ;;  %v3368_v34 = vmul.f32 %v13659_v50, %v14750_v41  ;;  %12974 = vmatprep.mubr.msk.f32.mxu0 %vm13943_vm0, %v16584_v54  ;;  %v3296_v40 = vpop.xlane.xlu0 %3295 }
 0x2df   : > { %12982 = vmatprep.subr.mxu0 %v16584_v54  ;;  %13664 = vrcp.f32 %v3296_v40 }
 0x2e0   : > { %12970 = vmatmul.mubr.msk.f32.vlgmr.msra.gmra.mrb[52].mxu1 %vm589_vm1, %v3368_v34 }
 0x2e1   : > { %12978 = vmatpush3.msra.mxu1 %v14636_v36  ;;  %12979 = vmatprep.mubr.msk.f32.mxu1 %vm13943_vm0, %v16584_v54  ;;  %v13661_v48 = vpop.eup %13660 }
 0x2e2   : > { %12987 = vmatprep.subr.mxu1 %v16584_v54  ;;  %v3299_v35 = vpop.xlane.xlu0 %3298  ;;  %v3369_v41 = vmul.f32 %v13661_v48, %v14756_v32 }
 0x2e4   : > { %12975 = vmatmul.mubr.msk.f32.vlgmr.msra.gmra.mrb[54].mxu0 %vm589_vm1, %v3369_v41 }
 0x2e5   : > { %v13663_v27 = vpop.eup %13662  ;;  %12983 = vmatpush3.msra.mxu0 %v13861_v4  ;;  %12984 = vmatprep.mubr.msk.f32.mxu0 %vm13943_vm0, %v16584_v54 }
 0x2e6   : > { %v3302_v58 = vpop.xlane.xlu0 %3301  ;;  %v3370_v36 = vmul.f32 %v13663_v27, %v14760_v13  ;;  %12992 = vmatprep.subr.mxu0 %v16584_v54 }
 0x2e7   : > { %13666 = vrcp.f32 %v3302_v58 }
 0x2e8   : > { %12980 = vmatmul.mubr.msk.f32.vlgmr.msra.gmra.mrb[54].mxu1 %vm589_vm1, %v3370_v36 }
 0x2e9   : > { %v13665_v1 = vpop.eup %13664  ;;  %12988 = vmatpush3.msra.mxu1 %v14638_v39  ;;  %12989 = vmatprep.mubr.msk.f32.mxu1 %vm13943_vm0, %v16584_v54 }
 0x2ea   : > { %v3308_v32 = vpop.xlane.xlu0 %3307  ;;  %12997 = vmatprep.subr.mxu1 %v16584_v54  ;;  %v3372_v21 = vmul.f32 %v13665_v1, %v14771_v56 }
 0x2eb   : > { %13668 = vrcp.f32 %v3308_v32 }
 0x2ec   : > { %12990 = vmatmul.mubr.msk.f32.vlgmr.msra.gmra.mrb[56].mxu1 %vm589_vm1, %v3372_v21 }
 0x2ed   : > { %12998 = vmatpush3.msra.mxu1 %v14817_v38  ;;  %12999 = vmatprep.mubr.msk.f32.mxu1 %vm13943_vm0, %v16584_v54 }
 0x2ee   : > { %13007 = vmatprep.subr.mxu1 %v16584_v54  ;;  %v3311_v38 = vpop.xlane.xlu0 %3310 }
 0x2f1   : > { %v13667_v13 = vpop.eup %13666 }
 0x2f2   : > { %v3374_v39 = vmul.f32 %v13667_v13, %v14784_v37  ;;  %v3314_v0 = vpop.xlane.xlu0 %3313 }
 0x2f3   : > { %13670 = vrcp.f32 %v3314_v0 }
 0x2f4   : > { %13000 = vmatmul.mubr.msk.f32.vlgmr.msra.gmra.mrb[58].mxu1 %vm589_vm1, %v3374_v39 }
 0x2f5   : > { %v13669_v14 = vpop.eup %13668  ;;  %13008 = vmatpush3.msra.mxu1 %v388_v12  ;;  %13009 = vmatprep.mubr.msk.f32.mxu1 %vm13943_vm0, %v16584_v54 }
 0x2f6   : > { %v3376_v56 = vmul.f32 %v13669_v14, %v14790_v8  ;;  %13017 = vmatprep.subr.mxu1 %v16584_v54  ;;  %v412_v57 = vpop.permute.xlu0 %411 }
 0x2f8   : > { %13010 = vmatmul.mubr.msk.f32.vlgmr.msra.gmra.mrb[60].mxu1 %vm589_vm1, %v3376_v56 }
 0x2f9   : > { %13019 = vmatprep.mubr.msk.f32.mxu1 %vm13943_vm0, %v16584_v54 }
 0x2fd   : > { %v13671_v25 = vpop.eup %13670 }
 0x2fe   : > { %v3378_v22 = vmul.f32 %v13671_v25, %v14798_v10 }
 0x307   : > { %v3293_v37 = vpop.xlane.xlu1 %3292 }
 0x308   : > { %13672 = vrcp.f32 %v3293_v37 }
 0x309   : > { %13674 = vrcp.f32 %v3299_v35 }
 0x30b   : > { %v3305_v46 = vpop.xlane.xlu1 %3304 }
 0x30c   : > { %13676 = vrcp.f32 %v3305_v46 }
 0x30d   : > { %13678 = vrcp.f32 %v3311_v38 }
 0x30f   : > { %v436_v51 = vpop.permute.xlu1 %435 }
 0x310   : > { %13018 = vmatpush3.msra.mxu1 %v436_v51 }
 0x311   : > { %13020 = vmatmul.mubr.msk.f32.vlgmr.msra.gmra.mrb[62].mxu1 %vm589_vm1, %v3378_v22  ;;  %13042 = vmatprep.subr.mxu1 %v16584_v54 }
 0x312   : > { %v13673_v8 = vpop.eup %13672  ;;  %13044 = vmatprep.mubr.msk.f32.mxu1 %vm13943_vm0, %v16584_v54 }
 0x313   : > { %v3371_v33 = vmul.f32 %v13673_v8, %v14805_v61  ;;  %v13675_v52 = vpop.eup %13674 }
 0x314   : > { %v3373_v10 = vmul.f32 %v13675_v52, %v14780_v24 }
 0x315   : > { %12985 = vmatmul.mubr.msk.f32.vlgmr.msra.gmra.mrb[56].mxu0 %vm589_vm1, %v3371_v33 }
 0x316   : > { %12993 = vmatpush3.msra.mxu0 %v16585_v18  ;;  %12994 = vmatprep.mubr.msk.f32.mxu0 %vm13943_vm0, %v16584_v54  ;;  %v13677_v11 = vpop.eup %13676 }
 0x317   : > { %13002 = vmatprep.subr.mxu0 %v16584_v54  ;;  %v3375_v61 = vmul.f32 %v13677_v11, %v14809_v30  ;;  %v13679_v63 = vpop.eup %13678  ;;  %v277_v30 = vld [vmem:[%s16554_s3 + $0xa0] sm:$0xff] }
 0x318   : > { %v3377_v29 = vmul.f32 %v13679_v63, %v14794_v20  ;;  %v13446_v53 = vpack.c.bf16 %v278_v59, %v277_v30  ;;  %v279_v20 = vld [vmem:[%s16554_s3 + $0xb0] sm:$0xff] }
 0x319   : > { %12995 = vmatmul.mubr.msk.f32.vlgmr.msra.gmra.mrb[58].mxu0 %vm589_vm1, %v3373_v10  ;;  %v13450_v47 = vpack.c.bf16 %v280_v6, %v279_v20 }
 0x31a   : > { %13003 = vmatpush3.msra.mxu0 %v14778_v16  ;;  %13004 = vmatprep.mubr.msk.f32.mxu0 %vm13943_vm0, %v16584_v54 }
 0x31b   : > { %13012 = vmatprep.subr.mxu0 %v16584_v54 }
 0x31d   : > { %13005 = vmatmul.mubr.msk.f32.vlgmr.msra.gmra.mrb[60].mxu0 %vm589_vm1, %v3375_v61 }
 0x31e   : > { %13013 = vmatpush3.msra.mxu0 %v412_v57  ;;  %13014 = vmatprep.mubr.msk.f32.mxu0 %vm13943_vm0, %v16584_v54  ;;  %v14993_v24 = vpop.f32.mrb[32].mxu0 }
 0x31f   : > { %v12866_v16 = vpop.f32.mrb[33].mxu0  ;;  %13447 = vmatprep.subr.bf16.mxu0 %v13446_v53 }
 0x321   : > { %13015 = vmatmul.mubr.msk.f32.vlgmr.msra.gmra.mrb[62].mxu0 %vm589_vm1, %v3377_v29 }
 0x322   : > { %13449 = vmatpush3.bf16.msra.mxu0 %v13446_v53 }
 0x323   : > { %13451 = vmatprep.subr.bf16.mxu0 %v13450_v47 }
 0x326   : > { %13453 = vmatpush3.bf16.msra.mxu0 %v13450_v47 }
 0x327   : > { %13067 = vmatprep.subr.mxu0 %v16584_v54 }
 0x37a   : > { %v3521_v17 = vpop.f32.mrb[32].mxu1 }
 0x37b   : > { %v12871_v44 = vpop.f32.mrb[33].mxu1  ;;  %5723 = vrot.lane.b32.xlu0 %v3521_v17, %s13948_s7 }
 0x37c   : > { %v15044_v44 = vld [vmem:[%s14047_s13 + $0x10] sm:$0xff] }
 0x37d   : > { %13043 = vmatpush3.xpose.msk.msra.mxu1 %vm589_vm1, %v15044_v44 }
 0x37e   : > { %v3594_v42 = vpop.f32.mrb[34].mxu0  ;;  %13047 = vmatprep.subr.mxu1 %v16584_v54 }
 0x37f   : > { %5755 = vrot.lane.b32.xlu0 %v3594_v42, %s13949_s17  ;;  %v12876_v45 = vpop.f32.mrb[35].mxu0 }
 0x382   : > { %v3667_v19 = vpop.f32.mrb[34].mxu1 }
 0x383   : > { %v15011_v43 = vpop.f32.mrb[36].mxu0  ;;  %v12881_v5 = vpop.f32.mrb[35].mxu1  ;;  %5787 = vrot.lane.b32.xlu0 %v3667_v19, %s13950_s23 }
 0x384   : > { %v12886_v31 = vpop.f32.mrb[37].mxu0 }
 0x386   : > { %v3813_v60 = vpop.f32.mrb[36].mxu1 }
 0x387   : > { %v12891_v28 = vpop.f32.mrb[37].mxu1  ;;  %5725 = vrot.lane.b32.xlu1 %v3813_v60, %s13948_s7  ;;  %v3886_v7 = vpop.f32.mrb[38].mxu0 }
 0x388   : > { %v12896_v9 = vpop.f32.mrb[39].mxu0 }
 0x38a   : > { %v3959_v15 = vpop.f32.mrb[38].mxu1 }
 0x38b   : > { %v12901_v23 = vpop.f32.mrb[39].mxu1  ;;  %5757 = vrot.lane.b32.xlu1 %v3886_v7, %s13949_s17  ;;  %v15017_v2 = vpop.f32.mrb[40].mxu0 }
 0x38c   : > { %v12906_v3 = vpop.f32.mrb[41].mxu0 }
 0x38f   : > { %v4105_v55 = vpop.f32.mrb[40].mxu1  ;;  %5789 = vrot.lane.b32.xlu1 %v3959_v15, %s13950_s23 }
 0x390   : > { %v12911_v49 = vpop.f32.mrb[41].mxu1  ;;  %5727 = vrot.lane.b32.xlu0 %v4105_v55, %s13948_s7 }
 0x393   : > { %v4251_v26 = vpop.f32.mrb[42].mxu1 }
 0x394   : > { %v4178_v62 = vpop.f32.mrb[42].mxu0  ;;  %v12921_v50 = vpop.f32.mrb[43].mxu1 }
 0x395   : > { %5759 = vrot.lane.b32.xlu0 %v4178_v62, %s13949_s17  ;;  %v12916_v34 = vpop.f32.mrb[43].mxu0 }
 0x398   : > { %v15022_v40 = vpop.f32.mrb[44].mxu0 }
 0x399   : > { %5791 = vrot.lane.b32.xlu0 %v4251_v26, %s13950_s23  ;;  %v12926_v48 = vpop.f32.mrb[45].mxu0 }
 0x39b   : > { %v4397_v35 = vpop.f32.mrb[44].mxu1 }
 0x39c   : > { %v12931_v41 = vpop.f32.mrb[45].mxu1  ;;  %5729 = vrot.lane.b32.xlu1 %v4397_v35, %s13948_s7 }
 0x39f   : > { %v4543_v27 = vpop.f32.mrb[46].mxu1 }
 0x3a0   : > { %v4470_v4 = vpop.f32.mrb[46].mxu0  ;;  %v12941_v58 = vpop.f32.mrb[47].mxu1 }
 0x3a1   : > { %5761 = vrot.lane.b32.xlu1 %v4470_v4, %s13949_s17  ;;  %v12936_v36 = vpop.f32.mrb[47].mxu0 }
 0x3a4   : > { %v15027_v1 = vpop.f32.mrb[48].mxu0 }
 0x3a5   : > { %5793 = vrot.lane.b32.xlu1 %v4543_v27, %s13950_s23  ;;  %v12946_v32 = vpop.f32.mrb[49].mxu0 }
 0x3a7   : > { %v4689_v21 = vpop.f32.mrb[48].mxu1 }
 0x3a8   : > { %v12951_v13 = vpop.f32.mrb[49].mxu1  ;;  %5731 = vrot.lane.b32.xlu0 %v4689_v21, %s13948_s7 }
 0x3ab   : > { %v4835_v39 = vpop.f32.mrb[50].mxu1 }
 0x3ac   : > { %v4762_v12 = vpop.f32.mrb[50].mxu0  ;;  %v12961_v14 = vpop.f32.mrb[51].mxu1 }
 0x3ad   : > { %5763 = vrot.lane.b32.xlu0 %v4762_v12, %s13949_s17  ;;  %v12956_v56 = vpop.f32.mrb[51].mxu0 }
 0x3b0   : > { %v15032_v38 = vpop.f32.mrb[52].mxu0 }
 0x3b1   : > { %5795 = vrot.lane.b32.xlu0 %v4835_v39, %s13950_s23  ;;  %v12966_v0 = vpop.f32.mrb[53].mxu0 }
 0x3b3   : > { %v4981_v37 = vpop.f32.mrb[52].mxu1 }
 0x3b4   : > { %v12971_v46 = vpop.f32.mrb[53].mxu1  ;;  %5733 = vrot.lane.b32.xlu1 %v4981_v37, %s13948_s7 }
 0x3b7   : > { %v5054_v25 = vpop.f32.mrb[54].mxu0 }
 0x3b8   : > { %5765 = vrot.lane.b32.xlu1 %v5054_v25, %s13949_s17  ;;  %v12976_v51 = vpop.f32.mrb[55].mxu0 }
 0x3bb   : > { %v5127_v22 = vpop.f32.mrb[54].mxu1 }
 0x3bc   : > { %v12981_v8 = vpop.f32.mrb[55].mxu1  ;;  %5797 = vrot.lane.b32.xlu1 %v5127_v22, %s13950_s23 }
 0x3bf   : > { %v5273_v33 = vpop.f32.mrb[56].mxu1 }
 0x3c0   : > { %v12991_v52 = vpop.f32.mrb[57].mxu1  ;;  %5735 = vrot.lane.b32.xlu0 %v5273_v33, %s13948_s7 }
 0x3c7   : > { %v5419_v18 = vpop.f32.mrb[58].mxu1 }
 0x3c8   : > { %v13001_v10 = vpop.f32.mrb[59].mxu1 }
 0x3cb   : > { %v5565_v11 = vpop.f32.mrb[60].mxu1 }
 0x3cc   : > { %v13011_v61 = vpop.f32.mrb[61].mxu1  ;;  %5737 = vrot.lane.b32.xlu1 %v5565_v11, %s13948_s7 }
 0x3cd   : > { %v15108_v61 = vld [vmem:[%s16555_s4] sm:$0xff] }
 0x3e4   : > { %v5711_v57 = vpop.f32.mrb[62].mxu1 }
 0x3e5   : > { %v13021_v63 = vpop.f32.mrb[63].mxu1 }
 0x3e8   : > { %v15040_v29 = vpop.f32.mrb[56].mxu0 }
 0x3e9   : > { %v12986_v16 = vpop.f32.mrb[57].mxu0 }
 0x3ec   : > { %v5346_v17 = vpop.f32.mrb[58].mxu0 }
 0x3ed   : > { %v5724_v30 = vpop.permute.xlu0 %5723  ;;  %5767 = vrot.lane.b32.xlu0 %v5346_v17, %s13949_s17  ;;  %v12996_v59 = vpop.f32.mrb[59].mxu0 }
 0x3ee   : > { %v5811_v6 = vsel %vm589_vm1, %v14993_v24, %v5724_v30  ;;  %v13862_v30 = vld [vmem:[%s14041_s10 + $0x8] sm:$0xff] }
 0x3f0   : > { %v15049_v53 = vpop.f32.mrb[60].mxu0 }
 0x3f1   : > { %v5756_v42 = vpop.permute.xlu0 %5755  ;;  %5799 = vrot.lane.b32.xlu0 %v5419_v18, %s13950_s23  ;;  %v13006_v20 = vpop.f32.mrb[61].mxu0  ;;  %v5837_v18 = vlaneseq }
 0x3f2   : > { %v5820_v47 = vsel %vm5819_vm4, %v5811_v6, %v5756_v42 }
 0x3f3   : > { %v15102_v10 = vshrl.u32 %v5837_v18, 7 }
 0x3f4   : > { %v5638_v45 = vpop.f32.mrb[62].mxu0 }
 0x3f5   : > { %v5788_v19 = vpop.permute.xlu0 %5787  ;;  %5769 = vrot.lane.b32.xlu1 %v5638_v45, %s13949_s17  ;;  %v13016_v5 = vpop.f32.mrb[63].mxu0  ;;  %501 = vrot.lane.b32.xlu0 %v15044_v44, %s13946_s16  ;;  %16586 = vst [vmem:[#allocation6_spill] sm:$0xff] %v15102_v10  ;;  %v16561_v11 = vsub.s32 0, %v15102_v10  ;;  %v15118_v45 = vld [vmem:[%s14047_s13 + $0x28] sm:$0xff] }
 0x3f6   : > { %v5829_v31 = vsel %vm5828_vm5, %v5820_v47, %v5788_v19 }
 0x3f7   : > { %13030 = vmatprep.mubr.msk.f32.mxu0 %vm5841_vm6, %v5829_v31 }
 0x3f9   : > { %v5726_v60 = vpop.permute.xlu1 %5725  ;;  %5801 = vrot.lane.b32.xlu1 %v5711_v57, %s13950_s23  ;;  %v5840_v57 = vrot.slane %v15108_v61, %v16561_v11 }
 0x3fa   : > { %v5812_v24 = vsel %vm589_vm1, %v15011_v43, %v5726_v60 }
 0x3fd   : > { %v5758_v28 = vpop.permute.xlu1 %5757  ;;  %453 = vrot.lane.b32.xlu1 %v15044_v44, %s13945_s15 }
 0x3fe   : > { %v5821_v7 = vsel %vm5819_vm4, %v5812_v24, %v5758_v28  ;;  %v13864_v24 = vld [vmem:[%s14041_s10 + $0x18] sm:$0xff] }
 0x401   : > { %v5790_v9 = vpop.permute.xlu1 %5789  ;;  %477 = vrot.lane.b32.xlu1 %v15044_v44, %s13944_s14 }
 0x402   : > { %v5830_v15 = vsel %vm5828_vm5, %v5821_v7, %v5790_v9  ;;  %v5728_v23 = vpop.permute.xlu0 %5727 }
 0x403   : > { %13031 = vmatmul.mubr.msk.f32.vlgmr.msra.gmra.mrb[64].mxu0 %vm5841_vm6, %v5830_v15  ;;  %v5813_v55 = vsel %vm589_vm1, %v15017_v2, %v5728_v23  ;;  %v13865_v15 = vld [vmem:[%s14041_s10 + $0x20] sm:$0xff] }
 0x407   : > { %v5760_v3 = vpop.permute.xlu0 %5759 }
 0x408   : > { %v5822_v49 = vsel %vm5819_vm4, %v5813_v55, %v5760_v3  ;;  %v13866_v3 = vld [vmem:[%s14041_s10 + $0x10] sm:$0xff] }
 0x40b   : > { %v5792_v26 = vpop.permute.xlu0 %5791 }
 0x40c   : > { %v5831_v43 = vsel %vm5828_vm5, %v5822_v49, %v5792_v26 }
 0x40d   : > { %13033 = vmatprep.mubr.msk.f32.mxu0 %vm5841_vm6, %v5831_v43 }
 0x40e   : > { %v5730_v62 = vpop.permute.xlu1 %5729 }
 0x40f   : > { %v5814_v34 = vsel %vm589_vm1, %v15022_v40, %v5730_v62  ;;  %v13867_v62 = vld [vmem:[%s14041_s10 + $0x28] sm:$0xff] }
 0x413   : > { %v5762_v50 = vpop.permute.xlu1 %5761 }
 0x414   : > { %v5823_v48 = vsel %vm5819_vm4, %v5814_v34, %v5762_v50 }
 0x417   : > { %v5794_v35 = vpop.permute.xlu1 %5793 }
 0x418   : > { %v5832_v41 = vsel %vm5828_vm5, %v5823_v48, %v5794_v35 }
 0x419   : > { %13034 = vmatmul.mubr.msk.f32.gmra.mrb[66].mxu0 %vm5841_vm6, %v5832_v41 }
 0x41a   : > { %v5732_v2 = vpop.permute.xlu0 %5731 }
 0x41b   : > { %v5815_v4 = vsel %vm589_vm1, %v15027_v1, %v5732_v2 }
 0x41f   : > { %v5764_v27 = vpop.permute.xlu0 %5763 }
 0x420   : > { %v5824_v58 = vsel %vm5819_vm4, %v5815_v4, %v5764_v27  ;;  %v13868_v4 = vld [vmem:[%s14041_s10 + $0x38] sm:$0xff] }
 0x423   : > { %v5796_v36 = vpop.permute.xlu0 %5795 }
 0x424   : > { %v5833_v32 = vsel %vm5828_vm5, %v5824_v58, %v5796_v36  ;;  %v13869_v36 = vld [vmem:[%s14041_s10 + $0x30] sm:$0xff] }
 0x425   : > { %13036 = vmatprep.mubr.msk.f32.mxu0 %vm5841_vm6, %v5833_v32 }
 0x426   : > { %v5734_v40 = vpop.permute.xlu1 %5733 }
 0x427   : > { %v5816_v13 = vsel %vm589_vm1, %v15032_v38, %v5734_v40 }
 0x42a   : > { %v5766_v21 = vpop.permute.xlu1 %5765 }
 0x42b   : > { %v5825_v39 = vsel %vm5819_vm4, %v5816_v13, %v5766_v21  ;;  %v15139_v13 = vld [vmem:[%s14047_s13 + $0x40] sm:$0xff] }
 0x42e   : > { %v5798_v12 = vpop.permute.xlu1 %5797 }
 0x42f   : > { %v5834_v14 = vsel %vm5828_vm5, %v5825_v39, %v5798_v12 }
 0x430   : > { %13037 = vmatmul.mubr.msk.f32.gmra.mrb[68].mxu0 %vm5841_vm6, %v5834_v14 }
 0x432   : > { %v5736_v1 = vpop.permute.xlu0 %5735 }
 0x433   : > { %v5817_v0 = vsel %vm589_vm1, %v15040_v29, %v5736_v1 }
 0x43e   : > { %v5738_v37 = vpop.permute.xlu1 %5737 }
 0x43f   : > { %v5818_v22 = vsel %vm589_vm1, %v15049_v53, %v5738_v37  ;;  %v13863_v53 = vld [vmem:[%s14041_s10] sm:$0xff] }
 0x45f   : > { %v5768_v56 = vpop.permute.xlu0 %5767 }
 0x460   : > { %v5826_v46 = vsel %vm5819_vm4, %v5817_v0, %v5768_v56 }
 0x463   : > { %v5800_v25 = vpop.permute.xlu0 %5799 }
 0x464   : > { %v5835_v51 = vsel %vm5828_vm5, %v5826_v46, %v5800_v25 }
 0x465   : > { %13039 = vmatprep.mubr.msk.f32.mxu0 %vm5841_vm6, %v5835_v51 }
 0x467   : > { %v5770_v38 = vpop.permute.xlu1 %5769  ;;  %v15147_v12 = vpop.permute.xlu0 %501 }
 0x468   : > { %v5827_v8 = vsel %vm5819_vm4, %v5818_v22, %v5770_v38 }
 0x46b   : > { %v5802_v33 = vpop.permute.xlu1 %5801 }
 0x46c   : > { %v5836_v52 = vsel %vm5828_vm5, %v5827_v8, %v5802_v33 }
 0x46d   : > { %13040 = vmatmul.mubr.msk.f32.gmra.mrb[70].mxu0 %vm5841_vm6, %v5836_v52 }
 0x46e   : > { %13069 = vmatprep.mubr.msk.f32.mxu0 %vm13943_vm0, %v16584_v54 }
 0x46f   : > { %v15145_v39 = vpop.permute.xlu1 %453 }
 0x473   : > { %v15149_v14 = vpop.permute.xlu1 %477 }
 0x4d6   : > { %v13032_v63 = vpop.f32.mrb[64].mxu0 }
 0x4d7   : > { %v5938_v29 = vadd.f32 %v13032_v63, %v5840_v57  ;;  %v5932_v16 = vpop.f32.mrb[65].mxu0 }
 0x4d8   : > { %v5933_v17 = vadd.f32 %v5932_v16, %v5840_v57 }
 0x4d9   : > { %v5972_v59 = vadd.f32 %v13862_v30, %v5938_v29 }
 0x4da   : > { %v5971_v42 = vadd.f32 %v13863_v53, %v5933_v17 }
 0x4db   : > { %v5982_v20 = vsel %vm5841_vm6, %v5972_v59, 0.0 }
 0x4dc   : > { %5983 = vadd.xlane.f32.xlu1 %v5982_v20  ;;  %v5979_v6 = vsel %vm5841_vm6, %v5971_v42, 0.0 }
 0x4dd   : > { %5980 = vadd.xlane.f32.xlu0 %v5979_v6 }
 0x4ec   : > { %v13035_v47 = vpop.f32.mrb[66].mxu0 }
 0x4ed   : > { %v5942_v19 = vpop.f32.mrb[67].mxu0  ;;  %479 = vrot.lane.b32.xlu1 %v15118_v45, %s13944_s14  ;;  %v5948_v60 = vadd.f32 %v13035_v47, %v5840_v57 }
 0x4ee   : > { %v5943_v9 = vadd.f32 %v5942_v19, %v5840_v57 }
 0x4ef   : > { %v5974_v7 = vadd.f32 %v13864_v24, %v5948_v60 }
 0x4f0   : > { %v5973_v55 = vadd.f32 %v13866_v3, %v5943_v9 }
 0x4f1   : > { %503 = vrot.lane.b32.xlu1 %v15118_v45, %s13946_s16  ;;  %v5988_v26 = vsel %vm5841_vm6, %v5974_v7, 0.0 }
 0x4f2   : > { %v5985_v34 = vsel %vm5841_vm6, %v5973_v55, 0.0 }
 0x4f3   : > { %455 = vrot.lane.b32.xlu0 %v15118_v45, %s13945_s15 }
 0x503   : > { %v13038_v5 = vpop.f32.mrb[68].mxu0 }
 0x504   : > { %v5952_v31 = vpop.f32.mrb[69].mxu0  ;;  %v5958_v49 = vadd.f32 %v13038_v5, %v5840_v57 }
 0x505   : > { %v5953_v28 = vadd.f32 %v5952_v31, %v5840_v57 }
 0x506   : > { %v5976_v50 = vadd.f32 %v13867_v62, %v5958_v49 }
 0x507   : > { %v5975_v23 = vadd.f32 %v13865_v15, %v5953_v28  ;;  %v15193_v15 = vld [vmem:[%s14047_s13 + $0x58] sm:$0xff] }
 0x508   : > { %v5994_v48 = vsel %vm5841_vm6, %v5976_v50, 0.0 }
 0x509   : > { %v5991_v43 = vsel %vm5841_vm6, %v5975_v23, 0.0 }
 0x512   : > { %5989 = vadd.xlane.f32.xlu0 %v5988_v26 }
 0x515   : > { %5992 = vadd.xlane.f32.xlu1 %v5991_v43 }
 0x516   : > { %5986 = vadd.xlane.f32.xlu0 %v5985_v34 }
 0x51a   : > { %5995 = vadd.xlane.f32.xlu0 %v5994_v48 }
 0x540   : > { %v13041_v35 = vpop.f32.mrb[70].mxu0 }
 0x541   : > { %v5968_v41 = vadd.f32 %v13041_v35, %v5840_v57  ;;  %v5962_v2 = vpop.f32.mrb[71].mxu0 }
 0x542   : > { %v5963_v27 = vadd.f32 %v5962_v2, %v5840_v57 }
 0x543   : > { %v5978_v58 = vadd.f32 %v13868_v4, %v5968_v41 }
 0x544   : > { %v5977_v32 = vadd.f32 %v13869_v36, %v5963_v27 }
 0x545   : > { %v6000_v40 = vsel %vm5841_vm6, %v5978_v58, 0.0 }
 0x546   : > { %6001 = vadd.xlane.f32.xlu0 %v6000_v40  ;;  %v5997_v21 = vsel %vm5841_vm6, %v5977_v32, 0.0  ;;  %v6086_v40 = vsub.s32 2, %v15102_v10 }
 0x547   : > { %5998 = vadd.xlane.f32.xlu1 %v5997_v21  ;;  %v6098_v21 = vsub.s32 3, %v15102_v10 }
 0x558   : > { %481 = vrot.lane.b32.xlu1 %v15139_v13, %s13944_s14 }
 0x55c   : > { %457 = vrot.lane.b32.xlu0 %v15139_v13, %s13945_s15 }
 0x569   : > { %v5984_v56 = vpop.xlane.xlu1 %5983 }
 0x56a   : > { %v5981_v1 = vpop.xlane.xlu0 %5980  ;;  %v6005_v0 = vmul.f32 0.03125, %v5984_v56 }
 0x56b   : > { %v6004_v46 = vmul.f32 0.03125, %v5981_v1  ;;  %v15216_v1 = vrot.slane %v15108_v61, %v6086_v40 }
 0x56c   : > { %v15156_v25 = vsub.f32 %v5972_v59, %v6005_v0 }
 0x56d   : > { %v15158_v51 = vsub.f32 %v5971_v42, %v6004_v46  ;;  %v15166_v52 = vpop.permute.xlu1 %479 }
 0x56e   : > { %v15151_v37 = vpop.permute.xlu0 %455  ;;  %v6021_v38 = vmul.f32 %v15156_v25, %v15156_v25 }
 0x56f   : > { %13068 = vmatpush3.xpose.msk.msra.mxu0 %vm589_vm1, %v15151_v37  ;;  %v6020_v22 = vmul.f32 %v15158_v51, %v15158_v51 }
 0x570   : > { %13077 = vmatprep.subr.mxu0 %v16584_v54  ;;  %v6031_v8 = vsel %vm5841_vm6, %v6021_v38, 0.0  ;;  %v15220_v38 = vrot.slane %v15108_v61, %v6098_v21  ;;  %v15251_v61 = vld [vmem:[%s14047_s13 + $0x70] sm:$0xff] }
 0x571   : > { %v6028_v33 = vsel %vm5841_vm6, %v6020_v22, 0.0  ;;  %v15168_v18 = vpop.permute.xlu1 %503 }
 0x57b   : > { %6032 = vadd.xlane.f32.xlu0 %v6031_v8 }
 0x57c   : > { %6029 = vadd.xlane.f32.xlu1 %v6028_v33 }
 0x59f   : > { %v5990_v57 = vpop.xlane.xlu0 %5989 }
 0x5a0   : > { %v6007_v63 = vmul.f32 0.03125, %v5990_v57 }
 0x5a2   : > { %v15170_v29 = vsub.f32 %v5974_v7, %v6007_v63  ;;  %v5993_v16 = vpop.xlane.xlu1 %5992 }
 0x5a3   : > { %v6008_v17 = vmul.f32 0.03125, %v5993_v16  ;;  %v5987_v30 = vpop.xlane.xlu0 %5986 }
 0x5a4   : > { %v6006_v59 = vmul.f32 0.03125, %v5987_v30  ;;  %v6023_v53 = vmul.f32 %v15170_v29, %v15170_v29 }
 0x5a5   : > { %v15174_v42 = vsub.f32 %v5975_v23, %v6008_v17 }
 0x5a6   : > { %v15176_v20 = vsub.f32 %v5973_v55, %v6006_v59  ;;  %v6037_v6 = vsel %vm5841_vm6, %v6023_v53, 0.0 }
 0x5a7   : > { %6038 = vadd.xlane.f32.xlu0 %v6037_v6  ;;  %v5996_v47 = vpop.xlane.xlu0 %5995  ;;  %v6024_v28 = vmul.f32 %v15174_v42, %v15174_v42 }
 0x5a8   : > { %v6009_v19 = vmul.f32 0.03125, %v5996_v47  ;;  %v6022_v5 = vmul.f32 %v15176_v20, %v15176_v20 }
 0x5a9   : > { %v6040_v7 = vsel %vm5841_vm6, %v6024_v28, 0.0 }
 0x5aa   : > { %v15181_v31 = vsub.f32 %v5976_v50, %v6009_v19  ;;  %v6034_v60 = vsel %vm5841_vm6, %v6022_v5, 0.0 }
 0x5ab   : > { %6035 = vadd.xlane.f32.xlu1 %v6034_v60 }
 0x5ac   : > { %v6025_v24 = vmul.f32 %v15181_v31, %v15181_v31 }
 0x5ae   : > { %v6043_v9 = vsel %vm5841_vm6, %v6025_v24, 0.0 }
 0x5af   : > { %6041 = vadd.xlane.f32.xlu1 %v6040_v7  ;;  %6044 = vadd.xlane.f32.xlu0 %v6043_v9 }
 0x5c0   : > { %505 = vrot.lane.b32.xlu1 %v15139_v13, %s13946_s16 }
 0x5c5   : > { %459 = vrot.lane.b32.xlu0 %v15193_v15, %s13945_s15 }
 0x5d3   : > { %v6002_v23 = vpop.xlane.xlu0 %6001 }
 0x5d4   : > { %v5999_v3 = vpop.xlane.xlu1 %5998  ;;  %v6011_v55 = vmul.f32 0.03125, %v6002_v23 }
 0x5d5   : > { %v6010_v49 = vmul.f32 0.03125, %v5999_v3 }
 0x5d6   : > { %v15197_v26 = vsub.f32 %v5978_v58, %v6011_v55 }
 0x5d7   : > { %v15199_v43 = vsub.f32 %v5977_v32, %v6010_v49  ;;  %v15209_v35 = vpop.permute.xlu0 %457 }
 0x5d8   : > { %v6027_v50 = vmul.f32 %v15197_v26, %v15197_v26  ;;  %v15211_v41 = vpop.permute.xlu1 %481 }
 0x5d9   : > { %v6026_v62 = vmul.f32 %v15199_v43, %v15199_v43 }
 0x5da   : > { %v6049_v48 = vsel %vm5841_vm6, %v6027_v50, 0.0 }
 0x5db   : > { %v6046_v34 = vsel %vm5841_vm6, %v6026_v62, 0.0 }
 0x5e4   : > { %6047 = vadd.xlane.f32.xlu1 %v6046_v34  ;;  %6050 = vadd.xlane.f32.xlu0 %v6049_v48 }
 0x5f5   : > { %483 = vrot.lane.b32.xlu1 %v15193_v15, %s13944_s14 }
 0x608   : > { %v6033_v2 = vpop.xlane.xlu0 %6032 }
 0x609   : > { %v6053_v27 = vmul.f32 0.03125, %v6033_v2  ;;  %v6030_v4 = vpop.xlane.xlu1 %6029 }
 0x60a   : > { %v6052_v58 = vmul.f32 0.03125, %v6030_v4  ;;  %v15322_v4 = vld [vmem:[%s14047_s13 + $0xb8] sm:$0xff] }
 0x60b   : > { %v6061_v36 = vadd.f32 1e-05, %v6053_v27  ;;  %v15311_v27 = vld [vmem:[%s14047_s13 + $0xa0] sm:$0xff] }
 0x60c   : > { %v6060_v32 = vadd.f32 1e-05, %v6052_v58 }
 0x60d   : > { %13680 = vrsqrt.f32 %v6061_v36 }
 0x60e   : > { %13682 = vrsqrt.f32 %v6060_v32 }
 0x617   : > { %v13681_v56 = vpop.eup %13680 }
 0x618   : > { %v13683_v0 = vpop.eup %13682  ;;  %v6077_v46 = vmul.f32 %v13681_v56, %v15156_v25  ;;  %v15258_v25 = vld [vmem:[%s14047_s13 + $0x88] sm:$0xff] }
 0x619   : > { %v6076_v22 = vmul.f32 %v13683_v0, %v15158_v51 }
 0x61a   : > { %v6089_v8 = vmul.f32 %v15216_v1, %v6077_v46 }
 0x61b   : > { %v6088_v33 = vmul.f32 %v15216_v1, %v6076_v22 }
 0x61c   : > { %v15226_v57 = vadd.f32 %v15220_v38, %v6089_v8 }
 0x61d   : > { %v15229_v63 = vadd.f32 %v15220_v38, %v6088_v33 }
 0x61e   : > { %16587 = vst [vmem:[#allocation7_spill] sm:$0xff] %v15226_v57  ;;  %6150 = vrot.lane.b32.xlu1 %v15226_v57, %s13946_s16  ;;  %6118 = vrot.lane.b32.xlu0 %v15226_v57, %s13945_s15 }
 0x61f   : > { %16588 = vst [vmem:[#allocation8_spill] sm:$0xff] %v15229_v63  ;;  %13045 = vmatmul.mubr.msk.f32.vlgmr.msra.gmra.mrb[64].mxu1 %vm589_vm1, %v15229_v63 }
 0x620   : > { %13048 = vmatpush3.xpose.msk.msra.mxu1 %vm589_vm1, %v15145_v39  ;;  %13049 = vmatprep.mubr.msk.f32.mxu1 %vm13943_vm0, %v16584_v54 }
 0x621   : > { %13052 = vmatprep.subr.mxu1 %v16584_v54 }
 0x622   : > { %6132 = vrot.lane.b32.xlu1 %v15229_v63, %s13944_s14  ;;  %6134 = vrot.lane.b32.xlu0 %v15226_v57, %s13944_s14 }
 0x626   : > { %6148 = vrot.lane.b32.xlu1 %v15229_v63, %s13946_s16  ;;  %6116 = vrot.lane.b32.xlu0 %v15229_v63, %s13945_s15 }
 0x62a   : > { %507 = vrot.lane.b32.xlu1 %v15193_v15, %s13946_s16  ;;  %461 = vrot.lane.b32.xlu0 %v15251_v61, %s13945_s15 }
 0x62e   : > { %485 = vrot.lane.b32.xlu1 %v15251_v61, %s13944_s14  ;;  %463 = vrot.lane.b32.xlu0 %v15258_v25, %s13945_s15 }
 0x632   : > { %509 = vrot.lane.b32.xlu1 %v15251_v61, %s13946_s16 }
 0x634   : > { %v6039_v51 = vpop.xlane.xlu0 %6038 }
 0x635   : > { %v6055_v16 = vmul.f32 0.03125, %v6039_v51 }
 0x637   : > { %v6063_v17 = vadd.f32 1e-05, %v6055_v16 }
 0x638   : > { %v6036_v30 = vpop.xlane.xlu1 %6035 }
 0x639   : > { %13684 = vrsqrt.f32 %v6063_v17  ;;  %v6054_v59 = vmul.f32 0.03125, %v6036_v30 }
 0x63b   : > { %v6062_v53 = vadd.f32 1e-05, %v6054_v59 }
 0x63c   : > { %v6042_v6 = vpop.xlane.xlu1 %6041  ;;  %v6045_v47 = vpop.xlane.xlu0 %6044 }
 0x63d   : > { %13686 = vrsqrt.f32 %v6062_v53  ;;  %v6057_v19 = vmul.f32 0.03125, %v6045_v47  ;;  %v6056_v5 = vmul.f32 0.03125, %v6042_v6 }
 0x63f   : > { %v6065_v60 = vadd.f32 1e-05, %v6057_v19  ;;  %v6064_v24 = vadd.f32 1e-05, %v6056_v5 }
 0x640   : > { %v15328_v58 = vpop.permute.xlu1 %505  ;;  %v15330_v36 = vpop.permute.xlu0 %459 }
 0x641   : > { %13688 = vrsqrt.f32 %v6065_v60 }
 0x642   : > { %13690 = vrsqrt.f32 %v6064_v24 }
 0x643   : > { %v13685_v28 = vpop.eup %13684 }
 0x644   : > { %v6079_v7 = vmul.f32 %v13685_v28, %v15170_v29 }
 0x646   : > { %v6091_v9 = vmul.f32 %v15216_v1, %v6079_v7 }
 0x647   : > { %v13687_v23 = vpop.eup %13686 }
 0x648   : > { %v6078_v3 = vmul.f32 %v13687_v23, %v15176_v20  ;;  %v15270_v55 = vadd.f32 %v15220_v38, %v6091_v9 }
 0x64a   : > { %16589 = vst [vmem:[#allocation9_spill] sm:$0xff] %v15270_v55  ;;  %6154 = vrot.lane.b32.xlu1 %v15270_v55, %s13946_s16  ;;  %6122 = vrot.lane.b32.xlu0 %v15270_v55, %s13945_s15  ;;  %v6090_v49 = vmul.f32 %v15216_v1, %v6078_v3 }
 0x64b   : > { %v13689_v29 = vpop.eup %13688 }
 0x64c   : > { %v15278_v62 = vadd.f32 %v15220_v38, %v6090_v49  ;;  %v6081_v20 = vmul.f32 %v13689_v29, %v15181_v31  ;;  %v13691_v50 = vpop.eup %13690 }
 0x64d   : > { %v6080_v34 = vmul.f32 %v13691_v50, %v15174_v42 }
 0x64e   : > { %16590 = vst [vmem:[#allocation10_spill] sm:$0xff] %v15278_v62  ;;  %6152 = vrot.lane.b32.xlu1 %v15278_v62, %s13946_s16  ;;  %6138 = vrot.lane.b32.xlu0 %v15270_v55, %s13944_s14  ;;  %v6093_v48 = vmul.f32 %v15216_v1, %v6081_v20 }
 0x64f   : > { %v6092_v2 = vmul.f32 %v15216_v1, %v6080_v34 }
 0x650   : > { %v15296_v31 = vadd.f32 %v15220_v38, %v6093_v48 }
 0x651   : > { %v15304_v42 = vadd.f32 %v15220_v38, %v6092_v2 }
 0x652   : > { %487 = vrot.lane.b32.xlu1 %v15258_v25, %s13944_s14  ;;  %6120 = vrot.lane.b32.xlu0 %v15278_v62, %s13945_s15  ;;  %16591 = vst [vmem:[#allocation11_spill] sm:$0xff] %v15296_v31 }
 0x653   : > { %16592 = vst [vmem:[#allocation12_spill] sm:$0xff] %v15304_v42 }
 0x656   : > { %511 = vrot.lane.b32.xlu1 %v15258_v25, %s13946_s16  ;;  %6136 = vrot.lane.b32.xlu0 %v15278_v62, %s13944_s14 }
 0x65a   : > { %6158 = vrot.lane.b32.xlu1 %v15296_v31, %s13946_s16  ;;  %6126 = vrot.lane.b32.xlu0 %v15296_v31, %s13945_s15 }
 0x65e   : > { %6156 = vrot.lane.b32.xlu1 %v15304_v42, %s13946_s16  ;;  %6142 = vrot.lane.b32.xlu0 %v15296_v31, %s13944_s14 }
 0x662   : > { %6124 = vrot.lane.b32.xlu0 %v15304_v42, %s13945_s15  ;;  %489 = vrot.lane.b32.xlu1 %v15311_v27, %s13944_s14 }
 0x666   : > { %6140 = vrot.lane.b32.xlu0 %v15304_v42, %s13944_s14  ;;  %513 = vrot.lane.b32.xlu1 %v15311_v27, %s13946_s16 }
 0x66a   : > { %465 = vrot.lane.b32.xlu0 %v15311_v27, %s13945_s15  ;;  %491 = vrot.lane.b32.xlu1 %v15322_v4, %s13944_s14 }
 0x66e   : > { %467 = vrot.lane.b32.xlu0 %v15322_v4, %s13945_s15 }
 0x671   : > { %v6048_v32 = vpop.xlane.xlu1 %6047  ;;  %v6051_v40 = vpop.xlane.xlu0 %6050 }
 0x672   : > { %v6058_v21 = vmul.f32 0.03125, %v6048_v32  ;;  %v6059_v56 = vmul.f32 0.03125, %v6051_v40 }
 0x674   : > { %v6066_v0 = vadd.f32 1e-05, %v6058_v21  ;;  %v6067_v46 = vadd.f32 1e-05, %v6059_v56 }
 0x676   : > { %13692 = vrsqrt.f32 %v6066_v0 }
 0x677   : > { %13694 = vrsqrt.f32 %v6067_v46 }
 0x680   : > { %v13693_v22 = vpop.eup %13692 }
 0x681   : > { %v6082_v8 = vmul.f32 %v13693_v22, %v15199_v43  ;;  %v13695_v33 = vpop.eup %13694 }
 0x682   : > { %v6083_v16 = vmul.f32 %v13695_v33, %v15197_v26  ;;  %v15352_v26 = vpop.permute.xlu1 %483 }
 0x683   : > { %v6094_v51 = vmul.f32 %v15216_v1, %v6082_v8 }
 0x684   : > { %v6095_v30 = vmul.f32 %v15216_v1, %v6083_v16 }
 0x685   : > { %v15338_v17 = vadd.f32 %v15220_v38, %v6094_v51 }
 0x686   : > { %v15350_v43 = vadd.f32 %v15220_v38, %v6095_v30 }
 0x687   : > { %16593 = vst [vmem:[#allocation13_spill] sm:$0xff] %v15338_v17  ;;  %6160 = vrot.lane.b32.xlu1 %v15338_v17, %s13946_s16  ;;  %6128 = vrot.lane.b32.xlu0 %v15338_v17, %s13945_s15 }
 0x688   : > { %16594 = vst [vmem:[#allocation14_spill] sm:$0xff] %v15350_v43 }
 0x68b   : > { %515 = vrot.lane.b32.xlu1 %v15322_v4, %s13946_s16  ;;  %6144 = vrot.lane.b32.xlu0 %v15338_v17, %s13944_s14 }
 0x68f   : > { %6162 = vrot.lane.b32.xlu1 %v15350_v43, %s13946_s16  ;;  %6130 = vrot.lane.b32.xlu0 %v15350_v43, %s13945_s15 }
 0x690   : > { %v6119_v59 = vpop.permute.xlu0 %6118  ;;  %v6151_v1 = vpop.permute.xlu1 %6150 }
 0x691   : > { %13070 = vmatmul.mubr.msk.f32.vlgmr.msra.gmra.mrb[72].mxu0 %vm589_vm1, %v6119_v59 }
 0x692   : > { %13078 = vmatpush3.xpose.msk.msra.mxu0 %vm589_vm1, %v15168_v18  ;;  %13079 = vmatprep.mubr.msk.f32.mxu0 %vm13943_vm0, %v16584_v54 }
 0x693   : > { %6146 = vrot.lane.b32.xlu0 %v15350_v43, %s13944_s14  ;;  %13087 = vmatprep.subr.mxu0 %v16584_v54 }
 0x694   : > { %v6135_v38 = vpop.permute.xlu0 %6134  ;;  %v6133_v6 = vpop.permute.xlu1 %6132 }
 0x695   : > { %13080 = vmatmul.mubr.msk.f32.vlgmr.msra.gmra.mrb[74].mxu0 %vm589_vm1, %v6151_v1 }
 0x696   : > { %13088 = vmatpush3.xpose.msk.msra.mxu0 %vm589_vm1, %v15209_v35  ;;  %13089 = vmatprep.mubr.msk.f32.mxu0 %vm13943_vm0, %v16584_v54 }
 0x697   : > { %13097 = vmatprep.subr.mxu0 %v16584_v54 }
 0x698   : > { %v6117_v53 = vpop.permute.xlu0 %6116  ;;  %v6149_v47 = vpop.permute.xlu1 %6148 }
 0x699   : > { %13050 = vmatmul.mubr.msk.f32.vlgmr.msra.gmra.mrb[66].mxu1 %vm589_vm1, %v6117_v53 }
 0x69a   : > { %13053 = vmatpush3.xpose.msk.msra.mxu1 %vm589_vm1, %v15149_v14  ;;  %13054 = vmatprep.mubr.msk.f32.mxu1 %vm13943_vm0, %v16584_v54 }
 0x69b   : > { %13057 = vmatprep.subr.mxu1 %v16584_v54 }
 0x69d   : > { %13055 = vmatmul.mubr.msk.f32.vlgmr.msra.gmra.mrb[68].mxu1 %vm589_vm1, %v6133_v6 }
 0x69e   : > { %13058 = vmatpush3.xpose.msk.msra.mxu1 %vm589_vm1, %v15147_v12  ;;  %13059 = vmatprep.mubr.msk.f32.mxu1 %vm13943_vm0, %v16584_v54 }
 0x69f   : > { %13062 = vmatprep.subr.mxu1 %v16584_v54 }
 0x6a1   : > { %13060 = vmatmul.mubr.msk.f32.vlgmr.msra.gmra.mrb[70].mxu1 %vm589_vm1, %v6149_v47 }
 0x6a2   : > { %13063 = vmatpush3.xpose.msk.msra.mxu1 %vm589_vm1, %v15118_v45  ;;  %13064 = vmatprep.mubr.msk.f32.mxu1 %vm13943_vm0, %v16584_v54  ;;  %v15402_v45 = vpop.permute.xlu1 %507 }
 0x6a3   : > { %13072 = vmatprep.subr.mxu1 %v16584_v54 }
 0x6a5   : > { %13065 = vmatmul.mubr.msk.f32.vlgmr.msra.gmra.mrb[72].mxu1 %vm589_vm1, %v15226_v57 }
 0x6a6   : > { %13073 = vmatpush3.xpose.msk.msra.mxu1 %vm589_vm1, %v15166_v52  ;;  %13074 = vmatprep.mubr.msk.f32.mxu1 %vm13943_vm0, %v16584_v54  ;;  %v15412_v19 = vpop.permute.xlu1 %485 }
 0x6a7   : > { %13082 = vmatprep.subr.mxu1 %v16584_v54 }
 0x6a9   : > { %13075 = vmatmul.mubr.msk.f32.vlgmr.msra.gmra.mrb[74].mxu1 %vm589_vm1, %v6135_v38 }
 0x6aa   : > { %13083 = vmatpush3.xpose.msk.msra.mxu1 %vm589_vm1, %v15139_v13  ;;  %13084 = vmatprep.mubr.msk.f32.mxu1 %vm13943_vm0, %v16584_v54  ;;  %v15414_v13 = vpop.permute.xlu0 %461  ;;  %v15416_v5 = vpop.permute.xlu1 %509 }
 0x6ab   : > { %13092 = vmatprep.subr.mxu1 %v16584_v54 }
 0x6ad   : > { %13085 = vmatmul.mubr.msk.f32.vlgmr.msra.gmra.mrb[76].mxu1 %vm589_vm1, %v15278_v62 }
 0x6ae   : > { %13093 = vmatpush3.xpose.msk.msra.mxu1 %vm589_vm1, %v15211_v41  ;;  %13094 = vmatprep.mubr.msk.f32.mxu1 %vm13943_vm0, %v16584_v54  ;;  %v15418_v60 = vpop.permute.xlu0 %463 }
 0x6af   : > { %13102 = vmatprep.subr.mxu1 %v16584_v54 }
 0x6bc   : > { %v6155_v28 = vpop.permute.xlu1 %6154  ;;  %v6123_v24 = vpop.permute.xlu0 %6122 }
 0x6c0   : > { %v6153_v7 = vpop.permute.xlu1 %6152  ;;  %v6139_v9 = vpop.permute.xlu0 %6138 }
 0x6c4   : > { %v6121_v23 = vpop.permute.xlu0 %6120  ;;  %v15421_v3 = vpop.permute.xlu1 %487 }
 0x6c5   : > { %13090 = vmatmul.mubr.msk.f32.vlgmr.msra.gmra.mrb[76].mxu0 %vm589_vm1, %v6121_v23 }
 0x6c6   : > { %13098 = vmatpush3.xpose.msk.msra.mxu0 %vm589_vm1, %v15328_v58  ;;  %13099 = vmatprep.mubr.msk.f32.mxu0 %vm13943_vm0, %v16584_v54 }
 0x6c7   : > { %13107 = vmatprep.subr.mxu0 %v16584_v54 }
 0x6c8   : > { %v6137_v49 = vpop.permute.xlu0 %6136  ;;  %v15438_v29 = vpop.permute.xlu1 %511 }
 0x6c9   : > { %13095 = vmatmul.mubr.msk.f32.vlgmr.msra.gmra.mrb[78].mxu1 %vm589_vm1, %v6137_v49  ;;  %13100 = vmatmul.mubr.msk.f32.vlgmr.msra.gmra.mrb[78].mxu0 %vm589_vm1, %v6153_v7 }
 0x6ca   : > { %13103 = vmatpush3.xpose.msk.msra.mxu1 %vm589_vm1, %v15193_v15  ;;  %13108 = vmatpush3.xpose.msk.msra.mxu0 %vm589_vm1, %v15330_v36 }
 0x6cb   : > { %13104 = vmatprep.mubr.msk.f32.mxu1 %vm13943_vm0, %v16584_v54  ;;  %13109 = vmatprep.mubr.msk.f32.mxu0 %vm13943_vm0, %v16584_v54 }
 0x6cc   : > { %13112 = vmatprep.subr.mxu1 %v16584_v54  ;;  %13117 = vmatprep.subr.mxu0 %v16584_v54  ;;  %v6127_v20 = vpop.permute.xlu0 %6126  ;;  %v6159_v50 = vpop.permute.xlu1 %6158 }
 0x6cd   : > { %13105 = vmatmul.mubr.msk.f32.vlgmr.msra.gmra.mrb[80].mxu1 %vm589_vm1, %v15270_v55  ;;  %13110 = vmatmul.mubr.msk.f32.vlgmr.msra.gmra.mrb[80].mxu0 %vm589_vm1, %v6123_v24 }
 0x6ce   : > { %13113 = vmatpush3.xpose.msk.msra.mxu1 %vm589_vm1, %v15352_v26  ;;  %13118 = vmatpush3.xpose.msk.msra.mxu0 %vm589_vm1, %v15402_v45 }
 0x6cf   : > { %13114 = vmatprep.mubr.msk.f32.mxu1 %vm13943_vm0, %v16584_v54  ;;  %13119 = vmatprep.mubr.msk.f32.mxu0 %vm13943_vm0, %v16584_v54 }
 0x6d0   : > { %13122 = vmatprep.subr.mxu1 %v16584_v54  ;;  %13127 = vmatprep.subr.mxu0 %v16584_v54  ;;  %v6143_v15 = vpop.permute.xlu0 %6142 }
 0x6d1   : > { %13115 = vmatmul.mubr.msk.f32.vlgmr.msra.gmra.mrb[82].mxu1 %vm589_vm1, %v6139_v9  ;;  %13120 = vmatmul.mubr.msk.f32.vlgmr.msra.gmra.mrb[82].mxu0 %vm589_vm1, %v6155_v28 }
 0x6d2   : > { %13123 = vmatpush3.xpose.msk.msra.mxu1 %vm589_vm1, %v15251_v61  ;;  %13128 = vmatpush3.xpose.msk.msra.mxu0 %vm589_vm1, %v15414_v13  ;;  %v6157_v61 = vpop.permute.xlu1 %6156 }
 0x6d3   : > { %13124 = vmatprep.mubr.msk.f32.mxu1 %vm13943_vm0, %v16584_v54  ;;  %13129 = vmatprep.mubr.msk.f32.mxu0 %vm13943_vm0, %v16584_v54 }
 0x6d4   : > { %13132 = vmatprep.subr.mxu1 %v16584_v54  ;;  %13137 = vmatprep.subr.mxu0 %v16584_v54  ;;  %v6125_v34 = vpop.permute.xlu0 %6124 }
 0x6d5   : > { %13125 = vmatmul.mubr.msk.f32.vlgmr.msra.gmra.mrb[84].mxu1 %vm589_vm1, %v15304_v42  ;;  %13130 = vmatmul.mubr.msk.f32.vlgmr.msra.gmra.mrb[84].mxu0 %vm589_vm1, %v6125_v34 }
 0x6d6   : > { %13133 = vmatpush3.xpose.msk.msra.mxu1 %vm589_vm1, %v15412_v19  ;;  %13138 = vmatpush3.xpose.msk.msra.mxu0 %vm589_vm1, %v15416_v5  ;;  %v15521_v2 = vpop.permute.xlu1 %489 }
 0x6d7   : > { %13134 = vmatprep.mubr.msk.f32.mxu1 %vm13943_vm0, %v16584_v54  ;;  %13139 = vmatprep.mubr.msk.f32.mxu0 %vm13943_vm0, %v16584_v54  ;;  %16596 = vst [vmem:[#allocation16_spill] sm:$0xff] %v15521_v2 }
 0x6d8   : > { %13147 = vmatprep.subr.mxu0 %v16584_v54  ;;  %v6141_v48 = vpop.permute.xlu0 %6140  ;;  %13142 = vmatprep.subr.mxu1 %v16584_v54 }
 0x6d9   : > { %13135 = vmatmul.mubr.msk.f32.vlgmr.msra.gmra.mrb[86].mxu1 %vm589_vm1, %v6141_v48  ;;  %13140 = vmatmul.mubr.msk.f32.vlgmr.msra.gmra.mrb[86].mxu0 %vm589_vm1, %v6157_v61 }
 0x6da   : > { %13148 = vmatpush3.xpose.msk.msra.mxu0 %vm589_vm1, %v15418_v60  ;;  %13143 = vmatpush3.xpose.msk.msra.mxu1 %vm589_vm1, %v15258_v25 }
 0x6db   : > { %13144 = vmatprep.mubr.msk.f32.mxu1 %vm13943_vm0, %v16584_v54  ;;  %13149 = vmatprep.mubr.msk.f32.mxu0 %vm13943_vm0, %v16584_v54 }
 0x6dc   : > { %13152 = vmatprep.subr.mxu1 %v16584_v54  ;;  %13157 = vmatprep.subr.mxu0 %v16584_v54  ;;  %v15504_v25 = vpop.permute.xlu0 %465 }
 0x6dd   : > { %13145 = vmatmul.mubr.msk.f32.vlgmr.msra.gmra.mrb[88].mxu1 %vm589_vm1, %v15296_v31  ;;  %13150 = vmatmul.mubr.msk.f32.vlgmr.msra.gmra.mrb[88].mxu0 %vm589_vm1, %v6127_v20  ;;  %16595 = vst [vmem:[#allocation15_spill] sm:$0xff] %v15504_v25 }
 0x6de   : > { %13153 = vmatpush3.xpose.msk.msra.mxu1 %vm589_vm1, %v15421_v3  ;;  %13158 = vmatpush3.xpose.msk.msra.mxu0 %vm589_vm1, %v15438_v29 }
 0x6df   : > { %13154 = vmatprep.mubr.msk.f32.mxu1 %vm13943_vm0, %v16584_v54  ;;  %13159 = vmatprep.mubr.msk.f32.mxu0 %vm13943_vm0, %v16584_v54 }
 0x6e0   : > { %13162 = vmatprep.subr.mxu1 %v16584_v54  ;;  %13167 = vmatprep.subr.mxu0 %v16584_v54  ;;  %v15534_v46 = vpop.permute.xlu0 %467 }
 0x6e1   : > { %13155 = vmatmul.mubr.msk.f32.vlgmr.msra.gmra.mrb[90].mxu1 %vm589_vm1, %v6143_v15  ;;  %13160 = vmatmul.mubr.msk.f32.vlgmr.msra.gmra.mrb[90].mxu0 %vm589_vm1, %v6159_v50  ;;  %16600 = vst [vmem:[#allocation5_spill] sm:$0xff] %v15534_v46 }
 0x6e2   : > { %13163 = vmatpush3.xpose.msk.msra.mxu1 %vm589_vm1, %v15311_v27  ;;  %13164 = vmatprep.mubr.msk.f32.mxu1 %vm13943_vm0, %v16584_v54  ;;  %v15528_v27 = vpop.permute.xlu1 %513 }
 0x6e3   : > { %13172 = vmatprep.subr.mxu1 %v16584_v54  ;;  %13168 = vmatpush3.xpose.msk.msra.mxu0 %vm589_vm1, %v15504_v25  ;;  %16597 = vst [vmem:[#allocation17_spill] sm:$0xff] %v15528_v27 }
 0x6e4   : > { %13169 = vmatprep.mubr.msk.f32.mxu0 %vm13943_vm0, %v16584_v54  ;;  %13177 = vmatprep.subr.mxu0 %v16584_v54 }
 0x6e5   : > { %13165 = vmatmul.mubr.msk.f32.vlgmr.msra.gmra.mrb[92].mxu1 %vm589_vm1, %v15338_v17 }
 0x6e6   : > { %13173 = vmatpush3.xpose.msk.msra.mxu1 %vm589_vm1, %v15521_v2  ;;  %13174 = vmatprep.mubr.msk.f32.mxu1 %vm13943_vm0, %v16584_v54  ;;  %v15530_v40 = vpop.permute.xlu1 %491 }
 0x6e7   : > { %13182 = vmatprep.subr.mxu1 %v16584_v54  ;;  %16598 = vst [vmem:[#allocation18_spill] sm:$0xff] %v15530_v40 }
 0x6f2   : > { %v6234_v32 = vpop.f32.mrb[64].mxu1 }
 0x6f3   : > { %v8532_v56 = vsel %vm14400_vm3, %v6234_v32, -1e+20  ;;  %v13046_v0 = vpop.f32.mrb[65].mxu1 }
 0x6f4   : > { %v15536_v22 = vmul.f32 0.35355338, %v8532_v56 }
 0x6f6   : > { %v8596_v8 = vsel %vm589_vm1, %v15536_v22, -inf }
 0x6f7   : > { %8597 = vmax.xlane.f32.xlu0 %v8596_v8 }
 0x6f9   : > { %v6161_v33 = vpop.permute.xlu1 %6160  ;;  %v6129_v51 = vpop.permute.xlu0 %6128 }
 0x6fa   : > { %13170 = vmatmul.mubr.msk.f32.vlgmr.msra.gmra.mrb[92].mxu0 %vm589_vm1, %v6129_v51 }
 0x6fb   : > { %13178 = vmatpush3.xpose.msk.msra.mxu0 %vm589_vm1, %v15528_v27  ;;  %13179 = vmatprep.mubr.msk.f32.mxu0 %vm13943_vm0, %v16584_v54 }
 0x6fc   : > { %13187 = vmatprep.subr.mxu0 %v16584_v54 }
 0x6fd   : > { %v6145_v16 = vpop.permute.xlu0 %6144  ;;  %v15548_v30 = vpop.permute.xlu1 %515 }
 0x6fe   : > { %13175 = vmatmul.mubr.msk.f32.vlgmr.msra.gmra.mrb[94].mxu1 %vm589_vm1, %v6145_v16  ;;  %13180 = vmatmul.mubr.msk.f32.vlgmr.msra.gmra.mrb[94].mxu0 %vm589_vm1, %v6161_v33  ;;  %16601 = vst [vmem:[#allocation19_spill] sm:$0xff] %v15548_v30 }
 0x6ff   : > { %13183 = vmatpush3.xpose.msk.msra.mxu1 %vm589_vm1, %v15322_v4  ;;  %13188 = vmatpush3.xpose.msk.msra.mxu0 %vm589_vm1, %v15534_v46 }
 0x700   : > { %13184 = vmatprep.mubr.msk.f32.mxu1 %vm13943_vm0, %v16584_v54  ;;  %13189 = vmatprep.mubr.msk.f32.mxu0 %vm13943_vm0, %v16584_v54 }
 0x701   : > { %13192 = vmatprep.subr.mxu1 %v16584_v54  ;;  %13197 = vmatprep.subr.mxu0 %v16584_v54  ;;  %v6131_v59 = vpop.permute.xlu0 %6130  ;;  %v6163_v4 = vpop.permute.xlu1 %6162 }
 0x702   : > { %13185 = vmatmul.mubr.msk.f32.vlgmr.msra.gmra.mrb[96].mxu1 %vm589_vm1, %v15350_v43  ;;  %13190 = vmatmul.mubr.msk.f32.vlgmr.msra.gmra.mrb[96].mxu0 %vm589_vm1, %v6131_v59 }
 0x703   : > { %13193 = vmatpush3.xpose.msk.msra.mxu1 %vm589_vm1, %v15530_v40  ;;  %13198 = vmatpush3.xpose.msk.msra.mxu0 %vm589_vm1, %v15548_v30 }
 0x704   : > { %13194 = vmatprep.mubr.msk.f32.mxu1 %vm13943_vm0, %v16584_v54  ;;  %13199 = vmatprep.mubr.msk.f32.mxu0 %vm13943_vm0, %v16584_v54 }
 0x705   : > { %13207 = vmatprep.subr.mxu0 %v16584_v54  ;;  %v6147_v1 = vpop.permute.xlu0 %6146  ;;  %13202 = vmatprep.subr.mxu1 %v16584_v54 }
 0x706   : > { %13195 = vmatmul.mubr.msk.f32.vlgmr.msra.gmra.mrb[98].mxu1 %vm589_vm1, %v6147_v1  ;;  %13200 = vmatmul.mubr.msk.f32.vlgmr.msra.gmra.mrb[98].mxu0 %vm589_vm1, %v6163_v4 }
 0x707   : > { %13208 = vmatpush3.msra.mxu0 %v15145_v39  ;;  %13203 = vmatpush3.msra.mxu1 %v15044_v44 }
 0x708   : > { %13204 = vmatprep.mubr.msk.f32.mxu1 %vm13943_vm0, %v16584_v54  ;;  %13212 = vmatprep.subr.mxu1 %v16584_v54 }
 0x709   : > { %13209 = vmatprep.mubr.msk.f32.mxu0 %vm13943_vm0, %v16584_v54  ;;  %13217 = vmatprep.subr.mxu0 %v16584_v54 }
 0x764   : > { %v6604_v38 = vpop.f32.mrb[72].mxu0 }
 0x765   : > { %v13071_v53 = vpop.f32.mrb[73].mxu0  ;;  %v8537_v34 = vsel %vm14400_vm3, %v6604_v38, -1e+20 }
 0x766   : > { %v15601_v56 = vmul.f32 0.35355338, %v8537_v34 }
 0x768   : > { %v6752_v6 = vpop.f32.mrb[74].mxu0  ;;  %v8611_v38 = vsel %vm589_vm1, %v15601_v56, -inf }
 0x769   : > { %v13081_v47 = vpop.f32.mrb[75].mxu0  ;;  %v8539_v33 = vsel %vm14400_vm3, %v6752_v6, -1e+20 }
 0x76a   : > { %v15611_v4 = vmul.f32 0.35355338, %v8539_v33 }
 0x76c   : > { %v6308_v28 = vpop.f32.mrb[66].mxu1 }
 0x76d   : > { %v8533_v39 = vsel %vm14400_vm3, %v6308_v28, -1e+20  ;;  %v13051_v24 = vpop.f32.mrb[67].mxu1 }
 0x76e   : > { %v15585_v44 = vmul.f32 0.35355338, %v8533_v39  ;;  %v8617_v24 = vsel %vm589_vm1, %v15611_v4, -inf }
 0x770   : > { %v6382_v7 = vpop.f32.mrb[68].mxu1  ;;  %v8599_v9 = vsel %vm589_vm1, %v15585_v44, -inf }
 0x771   : > { %v8534_v23 = vsel %vm14400_vm3, %v6382_v7, -1e+20  ;;  %8600 = vmax.xlane.f32.xlu1 %v8599_v9  ;;  %v13056_v49 = vpop.f32.mrb[69].mxu1 }
 0x772   : > { %v15591_v20 = vmul.f32 0.35355338, %v8534_v23 }
 0x774   : > { %v6456_v15 = vpop.f32.mrb[70].mxu1  ;;  %v8602_v50 = vsel %vm589_vm1, %v15591_v20, -inf }
 0x775   : > { %v8535_v61 = vsel %vm14400_vm3, %v6456_v15, -1e+20  ;;  %8603 = vmax.xlane.f32.xlu0 %v8602_v50  ;;  %v13061_v48 = vpop.f32.mrb[71].mxu1 }
 0x776   : > { %v15599_v32 = vmul.f32 0.35355338, %v8535_v61 }
 0x778   : > { %v6530_v0 = vpop.f32.mrb[72].mxu1  ;;  %v8605_v8 = vsel %vm589_vm1, %v15599_v32, -inf }
 0x779   : > { %v8536_v51 = vsel %vm14400_vm3, %v6530_v0, -1e+20  ;;  %8606 = vmax.xlane.f32.xlu0 %v8605_v8  ;;  %v13066_v16 = vpop.f32.mrb[73].mxu1 }
 0x77a   : > { %v15609_v59 = vmul.f32 0.35355338, %v8536_v51 }
 0x77c   : > { %v6678_v1 = vpop.f32.mrb[74].mxu1  ;;  %v8608_v53 = vsel %vm589_vm1, %v15609_v59, -inf }
 0x77d   : > { %v8538_v47 = vsel %vm14400_vm3, %v6678_v1, -1e+20  ;;  %8612 = vmax.xlane.f32.xlu0 %v8611_v38  ;;  %8609 = vmax.xlane.f32.xlu1 %v8608_v53  ;;  %v13076_v6 = vpop.f32.mrb[75].mxu1 }
 0x77e   : > { %v15619_v28 = vmul.f32 0.35355338, %v8538_v47 }
 0x780   : > { %v6826_v39 = vpop.f32.mrb[76].mxu1  ;;  %v8614_v7 = vsel %vm589_vm1, %v15619_v28, -inf }
 0x781   : > { %v8540_v9 = vsel %vm14400_vm3, %v6826_v39, -1e+20  ;;  %8618 = vmax.xlane.f32.xlu0 %v8617_v24  ;;  %8615 = vmax.xlane.f32.xlu1 %v8614_v7  ;;  %v13086_v23 = vpop.f32.mrb[77].mxu1 }
 0x782   : > { %v15627_v49 = vmul.f32 0.35355338, %v8540_v9 }
 0x784   : > { %v8620_v15 = vsel %vm589_vm1, %v15627_v49, -inf }
 0x785   : > { %8621 = vmax.xlane.f32.xlu1 %v8620_v15 }
 0x798   : > { %v6900_v50 = vpop.f32.mrb[76].mxu0 }
 0x799   : > { %v8541_v34 = vsel %vm14400_vm3, %v6900_v50, -1e+20  ;;  %v13091_v61 = vpop.f32.mrb[77].mxu0 }
 0x79a   : > { %v15633_v48 = vmul.f32 0.35355338, %v8541_v34 }
 0x79c   : > { %v6974_v0 = vpop.f32.mrb[78].mxu1  ;;  %v7048_v8 = vpop.f32.mrb[78].mxu0  ;;  %v8623_v33 = vsel %vm589_vm1, %v15633_v48, -inf }
 0x79d   : > { %v8542_v51 = vsel %vm14400_vm3, %v6974_v0, -1e+20  ;;  %v8543_v16 = vsel %vm14400_vm3, %v7048_v8, -1e+20  ;;  %8624 = vmax.xlane.f32.xlu0 %v8623_v33  ;;  %v13096_v1 = vpop.f32.mrb[79].mxu1  ;;  %v13101_v38 = vpop.f32.mrb[79].mxu0 }
 0x79e   : > { %v15641_v53 = vmul.f32 0.35355338, %v8542_v51  ;;  %v15643_v47 = vmul.f32 0.35355338, %v8543_v16 }
 0x7a0   : > { %v7122_v6 = vpop.f32.mrb[80].mxu1  ;;  %v7196_v39 = vpop.f32.mrb[80].mxu0  ;;  %v8629_v24 = vsel %vm589_vm1, %v15643_v47, -inf  ;;  %v8626_v7 = vsel %vm589_vm1, %v15641_v53, -inf }
 0x7a1   : > { %v8544_v9 = vsel %vm14400_vm3, %v7122_v6, -1e+20  ;;  %v8545_v23 = vsel %vm14400_vm3, %v7196_v39, -1e+20  ;;  %8630 = vmax.xlane.f32.xlu0 %v8629_v24  ;;  %v13111_v15 = vpop.f32.mrb[81].mxu0  ;;  %8627 = vmax.xlane.f32.xlu1 %v8626_v7  ;;  %v13106_v50 = vpop.f32.mrb[81].mxu1 }
 0x7a2   : > { %v15653_v34 = vmul.f32 0.35355338, %v8544_v9  ;;  %v15655_v61 = vmul.f32 0.35355338, %v8545_v23 }
 0x7a4   : > { %v7270_v0 = vpop.f32.mrb[82].mxu1  ;;  %v7344_v8 = vpop.f32.mrb[82].mxu0  ;;  %v8635_v33 = vsel %vm589_vm1, %v15655_v61, -inf  ;;  %v8632_v51 = vsel %vm589_vm1, %v15653_v34, -inf }
 0x7a5   : > { %v8546_v16 = vsel %vm14400_vm3, %v7270_v0, -1e+20  ;;  %v8547_v1 = vsel %vm14400_vm3, %v7344_v8, -1e+20  ;;  %8636 = vmax.xlane.f32.xlu0 %v8635_v33  ;;  %v13121_v38 = vpop.f32.mrb[83].mxu0  ;;  %8633 = vmax.xlane.f32.xlu1 %v8632_v51  ;;  %v13116_v6 = vpop.f32.mrb[83].mxu1 }
 0x7a6   : > { %v15665_v39 = vmul.f32 0.35355338, %v8546_v16  ;;  %v15667_v24 = vmul.f32 0.35355338, %v8547_v1 }
 0x7a8   : > { %v7418_v7 = vpop.f32.mrb[84].mxu1  ;;  %v7492_v9 = vpop.f32.mrb[84].mxu0  ;;  %v8641_v23 = vsel %vm589_vm1, %v15667_v24, -inf  ;;  %v8638_v15 = vsel %vm589_vm1, %v15665_v39, -inf }
 0x7a9   : > { %v8548_v50 = vsel %vm14400_vm3, %v7418_v7, -1e+20  ;;  %v8549_v0 = vsel %vm14400_vm3, %v7492_v9, -1e+20  ;;  %8642 = vmax.xlane.f32.xlu0 %v8641_v23  ;;  %8639 = vmax.xlane.f32.xlu1 %v8638_v15  ;;  %v13126_v8 = vpop.f32.mrb[85].mxu1  ;;  %v13131_v33 = vpop.f32.mrb[85].mxu0 }
 0x7aa   : > { %v15677_v51 = vmul.f32 0.35355338, %v8548_v50  ;;  %v15679_v16 = vmul.f32 0.35355338, %v8549_v0 }
 0x7ac   : > { %v7566_v1 = vpop.f32.mrb[86].mxu1  ;;  %v7640_v38 = vpop.f32.mrb[86].mxu0  ;;  %v8644_v6 = vsel %vm589_vm1, %v15677_v51, -inf  ;;  %v8647_v11 = vsel %vm589_vm1, %v15679_v16, -inf }
 0x7ad   : > { %v8550_v7 = vsel %vm14400_vm3, %v7566_v1, -1e+20  ;;  %v8551_v9 = vsel %vm14400_vm3, %v7640_v38, -1e+20  ;;  %8645 = vmax.xlane.f32.xlu1 %v8644_v6  ;;  %8648 = vmax.xlane.f32.xlu0 %v8647_v11  ;;  %v13136_v23 = vpop.f32.mrb[87].mxu1  ;;  %v13141_v15 = vpop.f32.mrb[87].mxu0 }
 0x7ae   : > { %v15689_v50 = vmul.f32 0.35355338, %v8550_v7  ;;  %v15691_v0 = vmul.f32 0.35355338, %v8551_v9 }
 0x7b0   : > { %v7714_v8 = vpop.f32.mrb[88].mxu1  ;;  %v7788_v33 = vpop.f32.mrb[88].mxu0  ;;  %v8653_v17 = vsel %vm589_vm1, %v15691_v0, -inf  ;;  %v8650_v43 = vsel %vm589_vm1, %v15689_v50, -inf }
 0x7b1   : > { %v8552_v1 = vsel %vm14400_vm3, %v7714_v8, -1e+20  ;;  %v8553_v11 = vsel %vm14400_vm3, %v7788_v33, -1e+20  ;;  %8654 = vmax.xlane.f32.xlu0 %v8653_v17  ;;  %v13151_v38 = vpop.f32.mrb[89].mxu0  ;;  %8651 = vmax.xlane.f32.xlu1 %v8650_v43  ;;  %v13146_v6 = vpop.f32.mrb[89].mxu1 }
 0x7b2   : > { %v15701_v7 = vmul.f32 0.35355338, %v8552_v1  ;;  %v15703_v9 = vmul.f32 0.35355338, %v8553_v11 }
 0x7b4   : > { %v7862_v23 = vpop.f32.mrb[90].mxu1  ;;  %v7936_v15 = vpop.f32.mrb[90].mxu0  ;;  %v8659_v42 = vsel %vm589_vm1, %v15703_v9, -inf  ;;  %v8656_v31 = vsel %vm589_vm1, %v15701_v7, -inf }
 0x7b5   : > { %v8554_v8 = vsel %vm14400_vm3, %v7862_v23, -1e+20  ;;  %v8555_v17 = vsel %vm14400_vm3, %v7936_v15, -1e+20  ;;  %8660 = vmax.xlane.f32.xlu0 %v8659_v42  ;;  %v13161_v43 = vpop.f32.mrb[91].mxu0  ;;  %8657 = vmax.xlane.f32.xlu1 %v8656_v31  ;;  %v13156_v33 = vpop.f32.mrb[91].mxu1 }
 0x7b6   : > { %v15713_v1 = vmul.f32 0.35355338, %v8554_v8  ;;  %v15715_v11 = vmul.f32 0.35355338, %v8555_v17  ;;  %v8598_v8 = vpop.xlane.xlu0 %8597 }
 0x7b7   : > { %v8692_v17 = vsub.f32 %v15536_v22, %v8598_v8 }
 0x7b8   : > { %v8010_v38 = vpop.f32.mrb[92].mxu1  ;;  %v8665_v6 = vsel %vm589_vm1, %v15715_v11, -inf  ;;  %v8662_v55 = vsel %vm589_vm1, %v15713_v1, -inf }
 0x7b9   : > { %v8556_v23 = vsel %vm14400_vm3, %v8010_v38, -1e+20  ;;  %8666 = vmax.xlane.f32.xlu0 %v8665_v6  ;;  %8663 = vmax.xlane.f32.xlu1 %v8662_v55  ;;  %v13166_v42 = vpop.f32.mrb[93].mxu1  ;;  %v8724_v38 = vmul.f32 1.442695, %v8692_v17 }
 0x7ba   : > { %v15723_v15 = vmul.f32 0.35355338, %v8556_v23 }
 0x7bb   : > { %13696 = vpow2.f32 %v8724_v38 }
 0x7bc   : > { %v8668_v31 = vsel %vm589_vm1, %v15723_v15, -inf }
 0x7bd   : > { %8669 = vmax.xlane.f32.xlu1 %v8668_v31 }
 0x7c5   : > { %v15770_v46 = vpop.eup %13696 }
 0x7c6   : > { %v8788_v21 = vsel %vm589_vm1, %v15770_v46, 0.0 }
 0x7cd   : > { %v8084_v43 = vpop.f32.mrb[92].mxu0 }
 0x7ce   : > { %v8557_v33 = vsel %vm14400_vm3, %v8084_v43, -1e+20  ;;  %v13171_v62 = vpop.f32.mrb[93].mxu0 }
 0x7cf   : > { %v15730_v63 = vmul.f32 0.35355338, %v8557_v33 }
 0x7d1   : > { %v8158_v6 = vpop.f32.mrb[94].mxu1  ;;  %v8232_v55 = vpop.f32.mrb[94].mxu0  ;;  %v8671_v23 = vsel %vm589_vm1, %v15730_v63, -inf }
 0x7d2   : > { %v8558_v42 = vsel %vm14400_vm3, %v8158_v6, -1e+20  ;;  %v8559_v31 = vsel %vm14400_vm3, %v8232_v55, -1e+20  ;;  %8672 = vmax.xlane.f32.xlu0 %v8671_v23  ;;  %v13176_v22 = vpop.f32.mrb[95].mxu1  ;;  %v13181_v8 = vpop.f32.mrb[95].mxu0 }
 0x7d3   : > { %v15738_v57 = vmul.f32 0.35355338, %v8558_v42  ;;  %v15740_v62 = vmul.f32 0.35355338, %v8559_v31 }
 0x7d5   : > { %v8306_v17 = vpop.f32.mrb[96].mxu1  ;;  %v8380_v43 = vpop.f32.mrb[96].mxu0  ;;  %v8677_v33 = vsel %vm589_vm1, %v15740_v62, -inf  ;;  %v8674_v10 = vsel %vm589_vm1, %v15738_v57, -inf }
 0x7d6   : > { %v8560_v6 = vsel %vm14400_vm3, %v8306_v17, -1e+20  ;;  %v8561_v55 = vsel %vm14400_vm3, %v8380_v43, -1e+20  ;;  %8678 = vmax.xlane.f32.xlu0 %v8677_v33  ;;  %8675 = vmax.xlane.f32.xlu1 %v8674_v10  ;;  %v13186_v23 = vpop.f32.mrb[97].mxu1  ;;  %v13191_v42 = vpop.f32.mrb[97].mxu0 }
 0x7d7   : > { %v15750_v31 = vmul.f32 0.35355338, %v8560_v6  ;;  %v15752_v38 = vmul.f32 0.35355338, %v8561_v55 }
 0x7d9   : > { %v8454_v22 = vpop.f32.mrb[98].mxu1  ;;  %v8528_v8 = vpop.f32.mrb[98].mxu0  ;;  %v8680_v30 = vsel %vm589_vm1, %v15750_v31, -inf  ;;  %v8683_v40 = vsel %vm589_vm1, %v15752_v38, -inf }
 0x7da   : > { %v8562_v17 = vsel %vm14400_vm3, %v8454_v22, -1e+20  ;;  %v8563_v10 = vsel %vm14400_vm3, %v8528_v8, -1e+20  ;;  %8681 = vmax.xlane.f32.xlu1 %v8680_v30  ;;  %8684 = vmax.xlane.f32.xlu0 %v8683_v40  ;;  %v13196_v43 = vpop.f32.mrb[99].mxu1  ;;  %v13201_v33 = vpop.f32.mrb[99].mxu0 }
 0x7db   : > { %v15762_v6 = vmul.f32 0.35355338, %v8562_v17  ;;  %v15764_v55 = vmul.f32 0.35355338, %v8563_v10 }
 0x7dd   : > { %v8689_v23 = vsel %vm589_vm1, %v15764_v55, -inf  ;;  %v8686_v42 = vsel %vm589_vm1, %v15762_v6, -inf }
 0x7de   : > { %8690 = vmax.xlane.f32.xlu0 %v8689_v23  ;;  %8687 = vmax.xlane.f32.xlu1 %v8686_v42 }
 0x7e2   : > { %8789 = vadd.xlane.f32.xlu1 %v8788_v21 }
 0x7fe   : > { %v8601_v40 = vpop.xlane.xlu1 %8600 }
 0x7ff   : > { %v8693_v30 = vsub.f32 %v15585_v44, %v8601_v40 }
 0x801   : > { %v8726_v22 = vmul.f32 1.442695, %v8693_v30 }
 0x802   : > { %v8604_v8 = vpop.xlane.xlu0 %8603 }
 0x803   : > { %13698 = vpow2.f32 %v8726_v22  ;;  %v8694_v17 = vsub.f32 %v15591_v20, %v8604_v8 }
 0x805   : > { %v8728_v10 = vmul.f32 1.442695, %v8694_v17 }
 0x806   : > { %v8607_v43 = vpop.xlane.xlu0 %8606 }
 0x807   : > { %13700 = vpow2.f32 %v8728_v10  ;;  %v8695_v33 = vsub.f32 %v15599_v32, %v8607_v43 }
 0x809   : > { %v8730_v27 = vmul.f32 1.442695, %v8695_v33 }
 0x80a   : > { %v8610_v23 = vpop.xlane.xlu1 %8609  ;;  %v8613_v42 = vpop.xlane.xlu0 %8612 }
 0x80b   : > { %13702 = vpow2.f32 %v8730_v27  ;;  %v8696_v2 = vsub.f32 %v15609_v59, %v8610_v23  ;;  %v8697_v21 = vsub.f32 %v15601_v56, %v8613_v42 }
 0x80d   : > { %v15779_v25 = vpop.eup %13698  ;;  %v8732_v44 = vmul.f32 1.442695, %v8696_v2  ;;  %v8734_v40 = vmul.f32 1.442695, %v8697_v21 }
 0x80e   : > { %v8616_v30 = vpop.xlane.xlu1 %8615  ;;  %v8619_v22 = vpop.xlane.xlu0 %8618  ;;  %v8791_v20 = vsel %vm589_vm1, %v15779_v25, 0.0 }
 0x80f   : > { %13704 = vpow2.f32 %v8732_v44  ;;  %v8698_v32 = vsub.f32 %v15619_v28, %v8616_v30  ;;  %v8699_v8 = vsub.f32 %v15611_v4, %v8619_v22  ;;  %8792 = vadd.xlane.f32.xlu0 %v8791_v20 }
 0x810   : > { %13706 = vpow2.f32 %v8734_v40 }
 0x811   : > { %v15785_v27 = vpop.eup %13700  ;;  %v8736_v59 = vmul.f32 1.442695, %v8698_v32  ;;  %v8738_v56 = vmul.f32 1.442695, %v8699_v8 }
 0x812   : > { %v8622_v17 = vpop.xlane.xlu1 %8621  ;;  %v8794_v2 = vsel %vm589_vm1, %v15785_v27, 0.0 }
 0x813   : > { %13708 = vpow2.f32 %v8736_v59  ;;  %v8700_v10 = vsub.f32 %v15627_v49, %v8622_v17  ;;  %8795 = vadd.xlane.f32.xlu1 %v8794_v2 }
 0x814   : > { %13710 = vpow2.f32 %v8738_v56 }
 0x815   : > { %v15790_v43 = vpop.eup %13702  ;;  %v8740_v28 = vmul.f32 1.442695, %v8700_v10 }
 0x816   : > { %v8797_v4 = vsel %vm589_vm1, %v15790_v43, 0.0 }
 0x817   : > { %13712 = vpow2.f32 %v8740_v28  ;;  %8798 = vadd.xlane.f32.xlu0 %v8797_v4 }
 0x819   : > { %v15794_v33 = vpop.eup %13704 }
 0x81a   : > { %v15796_v23 = vpop.eup %13706  ;;  %v8800_v42 = vsel %vm589_vm1, %v15794_v33, 0.0 }
 0x81b   : > { %8801 = vadd.xlane.f32.xlu1 %v8800_v42  ;;  %v8803_v49 = vsel %vm589_vm1, %v15796_v23, 0.0 }
 0x81c   : > { %8804 = vadd.xlane.f32.xlu0 %v8803_v49 }
 0x81d   : > { %v15802_v21 = vpop.eup %13708 }
 0x81e   : > { %v15804_v44 = vpop.eup %13710  ;;  %v8806_v40 = vsel %vm589_vm1, %v15802_v21, 0.0 }
 0x81f   : > { %8807 = vadd.xlane.f32.xlu1 %v8806_v40  ;;  %v8809_v30 = vsel %vm589_vm1, %v15804_v44, 0.0 }
 0x820   : > { %8810 = vadd.xlane.f32.xlu0 %v8809_v30 }
 0x821   : > { %v15810_v22 = vpop.eup %13712 }
 0x822   : > { %v8812_v20 = vsel %vm589_vm1, %v15810_v22, 0.0 }
 0x823   : > { %8813 = vadd.xlane.f32.xlu1 %v8812_v20 }
 0x82a   : > { %v8625_v32 = vpop.xlane.xlu0 %8624 }
 0x82b   : > { %v8701_v8 = vsub.f32 %v15633_v48, %v8625_v32 }
 0x82d   : > { %v8742_v59 = vmul.f32 1.442695, %v8701_v8 }
 0x82e   : > { %v8628_v56 = vpop.xlane.xlu1 %8627  ;;  %v8631_v17 = vpop.xlane.xlu0 %8630 }
 0x82f   : > { %13714 = vpow2.f32 %v8742_v59  ;;  %v8702_v2 = vsub.f32 %v15641_v53, %v8628_v56  ;;  %v8703_v10 = vsub.f32 %v15643_v47, %v8631_v17 }
 0x831   : > { %v8744_v28 = vmul.f32 1.442695, %v8702_v2  ;;  %v8746_v4 = vmul.f32 1.442695, %v8703_v10 }
 0x832   : > { %v8634_v42 = vpop.xlane.xlu1 %8633  ;;  %v8637_v49 = vpop.xlane.xlu0 %8636 }
 0x833   : > { %13716 = vpow2.f32 %v8744_v28  ;;  %v8704_v40 = vsub.f32 %v15653_v34, %v8634_v42  ;;  %v8705_v30 = vsub.f32 %v15655_v61, %v8637_v49 }
 0x834   : > { %13718 = vpow2.f32 %v8746_v4 }
 0x835   : > { %v8748_v20 = vmul.f32 1.442695, %v8704_v40  ;;  %v8750_v48 = vmul.f32 1.442695, %v8705_v30 }
 0x836   : > { %v8640_v32 = vpop.xlane.xlu1 %8639  ;;  %v8643_v8 = vpop.xlane.xlu0 %8642 }
 0x837   : > { %13720 = vpow2.f32 %v8748_v20  ;;  %v8706_v59 = vsub.f32 %v15665_v39, %v8640_v32  ;;  %v8707_v53 = vsub.f32 %v15667_v24, %v8643_v8 }
 0x838   : > { %13722 = vpow2.f32 %v8750_v48 }
 0x839   : > { %v15821_v47 = vpop.eup %13714  ;;  %v8752_v56 = vmul.f32 1.442695, %v8706_v59  ;;  %v8754_v17 = vmul.f32 1.442695, %v8707_v53 }
 0x83a   : > { %v8646_v2 = vpop.xlane.xlu1 %8645  ;;  %v8649_v10 = vpop.xlane.xlu0 %8648  ;;  %v8815_v34 = vsel %vm589_vm1, %v15821_v47, 0.0 }
 0x83b   : > { %13724 = vpow2.f32 %v8752_v56  ;;  %v8708_v61 = vsub.f32 %v15677_v51, %v8646_v2  ;;  %v8709_v28 = vsub.f32 %v15679_v16, %v8649_v10  ;;  %8816 = vadd.xlane.f32.xlu0 %v8815_v34 }
 0x83c   : > { %13726 = vpow2.f32 %v8754_v17 }
 0x83d   : > { %v15827_v39 = vpop.eup %13716  ;;  %v8756_v24 = vmul.f32 1.442695, %v8708_v61  ;;  %v8758_v4 = vmul.f32 1.442695, %v8709_v28 }
 0x83e   : > { %v15829_v42 = vpop.eup %13718  ;;  %v8652_v49 = vpop.xlane.xlu1 %8651  ;;  %v8818_v30 = vsel %vm589_vm1, %v15827_v39, 0.0 }
 0x83f   : > { %v8655_v40 = vpop.xlane.xlu0 %8654  ;;  %13728 = vpow2.f32 %v8756_v24  ;;  %v8710_v20 = vsub.f32 %v15689_v50, %v8652_v49  ;;  %8819 = vadd.xlane.f32.xlu1 %v8818_v30  ;;  %v8821_v16 = vsel %vm589_vm1, %v15829_v42, 0.0 }
 0x840   : > { %v8711_v51 = vsub.f32 %v15691_v0, %v8655_v40  ;;  %13730 = vpow2.f32 %v8758_v4  ;;  %8822 = vadd.xlane.f32.xlu0 %v8821_v16 }
 0x841   : > { %v15837_v48 = vpop.eup %13720  ;;  %v8760_v32 = vmul.f32 1.442695, %v8710_v20 }
 0x842   : > { %v8762_v8 = vmul.f32 1.442695, %v8711_v51  ;;  %v15839_v59 = vpop.eup %13722  ;;  %v8658_v53 = vpop.xlane.xlu1 %8657  ;;  %v8824_v17 = vsel %vm589_vm1, %v15837_v48, 0.0 }
 0x843   : > { %v8661_v56 = vpop.xlane.xlu0 %8660  ;;  %13732 = vpow2.f32 %v8760_v32  ;;  %v8712_v50 = vsub.f32 %v15701_v7, %v8658_v53  ;;  %8825 = vadd.xlane.f32.xlu1 %v8824_v17  ;;  %v8827_v2 = vsel %vm589_vm1, %v15839_v59, 0.0 }
 0x844   : > { %v8713_v0 = vsub.f32 %v15703_v9, %v8661_v56  ;;  %13734 = vpow2.f32 %v8762_v8  ;;  %8828 = vadd.xlane.f32.xlu0 %v8827_v2 }
 0x845   : > { %v15847_v10 = vpop.eup %13724  ;;  %v8764_v34 = vmul.f32 1.442695, %v8712_v50 }
 0x846   : > { %v8766_v61 = vmul.f32 1.442695, %v8713_v0  ;;  %v15849_v28 = vpop.eup %13726  ;;  %v8664_v24 = vpop.xlane.xlu1 %8663  ;;  %v8830_v49 = vsel %vm589_vm1, %v15847_v10, 0.0 }
 0x847   : > { %v8667_v4 = vpop.xlane.xlu0 %8666  ;;  %13736 = vpow2.f32 %v8764_v34  ;;  %v8714_v7 = vsub.f32 %v15713_v1, %v8664_v24  ;;  %8831 = vadd.xlane.f32.xlu1 %v8830_v49  ;;  %v8833_v40 = vsel %vm589_vm1, %v15849_v28, 0.0 }
 0x848   : > { %v8715_v9 = vsub.f32 %v15715_v11, %v8667_v4  ;;  %13738 = vpow2.f32 %v8766_v61  ;;  %8834 = vadd.xlane.f32.xlu0 %v8833_v40 }
 0x849   : > { %v15857_v30 = vpop.eup %13728  ;;  %v8768_v20 = vmul.f32 1.442695, %v8714_v7 }
 0x84a   : > { %v8770_v51 = vmul.f32 1.442695, %v8715_v9  ;;  %v15859_v16 = vpop.eup %13730  ;;  %v8670_v32 = vpop.xlane.xlu1 %8669  ;;  %v8836_v8 = vsel %vm589_vm1, %v15857_v30, 0.0 }
 0x84b   : > { %13740 = vpow2.f32 %v8768_v20  ;;  %v8716_v1 = vsub.f32 %v15723_v15, %v8670_v32  ;;  %8837 = vadd.xlane.f32.xlu1 %v8836_v8  ;;  %v8839_v11 = vsel %vm589_vm1, %v15859_v16, 0.0 }
 0x84c   : > { %13742 = vpow2.f32 %v8770_v51  ;;  %8840 = vadd.xlane.f32.xlu0 %v8839_v11 }
 0x84d   : > { %v15866_v53 = vpop.eup %13732  ;;  %v8772_v56 = vmul.f32 1.442695, %v8716_v1 }
 0x84e   : > { %v15868_v17 = vpop.eup %13734  ;;  %v8842_v50 = vsel %vm589_vm1, %v15866_v53, 0.0 }
 0x84f   : > { %13744 = vpow2.f32 %v8772_v56  ;;  %8843 = vadd.xlane.f32.xlu1 %v8842_v50  ;;  %v8845_v0 = vsel %vm589_vm1, %v15868_v17, 0.0 }
 0x850   : > { %8846 = vadd.xlane.f32.xlu0 %v8845_v0 }
 0x851   : > { %v15874_v15 = vpop.eup %13736 }
 0x852   : > { %v15876_v2 = vpop.eup %13738  ;;  %v8848_v34 = vsel %vm589_vm1, %v15874_v15, 0.0 }
 0x853   : > { %8849 = vadd.xlane.f32.xlu1 %v8848_v34  ;;  %v8851_v61 = vsel %vm589_vm1, %v15876_v2, 0.0 }
 0x854   : > { %8852 = vadd.xlane.f32.xlu0 %v8851_v61 }
 0x855   : > { %v15882_v24 = vpop.eup %13740 }
 0x856   : > { %v15884_v4 = vpop.eup %13742  ;;  %v8854_v49 = vsel %vm589_vm1, %v15882_v24, 0.0 }
 0x857   : > { %8855 = vadd.xlane.f32.xlu1 %v8854_v49  ;;  %v8857_v7 = vsel %vm589_vm1, %v15884_v4, 0.0 }
 0x858   : > { %8858 = vadd.xlane.f32.xlu0 %v8857_v7 }
 0x859   : > { %v15890_v9 = vpop.eup %13744 }
 0x85a   : > { %v8860_v40 = vsel %vm589_vm1, %v15890_v9, 0.0 }
 0x85b   : > { %8861 = vadd.xlane.f32.xlu1 %v8860_v40 }
 0x85f   : > { %v8673_v20 = vpop.xlane.xlu0 %8672 }
 0x860   : > { %v8717_v51 = vsub.f32 %v15730_v63, %v8673_v20 }
 0x862   : > { %v8774_v32 = vmul.f32 1.442695, %v8717_v51 }
 0x863   : > { %v8676_v8 = vpop.xlane.xlu1 %8675  ;;  %v8679_v1 = vpop.xlane.xlu0 %8678 }
 0x864   : > { %13746 = vpow2.f32 %v8774_v32  ;;  %v8718_v11 = vsub.f32 %v15738_v57, %v8676_v8  ;;  %v8719_v56 = vsub.f32 %v15740_v62, %v8679_v1 }
 0x866   : > { %v8776_v50 = vmul.f32 1.442695, %v8718_v11  ;;  %v8778_v0 = vmul.f32 1.442695, %v8719_v56 }
 0x867   : > { %v8682_v34 = vpop.xlane.xlu1 %8681  ;;  %v8685_v61 = vpop.xlane.xlu0 %8684 }
 0x868   : > { %13748 = vpow2.f32 %v8776_v50  ;;  %v8720_v49 = vsub.f32 %v15750_v31, %v8682_v34  ;;  %v8721_v7 = vsub.f32 %v15752_v38, %v8685_v61 }
 0x869   : > { %13750 = vpow2.f32 %v8778_v0 }
 0x86a   : > { %v8780_v40 = vmul.f32 1.442695, %v8720_v49  ;;  %v8782_v63 = vmul.f32 1.442695, %v8721_v7 }
 0x86b   : > { %v8688_v20 = vpop.xlane.xlu1 %8687  ;;  %v8691_v51 = vpop.xlane.xlu0 %8690 }
 0x86c   : > { %13752 = vpow2.f32 %v8780_v40  ;;  %v8722_v32 = vsub.f32 %v15762_v6, %v8688_v20  ;;  %v8723_v57 = vsub.f32 %v15764_v55, %v8691_v51 }
 0x86d   : > { %13754 = vpow2.f32 %v8782_v63 }
 0x86e   : > { %v15901_v62 = vpop.eup %13746  ;;  %v8784_v8 = vmul.f32 1.442695, %v8722_v32  ;;  %v8786_v1 = vmul.f32 1.442695, %v8723_v57 }
 0x86f   : > { %v8790_v11 = vpop.xlane.xlu1 %8789  ;;  %v8863_v31 = vsel %vm589_vm1, %v15901_v62, 0.0 }
 0x870   : > { %13756 = vpow2.f32 %v8784_v8  ;;  %8864 = vadd.xlane.f32.xlu0 %v8863_v31 }
 0x871   : > { %13758 = vpow2.f32 %v8786_v1 }
 0x872   : > { %v15905_v38 = vpop.eup %13748  ;;  %13760 = vrcp.f32 %v8790_v11 }
 0x873   : > { %v15907_v56 = vpop.eup %13750  ;;  %v8866_v6 = vsel %vm589_vm1, %v15905_v38, 0.0 }
 0x874   : > { %8867 = vadd.xlane.f32.xlu1 %v8866_v6  ;;  %v8869_v55 = vsel %vm589_vm1, %v15907_v56, 0.0 }
 0x875   : > { %8870 = vadd.xlane.f32.xlu0 %v8869_v55 }
 0x876   : > { %v15913_v50 = vpop.eup %13752 }
 0x877   : > { %v15915_v0 = vpop.eup %13754  ;;  %v8872_v34 = vsel %vm589_vm1, %v15913_v50, 0.0 }
 0x878   : > { %8873 = vadd.xlane.f32.xlu1 %v8872_v34  ;;  %v8875_v61 = vsel %vm589_vm1, %v15915_v0, 0.0 }
 0x879   : > { %8876 = vadd.xlane.f32.xlu0 %v8875_v61  ;;  %v13870_v61 = vld [vmem:[%s14047_s13 + $0x28] sm:$0xff] }
 0x87a   : > { %v15921_v49 = vpop.eup %13756 }
 0x87b   : > { %v15923_v7 = vpop.eup %13758  ;;  %v8878_v40 = vsel %vm589_vm1, %v15921_v49, 0.0 }
 0x87c   : > { %v13761_v63 = vpop.eup %13760  ;;  %8879 = vadd.xlane.f32.xlu1 %v8878_v40  ;;  %v8881_v20 = vsel %vm589_vm1, %v15923_v7, 0.0 }
 0x87d   : > { %v8916_v51 = vmul.f32 %v13761_v63, %v15770_v46  ;;  %8882 = vadd.xlane.f32.xlu0 %v8881_v20 }
 0x87f   : > { %13205 = vmatmul.mubr.msk.f32.vlgmr.msra.gmra.mrb[100].mxu1 %vm589_vm1, %v8916_v51 }
 0x880   : > { %13213 = vmatpush3.msra.mxu1 %v15149_v14  ;;  %13214 = vmatprep.mubr.msk.f32.mxu1 %vm13943_vm0, %v16584_v54 }
 0x881   : > { %13222 = vmatprep.subr.mxu1 %v16584_v54 }
 0x89c   : > { %v8793_v32 = vpop.xlane.xlu0 %8792 }
 0x89d   : > { %13762 = vrcp.f32 %v8793_v32 }
 0x8a0   : > { %v8796_v57 = vpop.xlane.xlu1 %8795 }
 0x8a1   : > { %13764 = vrcp.f32 %v8796_v57 }
 0x8a4   : > { %v8799_v8 = vpop.xlane.xlu0 %8798 }
 0x8a5   : > { %13766 = vrcp.f32 %v8799_v8 }
 0x8a7   : > { %v13763_v1 = vpop.eup %13762 }
 0x8a8   : > { %v8917_v11 = vmul.f32 %v13763_v1, %v15779_v25  ;;  %v8802_v46 = vpop.xlane.xlu1 %8801 }
 0x8a9   : > { %13768 = vrcp.f32 %v8802_v46  ;;  %v8805_v31 = vpop.xlane.xlu0 %8804 }
 0x8aa   : > { %13770 = vrcp.f32 %v8805_v31  ;;  %13210 = vmatmul.mubr.msk.f32.vlgmr.msra.gmra.mrb[100].mxu0 %vm589_vm1, %v8917_v11 }
 0x8ab   : > { %v13765_v14 = vpop.eup %13764  ;;  %13218 = vmatpush3.msra.mxu0 %v15147_v12  ;;  %13219 = vmatprep.mubr.msk.f32.mxu0 %vm13943_vm0, %v16584_v54 }
 0x8ac   : > { %v8918_v6 = vmul.f32 %v13765_v14, %v15785_v27  ;;  %v8808_v55 = vpop.xlane.xlu1 %8807  ;;  %13227 = vmatprep.subr.mxu0 %v16584_v54 }
 0x8ad   : > { %13772 = vrcp.f32 %v8808_v55  ;;  %v8811_v25 = vpop.xlane.xlu0 %8810 }
 0x8ae   : > { %13774 = vrcp.f32 %v8811_v25  ;;  %13215 = vmatmul.mubr.msk.f32.vlgmr.msra.gmra.mrb[102].mxu1 %vm589_vm1, %v8918_v6 }
 0x8af   : > { %v13767_v34 = vpop.eup %13766  ;;  %13223 = vmatpush3.msra.mxu1 %v13870_v61  ;;  %13224 = vmatprep.mubr.msk.f32.mxu1 %vm13943_vm0, %v16584_v54 }
 0x8b0   : > { %v8919_v12 = vmul.f32 %v13767_v34, %v15790_v43  ;;  %v8814_v40 = vpop.xlane.xlu1 %8813  ;;  %13232 = vmatprep.subr.mxu1 %v16584_v54 }
 0x8b1   : > { %13776 = vrcp.f32 %v8814_v40 }
 0x8b2   : > { %13220 = vmatmul.mubr.msk.f32.vlgmr.msra.gmra.mrb[102].mxu0 %vm589_vm1, %v8919_v12 }
 0x8b3   : > { %v13769_v27 = vpop.eup %13768  ;;  %13228 = vmatpush3.msra.mxu0 %v15151_v37  ;;  %13229 = vmatprep.mubr.msk.f32.mxu0 %vm13943_vm0, %v16584_v54 }
 0x8b4   : > { %v13771_v63 = vpop.eup %13770  ;;  %v8920_v20 = vmul.f32 %v13769_v27, %v15794_v33  ;;  %13237 = vmatprep.subr.mxu0 %v16584_v54 }
 0x8b5   : > { %v8921_v51 = vmul.f32 %v13771_v63, %v15796_v23  ;;  %v13871_v23 = vld [vmem:[%s14047_s13 + $0x40] sm:$0xff] }
 0x8b6   : > { %13225 = vmatmul.mubr.msk.f32.vlgmr.msra.gmra.mrb[104].mxu1 %vm589_vm1, %v8920_v20 }
 0x8b7   : > { %v13773_v43 = vpop.eup %13772  ;;  %13230 = vmatmul.mubr.msk.f32.vlgmr.msra.gmra.mrb[104].mxu0 %vm589_vm1, %v8921_v51  ;;  %13233 = vmatpush3.msra.mxu1 %v15166_v52 }
 0x8b8   : > { %v13775_v32 = vpop.eup %13774  ;;  %v8922_v37 = vmul.f32 %v13773_v43, %v15802_v21  ;;  %13238 = vmatpush3.msra.mxu0 %v15168_v18  ;;  %13234 = vmatprep.mubr.msk.f32.mxu1 %vm13943_vm0, %v16584_v54 }
 0x8b9   : > { %v8923_v33 = vmul.f32 %v13775_v32, %v15804_v44  ;;  %13239 = vmatprep.mubr.msk.f32.mxu0 %vm13943_vm0, %v16584_v54  ;;  %13247 = vmatprep.subr.mxu0 %v16584_v54 }
 0x8ba   : > { %13235 = vmatmul.mubr.msk.f32.vlgmr.msra.gmra.mrb[106].mxu1 %vm589_vm1, %v8922_v37  ;;  %13242 = vmatprep.subr.mxu1 %v16584_v54 }
 0x8bb   : > { %v13777_v52 = vpop.eup %13776  ;;  %13240 = vmatmul.mubr.msk.f32.vlgmr.msra.gmra.mrb[106].mxu0 %vm589_vm1, %v8923_v33  ;;  %13243 = vmatpush3.msra.mxu1 %v13871_v23  ;;  %v16602_v23 = vld [vmem:[#allocation15_spill] sm:$0xff] }
 0x8bc   : > { %v8924_v18 = vmul.f32 %v13777_v52, %v15810_v22  ;;  %13248 = vmatpush3.msra.mxu0 %v15209_v35  ;;  %13244 = vmatprep.mubr.msk.f32.mxu1 %vm13943_vm0, %v16584_v54 }
 0x8bd   : > { %13252 = vmatprep.subr.mxu1 %v16584_v54  ;;  %13249 = vmatprep.mubr.msk.f32.mxu0 %vm13943_vm0, %v16584_v54 }
 0x8be   : > { %13245 = vmatmul.mubr.msk.f32.vlgmr.msra.gmra.mrb[108].mxu1 %vm589_vm1, %v8924_v18  ;;  %13257 = vmatprep.subr.mxu0 %v16584_v54 }
 0x8bf   : > { %13253 = vmatpush3.msra.mxu1 %v15211_v41  ;;  %13254 = vmatprep.mubr.msk.f32.mxu1 %vm13943_vm0, %v16584_v54 }
 0x8c0   : > { %13262 = vmatprep.subr.mxu1 %v16584_v54 }
 0x8c8   : > { %v8817_v35 = vpop.xlane.xlu0 %8816 }
 0x8c9   : > { %13778 = vrcp.f32 %v8817_v35 }
 0x8cc   : > { %v8820_v21 = vpop.xlane.xlu1 %8819 }
 0x8cd   : > { %13780 = vrcp.f32 %v8820_v21  ;;  %v8823_v44 = vpop.xlane.xlu0 %8822 }
 0x8ce   : > { %13782 = vrcp.f32 %v8823_v44 }
 0x8d0   : > { %v8826_v22 = vpop.xlane.xlu1 %8825 }
 0x8d1   : > { %13784 = vrcp.f32 %v8826_v22  ;;  %v8829_v57 = vpop.xlane.xlu0 %8828 }
 0x8d2   : > { %13786 = vrcp.f32 %v8829_v57 }
 0x8d3   : > { %v13779_v8 = vpop.eup %13778 }
 0x8d4   : > { %v8925_v1 = vmul.f32 %v13779_v8, %v15821_v47  ;;  %v8832_v11 = vpop.xlane.xlu1 %8831 }
 0x8d5   : > { %13788 = vrcp.f32 %v8832_v11  ;;  %v8835_v41 = vpop.xlane.xlu0 %8834 }
 0x8d6   : > { %13790 = vrcp.f32 %v8835_v41  ;;  %13250 = vmatmul.mubr.msk.f32.vlgmr.msra.gmra.mrb[108].mxu0 %vm589_vm1, %v8925_v1  ;;  %v16604_v41 = vld [vmem:[#allocation17_spill] sm:$0xff] }
 0x8d7   : > { %v13781_v46 = vpop.eup %13780  ;;  %13258 = vmatpush3.msra.mxu0 %v15328_v58  ;;  %13259 = vmatprep.mubr.msk.f32.mxu0 %vm13943_vm0, %v16584_v54  ;;  %v13872_v58 = vld [vmem:[%s14047_s13 + $0x58] sm:$0xff] }
 0x8d8   : > { %v13783_v31 = vpop.eup %13782  ;;  %v8926_v14 = vmul.f32 %v13781_v46, %v15827_v39  ;;  %v8838_v6 = vpop.xlane.xlu1 %8837  ;;  %13267 = vmatprep.subr.mxu0 %v16584_v54 }
 0x8d9   : > { %v8927_v47 = vmul.f32 %v13783_v31, %v15829_v42  ;;  %13792 = vrcp.f32 %v8838_v6  ;;  %v8841_v55 = vpop.xlane.xlu0 %8840  ;;  %v13876_v6 = vld [vmem:[%s14047_s13 + $0xb8] sm:$0xff] }
 0x8da   : > { %13794 = vrcp.f32 %v8841_v55  ;;  %13255 = vmatmul.mubr.msk.f32.vlgmr.msra.gmra.mrb[110].mxu1 %vm589_vm1, %v8926_v14 }
 0x8db   : > { %v13785_v25 = vpop.eup %13784  ;;  %13260 = vmatmul.mubr.msk.f32.vlgmr.msra.gmra.mrb[110].mxu0 %vm589_vm1, %v8927_v47  ;;  %13263 = vmatpush3.msra.mxu1 %v13872_v58 }
 0x8dc   : > { %v13787_v34 = vpop.eup %13786  ;;  %v8928_v61 = vmul.f32 %v13785_v25, %v15837_v48  ;;  %13268 = vmatpush3.msra.mxu0 %v15330_v36  ;;  %v8844_v39 = vpop.xlane.xlu1 %8843  ;;  %13264 = vmatprep.mubr.msk.f32.mxu1 %vm13943_vm0, %v16584_v54  ;;  %v16605_v25 = vld [vmem:[#allocation5_spill] sm:$0xff] }
 0x8dd   : > { %v8929_v42 = vmul.f32 %v13787_v34, %v15839_v59  ;;  %13796 = vrcp.f32 %v8844_v39  ;;  %v8847_v12 = vpop.xlane.xlu0 %8846  ;;  %13269 = vmatprep.mubr.msk.f32.mxu0 %vm13943_vm0, %v16584_v54  ;;  %13272 = vmatprep.subr.mxu1 %v16584_v54 }
 0x8de   : > { %13798 = vrcp.f32 %v8847_v12  ;;  %13277 = vmatprep.subr.mxu0 %v16584_v54  ;;  %13265 = vmatmul.mubr.msk.f32.vlgmr.msra.gmra.mrb[112].mxu1 %vm589_vm1, %v8928_v61  ;;  %v16607_v61 = vld [vmem:[#allocation19_spill] sm:$0xff] }
 0x8df   : > { %v13789_v48 = vpop.eup %13788  ;;  %13270 = vmatmul.mubr.msk.f32.vlgmr.msra.gmra.mrb[112].mxu0 %vm589_vm1, %v8929_v42  ;;  %13273 = vmatpush3.msra.mxu1 %v15352_v26 }
 0x8e0   : > { %v13791_v36 = vpop.eup %13790  ;;  %v8930_v59 = vmul.f32 %v13789_v48, %v15847_v10  ;;  %13278 = vmatpush3.msra.mxu0 %v15402_v45  ;;  %v8850_v40 = vpop.xlane.xlu1 %8849  ;;  %13274 = vmatprep.mubr.msk.f32.mxu1 %vm13943_vm0, %v16584_v54  ;;  %v13873_v45 = vld [vmem:[%s14047_s13 + $0x70] sm:$0xff]  ;;  %v281_v48 = vld [vmem:[%s16554_s3 + $0xc0] sm:$0xff] }
 0x8e1   : > { %v8931_v27 = vmul.f32 %v13791_v36, %v15849_v28  ;;  %13800 = vrcp.f32 %v8850_v40  ;;  %v8853_v63 = vpop.xlane.xlu0 %8852  ;;  %13279 = vmatprep.mubr.msk.f32.mxu0 %vm13943_vm0, %v16584_v54  ;;  %13287 = vmatprep.subr.mxu0 %v16584_v54  ;;  %v284_v40 = vld [vmem:[%s16554_s3 + $0xd8] sm:$0xff] }
 0x8e2   : > { %13802 = vrcp.f32 %v8853_v63  ;;  %13275 = vmatmul.mubr.msk.f32.vlgmr.msra.gmra.mrb[114].mxu1 %vm589_vm1, %v8930_v59  ;;  %13282 = vmatprep.subr.mxu1 %v16584_v54  ;;  %v283_v59 = vld [vmem:[%s16554_s3 + $0xd0] sm:$0xff] }
 0x8e3   : > { %v13793_v26 = vpop.eup %13792  ;;  %13280 = vmatmul.mubr.msk.f32.vlgmr.msra.gmra.mrb[114].mxu0 %vm589_vm1, %v8931_v27  ;;  %13283 = vmatpush3.msra.mxu1 %v13873_v45  ;;  %v13458_v63 = vpack.c.bf16 %v284_v40, %v283_v59 }
 0x8e4   : > { %v13795_v10 = vpop.eup %13794  ;;  %v8932_v28 = vmul.f32 %v13793_v26, %v15857_v30  ;;  %13288 = vmatpush3.msra.mxu0 %v15414_v13  ;;  %v8856_v20 = vpop.xlane.xlu1 %8855  ;;  %13284 = vmatprep.mubr.msk.f32.mxu1 %vm13943_vm0, %v16584_v54 }
 0x8e5   : > { %v8933_v51 = vmul.f32 %v13795_v10, %v15859_v16  ;;  %13804 = vrcp.f32 %v8856_v20  ;;  %v8859_v43 = vpop.xlane.xlu0 %8858  ;;  %13289 = vmatprep.mubr.msk.f32.mxu0 %vm13943_vm0, %v16584_v54  ;;  %13292 = vmatprep.subr.mxu1 %v16584_v54 }
 0x8e6   : > { %13806 = vrcp.f32 %v8859_v43  ;;  %13297 = vmatprep.subr.mxu0 %v16584_v54  ;;  %13285 = vmatmul.mubr.msk.f32.vlgmr.msra.gmra.mrb[116].mxu1 %vm589_vm1, %v8932_v28 }
 0x8e7   : > { %v13797_v30 = vpop.eup %13796  ;;  %13290 = vmatmul.mubr.msk.f32.vlgmr.msra.gmra.mrb[116].mxu0 %vm589_vm1, %v8933_v51  ;;  %13293 = vmatpush3.msra.mxu1 %v15412_v19 }
 0x8e8   : > { %v13799_v13 = vpop.eup %13798  ;;  %v8934_v16 = vmul.f32 %v13797_v30, %v15866_v53  ;;  %13298 = vmatpush3.msra.mxu0 %v15416_v5  ;;  %v8862_v32 = vpop.xlane.xlu1 %8861  ;;  %13294 = vmatprep.mubr.msk.f32.mxu1 %vm13943_vm0, %v16584_v54  ;;  %v13874_v5 = vld [vmem:[%s14047_s13 + $0x88] sm:$0xff] }
 0x8e9   : > { %v8935_v37 = vmul.f32 %v13799_v13, %v15868_v17  ;;  %13808 = vrcp.f32 %v8862_v32  ;;  %13299 = vmatprep.mubr.msk.f32.mxu0 %vm13943_vm0, %v16584_v54  ;;  %13307 = vmatprep.subr.mxu0 %v16584_v54 }
 0x8ea   : > { %13295 = vmatmul.mubr.msk.f32.vlgmr.msra.gmra.mrb[118].mxu1 %vm589_vm1, %v8934_v16  ;;  %13302 = vmatprep.subr.mxu1 %v16584_v54 }
 0x8eb   : > { %v13801_v19 = vpop.eup %13800  ;;  %13300 = vmatmul.mubr.msk.f32.vlgmr.msra.gmra.mrb[118].mxu0 %vm589_vm1, %v8935_v37  ;;  %13303 = vmatpush3.msra.mxu1 %v13874_v5 }
 0x8ec   : > { %v13803_v53 = vpop.eup %13802  ;;  %v8936_v33 = vmul.f32 %v13801_v19, %v15874_v15  ;;  %13308 = vmatpush3.msra.mxu0 %v15418_v60  ;;  %13304 = vmatprep.mubr.msk.f32.mxu1 %vm13943_vm0, %v16584_v54 }
 0x8ed   : > { %v8937_v17 = vmul.f32 %v13803_v53, %v15876_v2  ;;  %13309 = vmatprep.mubr.msk.f32.mxu0 %vm13943_vm0, %v16584_v54  ;;  %13312 = vmatprep.subr.mxu1 %v16584_v54 }
 0x8ee   : > { %13317 = vmatprep.subr.mxu0 %v16584_v54  ;;  %13305 = vmatmul.mubr.msk.f32.vlgmr.msra.gmra.mrb[120].mxu1 %vm589_vm1, %v8936_v33 }
 0x8ef   : > { %v13805_v52 = vpop.eup %13804  ;;  %13310 = vmatmul.mubr.msk.f32.vlgmr.msra.gmra.mrb[120].mxu0 %vm589_vm1, %v8937_v17  ;;  %13313 = vmatpush3.msra.mxu1 %v15421_v3 }
 0x8f0   : > { %v13807_v60 = vpop.eup %13806  ;;  %v8938_v15 = vmul.f32 %v13805_v52, %v15882_v24  ;;  %13318 = vmatpush3.msra.mxu0 %v15438_v29  ;;  %13314 = vmatprep.mubr.msk.f32.mxu1 %vm13943_vm0, %v16584_v54  ;;  %v13875_v24 = vld [vmem:[%s14047_s13 + $0xa0] sm:$0xff]  ;;  %s13951_s13 = smov [#allocation2]  }
 0x8f1   : > { %v8939_v2 = vmul.f32 %v13807_v60, %v15884_v4  ;;  %13319 = vmatprep.mubr.msk.f32.mxu0 %vm13943_vm0, %v16584_v54  ;;  %13327 = vmatprep.subr.mxu0 %v16584_v54  ;;  %v16603_v4 = vld [vmem:[#allocation16_spill] sm:$0xff]  ;;  %s13882_s14 = sshll.u32 %s13951_s13, 4  ;;  %s13883_s14 = int_to_ptr.vmem [resolvable:$false] %s13882_s14 }
 0x8f2   : > { %13315 = vmatmul.mubr.msk.f32.vlgmr.msra.gmra.mrb[122].mxu1 %vm589_vm1, %v8938_v15  ;;  %13322 = vmatprep.subr.mxu1 %v16584_v54  ;;  %s13884_s15 = scalar_lea.vmem %s13883_s14, 2048 }
 0x8f3   : > { %v13809_v3 = vpop.eup %13808  ;;  %13320 = vmatmul.mubr.msk.f32.vlgmr.msra.gmra.mrb[122].mxu0 %vm589_vm1, %v8939_v2  ;;  %13323 = vmatpush3.msra.mxu1 %v13875_v24 }
 0x8f4   : > { %v8940_v29 = vmul.f32 %v13809_v3, %v15890_v9  ;;  %13328 = vmatpush3.msra.mxu0 %v16602_v23  ;;  %13324 = vmatprep.mubr.msk.f32.mxu1 %vm13943_vm0, %v16584_v54 }
 0x8f5   : > { %13332 = vmatprep.subr.mxu1 %v16584_v54  ;;  %13329 = vmatprep.mubr.msk.f32.mxu0 %vm13943_vm0, %v16584_v54 }
 0x8f6   : > { %13325 = vmatmul.mubr.msk.f32.vlgmr.msra.gmra.mrb[124].mxu1 %vm589_vm1, %v8940_v29  ;;  %13337 = vmatprep.subr.mxu0 %v16584_v54 }
 0x8f7   : > { %13333 = vmatpush3.msra.mxu1 %v16603_v4  ;;  %13334 = vmatprep.mubr.msk.f32.mxu1 %vm13943_vm0, %v16584_v54 }
 0x8f8   : > { %13342 = vmatprep.subr.mxu1 %v16584_v54 }
 0x8fd   : > { %v8865_v9 = vpop.xlane.xlu0 %8864 }
 0x8fe   : > { %13810 = vrcp.f32 %v8865_v9 }
 0x901   : > { %v8868_v18 = vpop.xlane.xlu1 %8867 }
 0x902   : > { %13812 = vrcp.f32 %v8868_v18  ;;  %v8871_v35 = vpop.xlane.xlu0 %8870 }
 0x903   : > { %13814 = vrcp.f32 %v8871_v35 }
 0x905   : > { %v8874_v21 = vpop.xlane.xlu1 %8873 }
 0x906   : > { %13816 = vrcp.f32 %v8874_v21  ;;  %v8877_v44 = vpop.xlane.xlu0 %8876 }
 0x907   : > { %13818 = vrcp.f32 %v8877_v44 }
 0x908   : > { %v13811_v22 = vpop.eup %13810 }
 0x909   : > { %v8941_v57 = vmul.f32 %v13811_v22, %v15901_v62  ;;  %v8880_v8 = vpop.xlane.xlu1 %8879 }
 0x90a   : > { %13820 = vrcp.f32 %v8880_v8  ;;  %v8883_v1 = vpop.xlane.xlu0 %8882 }
 0x90b   : > { %13822 = vrcp.f32 %v8883_v1  ;;  %13330 = vmatmul.mubr.msk.f32.vlgmr.msra.gmra.mrb[124].mxu0 %vm589_vm1, %v8941_v57 }
 0x90c   : > { %v13813_v11 = vpop.eup %13812  ;;  %13338 = vmatpush3.msra.mxu0 %v16604_v41  ;;  %13339 = vmatprep.mubr.msk.f32.mxu0 %vm13943_vm0, %v16584_v54 }
 0x90d   : > { %v13815_v46 = vpop.eup %13814  ;;  %v8942_v31 = vmul.f32 %v13813_v11, %v15905_v38  ;;  %13347 = vmatprep.subr.mxu0 %v16584_v54 }
 0x90e   : > { %v8943_v62 = vmul.f32 %v13815_v46, %v15907_v56 }
 0x90f   : > { %13335 = vmatmul.mubr.msk.f32.vlgmr.msra.gmra.mrb[126].mxu1 %vm589_vm1, %v8942_v31 }
 0x910   : > { %v13817_v14 = vpop.eup %13816  ;;  %13340 = vmatmul.mubr.msk.f32.vlgmr.msra.gmra.mrb[126].mxu0 %vm589_vm1, %v8943_v62  ;;  %13343 = vmatpush3.msra.mxu1 %v13876_v6 }
 0x911   : > { %v13819_v47 = vpop.eup %13818  ;;  %v8944_v55 = vmul.f32 %v13817_v14, %v15913_v50  ;;  %13348 = vmatpush3.msra.mxu0 %v16605_v25  ;;  %13344 = vmatprep.mubr.msk.f32.mxu1 %vm13943_vm0, %v16584_v54  ;;  %v16606_v50 = vld [vmem:[#allocation18_spill] sm:$0xff] }
 0x912   : > { %v8945_v38 = vmul.f32 %v13819_v47, %v15915_v0  ;;  %13349 = vmatprep.mubr.msk.f32.mxu0 %vm13943_vm0, %v16584_v54  ;;  %13352 = vmatprep.subr.mxu1 %v16584_v54 }
 0x913   : > { %13357 = vmatprep.subr.mxu0 %v16584_v54  ;;  %13345 = vmatmul.mubr.msk.f32.vlgmr.msra.gmra.mrb[128].mxu1 %vm589_vm1, %v8944_v55 }
 0x914   : > { %v13821_v56 = vpop.eup %13820  ;;  %13350 = vmatmul.mubr.msk.f32.vlgmr.msra.gmra.mrb[128].mxu0 %vm589_vm1, %v8945_v38  ;;  %13353 = vmatpush3.msra.mxu1 %v16606_v50 }
 0x915   : > { %v13823_v58 = vpop.eup %13822  ;;  %v8946_v34 = vmul.f32 %v13821_v56, %v15921_v49  ;;  %13358 = vmatpush3.msra.mxu0 %v16607_v61  ;;  %13354 = vmatprep.mubr.msk.f32.mxu1 %vm13943_vm0, %v16584_v54 }
 0x916   : > { %v8947_v0 = vmul.f32 %v13823_v58, %v15923_v7  ;;  %13359 = vmatprep.mubr.msk.f32.mxu0 %vm13943_vm0, %v16584_v54  ;;  %v282_v7 = vld [vmem:[%s16554_s3 + $0xc8] sm:$0xff] }
 0x917   : > { %13355 = vmatmul.mubr.msk.f32.vlgmr.msra.gmra.mrb[130].mxu1 %vm589_vm1, %v8946_v34  ;;  %v13454_v54 = vpack.c.bf16 %v282_v7, %v281_v48 }
 0x918   : > { %13360 = vmatmul.mubr.msk.f32.vlgmr.msra.gmra.mrb[130].mxu0 %vm589_vm1, %v8947_v0 }
 0x919   : > { %13455 = vmatprep.subr.bf16.mxu0 %v13454_v54 }
 0x91a   : > { %13457 = vmatpush3.bf16.msra.mxu0 %v13454_v54 }
 0x91b   : > { %13459 = vmatprep.subr.bf16.mxu0 %v13458_v63 }
 0x91e   : > { %13461 = vmatpush3.bf16.msra.mxu0 %v13458_v63 }
 0x952   : > { %v16111_v39 = vpop.f32.mrb[100].mxu1 }
 0x953   : > { %v13206_v42 = vpop.f32.mrb[101].mxu1 }
 0x97d   : > { %v9090_v12 = vpop.f32.mrb[100].mxu0 }
 0x97e   : > { %11292 = vrot.lane.b32.xlu1 %v9090_v12, %s13948_s7  ;;  %v13211_v49 = vpop.f32.mrb[101].mxu0 }
 0x981   : > { %v9163_v36 = vpop.f32.mrb[102].mxu1 }
 0x982   : > { %v13216_v27 = vpop.f32.mrb[103].mxu1  ;;  %11324 = vrot.lane.b32.xlu1 %v9163_v36, %s13949_s17 }
 0x985   : > { %v9236_v26 = vpop.f32.mrb[102].mxu0 }
 0x986   : > { %11356 = vrot.lane.b32.xlu0 %v9236_v26, %s13950_s23  ;;  %v13221_v45 = vpop.f32.mrb[103].mxu0 }
 0x989   : > { %v16128_v10 = vpop.f32.mrb[104].mxu1 }
 0x98a   : > { %v9382_v28 = vpop.f32.mrb[104].mxu0  ;;  %v13226_v20 = vpop.f32.mrb[105].mxu1 }
 0x98b   : > { %11294 = vrot.lane.b32.xlu0 %v9382_v28, %s13948_s7  ;;  %v13231_v51 = vpop.f32.mrb[105].mxu0 }
 0x98d   : > { %v9455_v43 = vpop.f32.mrb[106].mxu1 }
 0x98e   : > { %v9528_v30 = vpop.f32.mrb[106].mxu0  ;;  %v13236_v13 = vpop.f32.mrb[107].mxu1  ;;  %11326 = vrot.lane.b32.xlu1 %v9455_v43, %s13949_s17 }
 0x98f   : > { %v13241_v16 = vpop.f32.mrb[107].mxu0 }
 0x991   : > { %v16132_v32 = vpop.f32.mrb[108].mxu1 }
 0x992   : > { %v13246_v37 = vpop.f32.mrb[109].mxu1  ;;  %11358 = vrot.lane.b32.xlu1 %v9528_v30, %s13950_s23 }
 0x9a9   : > { %v9674_v19 = vpop.f32.mrb[108].mxu0 }
 0x9aa   : > { %11296 = vrot.lane.b32.xlu0 %v9674_v19, %s13948_s7  ;;  %v13251_v5 = vpop.f32.mrb[109].mxu0 }
 0x9ad   : > { %v9747_v53 = vpop.f32.mrb[110].mxu1 }
 0x9ae   : > { %v9820_v33 = vpop.f32.mrb[110].mxu0  ;;  %v13256_v17 = vpop.f32.mrb[111].mxu1  ;;  %11328 = vrot.lane.b32.xlu0 %v9747_v53, %s13949_s17 }
 0x9af   : > { %v13261_v52 = vpop.f32.mrb[111].mxu0 }
 0x9b1   : > { %v16137_v60 = vpop.f32.mrb[112].mxu1 }
 0x9b2   : > { %v9966_v15 = vpop.f32.mrb[112].mxu0  ;;  %v13266_v2 = vpop.f32.mrb[113].mxu1  ;;  %11360 = vrot.lane.b32.xlu0 %v9820_v33, %s13950_s23 }
 0x9b3   : > { %11298 = vrot.lane.b32.xlu1 %v9966_v15, %s13948_s7  ;;  %v13271_v3 = vpop.f32.mrb[113].mxu0 }
 0x9b5   : > { %v10039_v24 = vpop.f32.mrb[114].mxu1 }
 0x9b6   : > { %v10112_v29 = vpop.f32.mrb[114].mxu0  ;;  %v13276_v23 = vpop.f32.mrb[115].mxu1 }
 0x9b7   : > { %11330 = vrot.lane.b32.xlu1 %v10039_v24, %s13949_s17  ;;  %v13281_v4 = vpop.f32.mrb[115].mxu0 }
 0x9b9   : > { %v16142_v9 = vpop.f32.mrb[116].mxu1 }
 0x9ba   : > { %v10258_v18 = vpop.f32.mrb[116].mxu0  ;;  %v13286_v35 = vpop.f32.mrb[117].mxu1 }
 0x9bb   : > { %11362 = vrot.lane.b32.xlu1 %v10112_v29, %s13950_s23  ;;  %11300 = vrot.lane.b32.xlu0 %v10258_v18, %s13948_s7  ;;  %v13291_v21 = vpop.f32.mrb[117].mxu0 }
 0x9bd   : > { %v10331_v44 = vpop.f32.mrb[118].mxu1 }
 0x9be   : > { %v10404_v22 = vpop.f32.mrb[118].mxu0  ;;  %v13296_v57 = vpop.f32.mrb[119].mxu1 }
 0x9bf   : > { %11332 = vrot.lane.b32.xlu0 %v10331_v44, %s13949_s17  ;;  %v13301_v8 = vpop.f32.mrb[119].mxu0 }
 0x9c1   : > { %v16147_v1 = vpop.f32.mrb[120].mxu1 }
 0x9c2   : > { %v10550_v11 = vpop.f32.mrb[120].mxu0  ;;  %v13306_v41 = vpop.f32.mrb[121].mxu1 }
 0x9c3   : > { %11364 = vrot.lane.b32.xlu0 %v10404_v22, %s13950_s23  ;;  %11302 = vrot.lane.b32.xlu1 %v10550_v11, %s13948_s7  ;;  %v13311_v46 = vpop.f32.mrb[121].mxu0 }
 0x9c5   : > { %v10623_v31 = vpop.f32.mrb[122].mxu1 }
 0x9c6   : > { %v10696_v62 = vpop.f32.mrb[122].mxu0  ;;  %v13316_v14 = vpop.f32.mrb[123].mxu1 }
 0x9c7   : > { %11334 = vrot.lane.b32.xlu1 %v10623_v31, %s13949_s17  ;;  %v13321_v6 = vpop.f32.mrb[123].mxu0 }
 0x9c9   : > { %v16152_v47 = vpop.f32.mrb[124].mxu1 }
 0x9ca   : > { %v13326_v55 = vpop.f32.mrb[125].mxu1 }
 0x9cb   : > { %11366 = vrot.lane.b32.xlu1 %v10696_v62, %s13950_s23 }
 0x9de   : > { %v10842_v25 = vpop.f32.mrb[124].mxu0 }
 0x9df   : > { %11304 = vrot.lane.b32.xlu0 %v10842_v25, %s13948_s7  ;;  %v13331_v38 = vpop.f32.mrb[125].mxu0  ;;  %v16207_v25 = vld [vmem:[%s16555_s4] sm:$0xff] }
 0x9e2   : > { %v10915_v56 = vpop.f32.mrb[126].mxu1 }
 0x9e3   : > { %v10988_v50 = vpop.f32.mrb[126].mxu0  ;;  %v13336_v58 = vpop.f32.mrb[127].mxu1  ;;  %11336 = vrot.lane.b32.xlu0 %v10915_v56, %s13949_s17 }
 0x9e4   : > { %v13341_v34 = vpop.f32.mrb[127].mxu0 }
 0x9e6   : > { %v16157_v61 = vpop.f32.mrb[128].mxu1 }
 0x9e7   : > { %v11134_v0 = vpop.f32.mrb[128].mxu0  ;;  %v13346_v42 = vpop.f32.mrb[129].mxu1  ;;  %11368 = vrot.lane.b32.xlu0 %v10988_v50, %s13950_s23 }
 0x9e8   : > { %11306 = vrot.lane.b32.xlu1 %v11134_v0, %s13948_s7  ;;  %v13351_v12 = vpop.f32.mrb[129].mxu0  ;;  %v16610_v42 = vld [vmem:[#allocation8_spill] sm:$0xff] }
 0x9ea   : > { %v11207_v49 = vpop.f32.mrb[130].mxu1 }
 0x9eb   : > { %v11280_v48 = vpop.f32.mrb[130].mxu0  ;;  %v13356_v7 = vpop.f32.mrb[131].mxu1 }
 0x9ec   : > { %11338 = vrot.lane.b32.xlu1 %v11207_v49, %s13949_s17  ;;  %v13361_v54 = vpop.f32.mrb[131].mxu0  ;;  %s12081_s17 = sshll.u32 %s16462_s11, 4  ;;  %s16501_s17 = int_to_ptr.vmem [resolvable:$true] %s12081_s17 }
 0x9ed   : > { %s13878_s10 = scalar_lea.vmem %s16501_s17, 1024  ;;  %p13885_p0 = scmp.lt.s32.totalorder %s16501_s17, %s13883_s14 }
 0x9ee   : > { %p13879_p11 = scmp.ne.s32.totalorder %s16501_s17, %s13878_s10  ;;  %p13886_p1 = scmp.lt.s32.totalorder %s13884_s15, %s13878_s10 }
 0x9f0   : > { %11370 = vrot.lane.b32.xlu1 %v11280_v48, %s13950_s23  ;;  %v11293_v36 = vpop.permute.xlu1 %11292  ;;  %p13880_p12 = pnand %p13879_p11, %p14021_p5  ;;  %p13887_p2 = por %p13886_p1, %p13885_p0 }
 0x9f1   : > { %v11380_v40 = vsel %vm589_vm1, %v16111_v39, %v11293_v36 }
 0x9f2   : > { %p13881_p13 = pneg %p13880_p12 }
 0x9f4   : > { %v11325_v59 = vpop.permute.xlu1 %11324  ;;  %p13888_p3 = pnand %p13887_p2, %p13881_p13 }
 0x9f5   : > { %v11388_v27 = vsel %vm5819_vm4, %v11380_v40, %v11325_v59  ;;  %v16611_v40 = vld [vmem:[#allocation10_spill] sm:$0xff] }
 0x9f8   : > { %v11357_v63 = vpop.permute.xlu0 %11356 }
 0x9f9   : > { %v11396_v26 = vsel %vm5828_vm5, %v11388_v27, %v11357_v63  ;;  %v16612_v63 = vld [vmem:[#allocation9_spill] sm:$0xff] }
 0x9fa   : > { %13370 = vmatprep.mubr.msk.f32.mxu0 %vm5841_vm6, %v11396_v26 }
 0x9fd   : > { %v11295_v45 = vpop.permute.xlu0 %11294 }
 0x9fe   : > { %v11381_v20 = vsel %vm589_vm1, %v16128_v10, %v11295_v45 }
 0xa00   : > { %v11327_v28 = vpop.permute.xlu1 %11326 }
 0xa01   : > { %v11389_v51 = vsel %vm5819_vm4, %v11381_v20, %v11327_v28 }
 0xa04   : > { %v11359_v43 = vpop.permute.xlu1 %11358 }
 0xa05   : > { %v11397_v30 = vsel %vm5828_vm5, %v11389_v51, %v11359_v43 }
 0xa06   : > { %13371 = vmatmul.mubr.msk.f32.vlgmr.msra.gmra.mrb[132].mxu0 %vm5841_vm6, %v11397_v30 }
 0xa1c   : > { %v11297_v39 = vpop.permute.xlu0 %11296 }
 0xa1d   : > { %v11382_v16 = vsel %vm589_vm1, %v16132_v32, %v11297_v39  ;;  %v16613_v39 = vld [vmem:[#allocation11_spill] sm:$0xff] }
 0xa20   : > { %v11329_v13 = vpop.permute.xlu0 %11328 }
 0xa21   : > { %v11390_v37 = vsel %vm5819_vm4, %v11382_v16, %v11329_v13  ;;  %v16614_v16 = vld [vmem:[#allocation12_spill] sm:$0xff] }
 0xa24   : > { %v11361_v19 = vpop.permute.xlu0 %11360 }
 0xa25   : > { %v11299_v5 = vpop.permute.xlu1 %11298  ;;  %v11398_v53 = vsel %vm5828_vm5, %v11390_v37, %v11361_v19 }
 0xa26   : > { %13373 = vmatprep.mubr.msk.f32.mxu0 %vm5841_vm6, %v11398_v53  ;;  %v11383_v33 = vsel %vm589_vm1, %v16137_v60, %v11299_v5 }
 0xa29   : > { %v11331_v10 = vpop.permute.xlu1 %11330 }
 0xa2a   : > { %v11391_v17 = vsel %vm5819_vm4, %v11383_v33, %v11331_v10 }
 0xa2d   : > { %v11363_v52 = vpop.permute.xlu1 %11362  ;;  %v11301_v15 = vpop.permute.xlu0 %11300 }
 0xa2e   : > { %v11399_v2 = vsel %vm5828_vm5, %v11391_v17, %v11363_v52  ;;  %v11384_v3 = vsel %vm589_vm1, %v16142_v9, %v11301_v15  ;;  %v16615_v52 = vld [vmem:[#allocation14_spill] sm:$0xff] }
 0xa2f   : > { %13374 = vmatmul.mubr.msk.f32.gmra.mrb[134].mxu0 %vm5841_vm6, %v11399_v2  ;;  %v16616_v2 = vld [vmem:[#allocation13_spill] sm:$0xff] }
 0xa31   : > { %v11333_v32 = vpop.permute.xlu0 %11332 }
 0xa32   : > { %v11392_v24 = vsel %vm5819_vm4, %v11384_v3, %v11333_v32 }
 0xa35   : > { %v11303_v29 = vpop.permute.xlu1 %11302  ;;  %v11365_v23 = vpop.permute.xlu0 %11364 }
 0xa36   : > { %v11400_v4 = vsel %vm5828_vm5, %v11392_v24, %v11365_v23  ;;  %v11385_v18 = vsel %vm589_vm1, %v16147_v1, %v11303_v29 }
 0xa37   : > { %13376 = vmatprep.mubr.msk.f32.mxu0 %vm5841_vm6, %v11400_v4 }
 0xa39   : > { %v11335_v60 = vpop.permute.xlu1 %11334 }
 0xa3a   : > { %v11393_v35 = vsel %vm5819_vm4, %v11385_v18, %v11335_v60 }
 0xa3d   : > { %v11367_v21 = vpop.permute.xlu1 %11366 }
 0xa3e   : > { %v11401_v44 = vsel %vm5828_vm5, %v11393_v35, %v11367_v21 }
 0xa3f   : > { %13377 = vmatmul.mubr.msk.f32.gmra.mrb[136].mxu0 %vm5841_vm6, %v11401_v44 }
 0xa51   : > { %v11305_v9 = vpop.permute.xlu0 %11304 }
 0xa52   : > { %v11386_v57 = vsel %vm589_vm1, %v16152_v47, %v11305_v9  ;;  %v16608_v47 = vld [vmem:[#allocation6_spill] sm:$0xff] }
 0xa53   : > { %v11406_v55 = vsub.s32 1, %v16608_v47 }
 0xa55   : > { %v11337_v22 = vpop.permute.xlu0 %11336  ;;  %v11407_v38 = vrot.slane %v16207_v25, %v11406_v55 }
 0xa56   : > { %v11394_v8 = vsel %vm5819_vm4, %v11386_v57, %v11337_v22  ;;  %v257_v57 = vld [vmem:[%s16554_s3] sm:$0xff] }
 0xa59   : > { %v11369_v11 = vpop.permute.xlu0 %11368 }
 0xa5a   : > { %v11307_v41 = vpop.permute.xlu1 %11306  ;;  %v11402_v46 = vsel %vm5828_vm5, %v11394_v8, %v11369_v11  ;;  %v258_v8 = vld [vmem:[%s16554_s3 + $0x8] sm:$0xff] }
 0xa5b   : > { %13379 = vmatprep.mubr.msk.f32.mxu0 %vm5841_vm6, %v11402_v46  ;;  %v11387_v31 = vsel %vm589_vm1, %v16157_v61, %v11307_v41  ;;  %v16609_v61 = vld [vmem:[#allocation7_spill] sm:$0xff]  ;;  %v13462_v11 = vpack.c.bf16 %v258_v8, %v257_v57  ;;  %v260_v46 = vld [vmem:[%s16554_s3 + $0x18] sm:$0xff]  ;;  %v273_v8 = vld [vmem:[%s16554_s3 + $0x80] sm:$0xff] }
 0xa5c   : > { %v259_v41 = vld [vmem:[%s16554_s3 + $0x10] sm:$0xff] }
 0xa5d   : > { %13463 = vmatprep.subr.bf16.mxu0 %v13462_v11 }
 0xa5e   : > { %v11339_v1 = vpop.permute.xlu1 %11338  ;;  %13465 = vmatpush3.bf16.msra.mxu0 %v13462_v11  ;;  %v274_v11 = vld [vmem:[%s16554_s3 + $0x88] sm:$0xff] }
 0xa5f   : > { %v11395_v62 = vsel %vm5819_vm4, %v11387_v31, %v11339_v1  ;;  %v13466_v31 = vpack.c.bf16 %v260_v46, %v259_v41  ;;  %v11651_v41 = vsub.s32 4, %v16608_v47  ;;  %v13494_v46 = vpack.c.bf16 %v274_v11, %v273_v8 }
 0xa61   : > { %13467 = vmatprep.subr.bf16.mxu0 %v13466_v31 }
 0xa62   : > { %v11371_v14 = vpop.permute.xlu1 %11370  ;;  %13469 = vmatpush3.bf16.msra.mxu0 %v13466_v31  ;;  %v16325_v31 = vrot.slane %v16207_v25, %v11651_v41 }
 0xa63   : > { %v11403_v6 = vsel %vm5828_vm5, %v11395_v62, %v11371_v14 }
 0xa64   : > { %13380 = vmatmul.mubr.msk.f32.gmra.mrb[138].mxu0 %vm5841_vm6, %v11403_v6 }
 0xad9   : > { %v13372_v56 = vpop.f32.mrb[132].mxu0 }
 0xada   : > { %v11504_v50 = vadd.f32 %v13372_v56, %v11407_v38  ;;  %v11498_v58 = vpop.f32.mrb[133].mxu0 }
 0xadb   : > { %v11499_v34 = vadd.f32 %v11498_v58, %v11407_v38 }
 0xadc   : > { %v11538_v0 = vadd.f32 %v11504_v50, %v16609_v61 }
 0xadd   : > { %v11537_v12 = vadd.f32 %v11499_v34, %v16610_v42 }
 0xade   : > { %v11548_v49 = vsel %vm5841_vm6, %v11538_v0, 0.0 }
 0xadf   : > { %11549 = vadd.xlane.f32.xlu1 %v11548_v49  ;;  %v11545_v48 = vsel %vm5841_vm6, %v11537_v12, 0.0 }
 0xae0   : > { %11546 = vadd.xlane.f32.xlu0 %v11545_v48 }
 0xb02   : > { %v13375_v7 = vpop.f32.mrb[134].mxu0 }
 0xb03   : > { %v11508_v54 = vpop.f32.mrb[135].mxu0  ;;  %v11514_v36 = vadd.f32 %v13375_v7, %v11407_v38 }
 0xb04   : > { %v11509_v59 = vadd.f32 %v11508_v54, %v11407_v38 }
 0xb05   : > { %v11540_v26 = vadd.f32 %v11514_v36, %v16612_v63 }
 0xb06   : > { %v11539_v27 = vadd.f32 %v11509_v59, %v16611_v40 }
 0xb07   : > { %v11554_v28 = vsel %vm5841_vm6, %v11540_v26, 0.0 }
 0xb08   : > { %v11551_v45 = vsel %vm5841_vm6, %v11539_v27, 0.0 }
 0xb09   : > { %11552 = vadd.xlane.f32.xlu0 %v11551_v45 }
 0xb0d   : > { %11555 = vadd.xlane.f32.xlu0 %v11554_v28 }
 0xb12   : > { %v13378_v20 = vpop.f32.mrb[136].mxu0 }
 0xb13   : > { %v11524_v51 = vadd.f32 %v13378_v20, %v11407_v38  ;;  %v11518_v43 = vpop.f32.mrb[137].mxu0 }
 0xb14   : > { %v11519_v30 = vadd.f32 %v11518_v43, %v11407_v38 }
 0xb15   : > { %v11542_v13 = vadd.f32 %v11524_v51, %v16613_v39 }
 0xb16   : > { %v11541_v37 = vadd.f32 %v11519_v30, %v16614_v16  ;;  %v262_v16 = vld [vmem:[%s16554_s3 + $0x28] sm:$0xff] }
 0xb17   : > { %v11560_v19 = vsel %vm5841_vm6, %v11542_v13, 0.0 }
 0xb18   : > { %11561 = vadd.xlane.f32.xlu0 %v11560_v19  ;;  %v11557_v5 = vsel %vm5841_vm6, %v11541_v37, 0.0 }
 0xb19   : > { %11558 = vadd.xlane.f32.xlu1 %v11557_v5  ;;  %v264_v5 = vld [vmem:[%s16554_s3 + $0x38] sm:$0xff] }
 0xb37   : > { %v13381_v53 = vpop.f32.mrb[138].mxu0 }
 0xb38   : > { %v11534_v10 = vadd.f32 %v13381_v53, %v11407_v38  ;;  %v11528_v33 = vpop.f32.mrb[139].mxu0 }
 0xb39   : > { %v11529_v17 = vadd.f32 %v11528_v33, %v11407_v38  ;;  %v266_v33 = vld [vmem:[%s16554_s3 + $0x48] sm:$0xff] }
 0xb3a   : > { %v11544_v15 = vadd.f32 %v11534_v10, %v16615_v52  ;;  %v265_v10 = vld [vmem:[%s16554_s3 + $0x40] sm:$0xff]  ;;  %v267_v52 = vld [vmem:[%s16554_s3 + $0x50] sm:$0xff] }
 0xb3b   : > { %v11543_v32 = vadd.f32 %v11529_v17, %v16616_v2  ;;  %v13478_v17 = vpack.c.bf16 %v266_v33, %v265_v10 }
 0xb3c   : > { %v11566_v3 = vsel %vm5841_vm6, %v11544_v15, 0.0 }
 0xb3d   : > { %11567 = vadd.xlane.f32.xlu0 %v11566_v3  ;;  %v11563_v24 = vsel %vm5841_vm6, %v11543_v32, 0.0  ;;  %v269_v3 = vld [vmem:[%s16554_s3 + $0x60] sm:$0xff] }
 0xb3e   : > { %11564 = vadd.xlane.f32.xlu1 %v11563_v24  ;;  %v270_v24 = vld [vmem:[%s16554_s3 + $0x68] sm:$0xff] }
 0xb6c   : > { %v11550_v29 = vpop.xlane.xlu1 %11549 }
 0xb6d   : > { %v11570_v23 = vmul.f32 0.03125, %v11550_v29  ;;  %v11547_v4 = vpop.xlane.xlu0 %11546 }
 0xb6e   : > { %v11569_v60 = vmul.f32 0.03125, %v11547_v4 }
 0xb6f   : > { %v16228_v18 = vsub.f32 %v11538_v0, %v11570_v23 }
 0xb70   : > { %v16230_v35 = vsub.f32 %v11537_v12, %v11569_v60 }
 0xb71   : > { %v11586_v21 = vmul.f32 %v16228_v18, %v16228_v18 }
 0xb72   : > { %v11585_v44 = vmul.f32 %v16230_v35, %v16230_v35 }
 0xb73   : > { %v11596_v9 = vsel %vm5841_vm6, %v11586_v21, 0.0  ;;  %v13486_v21 = vpack.c.bf16 %v270_v24, %v269_v3 }
 0xb74   : > { %11597 = vadd.xlane.f32.xlu0 %v11596_v9  ;;  %v11593_v22 = vsel %vm5841_vm6, %v11585_v44, 0.0  ;;  %v271_v9 = vld [vmem:[%s16554_s3 + $0x70] sm:$0xff] }
 0xb75   : > { %11594 = vadd.xlane.f32.xlu1 %v11593_v22  ;;  %v272_v22 = vld [vmem:[%s16554_s3 + $0x78] sm:$0xff] }
 0xb76   : > { %v13490_v57 = vpack.c.bf16 %v272_v22, %v271_v9 }
 0xb96   : > { %v11553_v1 = vpop.xlane.xlu0 %11552 }
 0xb97   : > { %v11571_v62 = vmul.f32 0.03125, %v11553_v1  ;;  %v11663_v1 = vsub.s32 5, %v16608_v47 }
 0xb99   : > { %v16250_v14 = vsub.f32 %v11539_v27, %v11571_v62 }
 0xb9a   : > { %v11556_v6 = vpop.xlane.xlu0 %11555 }
 0xb9b   : > { %v11572_v38 = vmul.f32 0.03125, %v11556_v6  ;;  %v11587_v56 = vmul.f32 %v16250_v14, %v16250_v14 }
 0xb9d   : > { %v16254_v50 = vsub.f32 %v11540_v26, %v11572_v38  ;;  %v11599_v58 = vsel %vm5841_vm6, %v11587_v56, 0.0  ;;  %v16329_v56 = vrot.slane %v16207_v25, %v11663_v1 }
 0xb9e   : > { %11600 = vadd.xlane.f32.xlu1 %v11599_v58 }
 0xb9f   : > { %v11588_v34 = vmul.f32 %v16254_v50, %v16254_v50 }
 0xba1   : > { %v11602_v61 = vsel %vm5841_vm6, %v11588_v34, 0.0 }
 0xba2   : > { %11603 = vadd.xlane.f32.xlu0 %v11602_v61 }
 0xba5   : > { %v11562_v0 = vpop.xlane.xlu0 %11561 }
 0xba6   : > { %v11574_v42 = vmul.f32 0.03125, %v11562_v0  ;;  %v11559_v12 = vpop.xlane.xlu1 %11558 }
 0xba7   : > { %v11573_v49 = vmul.f32 0.03125, %v11559_v12 }
 0xba8   : > { %v16260_v48 = vsub.f32 %v11542_v13, %v11574_v42  ;;  %v261_v13 = vld [vmem:[%s16554_s3 + $0x20] sm:$0xff] }
 0xba9   : > { %v16262_v7 = vsub.f32 %v11541_v37, %v11573_v49  ;;  %v263_v37 = vld [vmem:[%s16554_s3 + $0x30] sm:$0xff]  ;;  %v13470_v19 = vpack.c.bf16 %v262_v16, %v261_v13 }
 0xbaa   : > { %v11590_v54 = vmul.f32 %v16260_v48, %v16260_v48  ;;  %v13474_v53 = vpack.c.bf16 %v264_v5, %v263_v37 }
 0xbab   : > { %v11589_v36 = vmul.f32 %v16262_v7, %v16262_v7  ;;  %13471 = vmatprep.subr.bf16.mxu1 %v13470_v19 }
 0xbac   : > { %v11608_v59 = vsel %vm5841_vm6, %v11590_v54, 0.0  ;;  %13473 = vmatpush3.bf16.msra.mxu1 %v13470_v19 }
 0xbad   : > { %11609 = vadd.xlane.f32.xlu0 %v11608_v59  ;;  %v11605_v40 = vsel %vm5841_vm6, %v11589_v36, 0.0  ;;  %13475 = vmatprep.subr.bf16.mxu1 %v13474_v53 }
 0xbae   : > { %11606 = vadd.xlane.f32.xlu1 %v11605_v40 }
 0xbb0   : > { %13477 = vmatpush3.bf16.msra.mxu1 %v13474_v53 }
 0xbb1   : > { %13479 = vmatprep.subr.bf16.mxu1 %v13478_v17 }
 0xbb4   : > { %13481 = vmatpush3.bf16.msra.mxu1 %v13478_v17 }
 0xbca   : > { %v11568_v27 = vpop.xlane.xlu0 %11567 }
 0xbcb   : > { %v11576_v63 = vmul.f32 0.03125, %v11568_v27  ;;  %v11565_v26 = vpop.xlane.xlu1 %11564 }
 0xbcc   : > { %v11575_v45 = vmul.f32 0.03125, %v11565_v26 }
 0xbcd   : > { %v16270_v28 = vsub.f32 %v11544_v15, %v11576_v63  ;;  %v268_v15 = vld [vmem:[%s16554_s3 + $0x58] sm:$0xff] }
 0xbce   : > { %v16272_v20 = vsub.f32 %v11543_v32, %v11575_v45  ;;  %v13482_v2 = vpack.c.bf16 %v268_v15, %v267_v52 }
 0xbcf   : > { %v11592_v51 = vmul.f32 %v16270_v28, %v16270_v28 }
 0xbd0   : > { %v11591_v43 = vmul.f32 %v16272_v20, %v16272_v20  ;;  %13483 = vmatprep.subr.bf16.mxu1 %v13482_v2 }
 0xbd1   : > { %v11614_v30 = vsel %vm5841_vm6, %v11592_v51, 0.0  ;;  %13485 = vmatpush3.bf16.msra.mxu1 %v13482_v2 }
 0xbd2   : > { %11615 = vadd.xlane.f32.xlu0 %v11614_v30  ;;  %v11611_v39 = vsel %vm5841_vm6, %v11591_v43, 0.0  ;;  %13487 = vmatprep.subr.bf16.mxu1 %v13486_v21 }
 0xbd3   : > { %11612 = vadd.xlane.f32.xlu1 %v11611_v39 }
 0xbd5   : > { %13489 = vmatpush3.bf16.msra.mxu1 %v13486_v21 }
 0xbd6   : > { %13491 = vmatprep.subr.bf16.mxu1 %v13490_v57 }
 0xbd9   : > { %13493 = vmatpush3.bf16.msra.mxu1 %v13490_v57 }
 0xbda   : > { %13495 = vmatprep.subr.bf16.mxu1 %v13494_v46 }
 0xbdd   : > { %13497 = vmatpush3.bf16.msra.mxu1 %v13494_v46 }
 0xc01   : > { %v11598_v32 = vpop.xlane.xlu0 %11597 }
 0xc02   : > { %v11618_v29 = vmul.f32 0.03125, %v11598_v32  ;;  %v11595_v23 = vpop.xlane.xlu1 %11594 }
 0xc03   : > { %v11617_v4 = vmul.f32 0.03125, %v11595_v23 }
 0xc04   : > { %v11626_v60 = vadd.f32 1e-05, %v11618_v29 }
 0xc05   : > { %v11625_v44 = vadd.f32 1e-05, %v11617_v4  ;;  %v275_v4 = vld [vmem:[%s16554_s3 + $0x90] sm:$0xff] }
 0xc06   : > { %13824 = vrsqrt.f32 %v11626_v60  ;;  %v276_v60 = vld [vmem:[%s16554_s3 + $0x98] sm:$0xff] }
 0xc07   : > { %13826 = vrsqrt.f32 %v11625_v44  ;;  %v13498_v44 = vpack.c.bf16 %v276_v60, %v275_v4 }
 0xc09   : > { %13499 = vmatprep.subr.bf16.mxu1 %v13498_v44 }
 0xc0a   : > { %13501 = vmatpush3.bf16.msra.mxu1 %v13498_v44 }
 0xc10   : > { %v13825_v62 = vpop.eup %13824 }
 0xc11   : > { %v13827_v6 = vpop.eup %13826  ;;  %v11642_v38 = vmul.f32 %v13825_v62, %v16228_v18 }
 0xc12   : > { %v11641_v58 = vmul.f32 %v13827_v6, %v16230_v35 }
 0xc13   : > { %v11654_v34 = vmul.f32 %v16325_v31, %v11642_v38 }
 0xc14   : > { %v11653_v61 = vmul.f32 %v16325_v31, %v11641_v58 }
 0xc15   : > { %v16338_v42 = vadd.f32 %v16329_v56, %v11654_v34 }
 0xc16   : > { %v16335_v0 = vadd.f32 %v16329_v56, %v11653_v61 }
 0xc18   : > { %13390 = vmatprep.mubr.msk.f32.mxu0 %vm5841_vm6, %v16335_v0 }
 0xc19   : > { %13391 = vmatmul.mubr.msk.f32.vlgmr.msra.gmra.mrb[140].mxu0 %vm5841_vm6, %v16338_v42 }
 0xc2b   : > { %v11601_v18 = vpop.xlane.xlu1 %11600 }
 0xc2c   : > { %v11619_v12 = vmul.f32 0.03125, %v11601_v18 }
 0xc2e   : > { %v11627_v35 = vadd.f32 1e-05, %v11619_v12 }
 0xc2f   : > { %v11604_v49 = vpop.xlane.xlu0 %11603 }
 0xc30   : > { %13828 = vrsqrt.f32 %v11627_v35  ;;  %v11620_v54 = vmul.f32 0.03125, %v11604_v49 }
 0xc32   : > { %v11628_v36 = vadd.f32 1e-05, %v11620_v54 }
 0xc34   : > { %13830 = vrsqrt.f32 %v11628_v36 }
 0xc3a   : > { %v13829_v59 = vpop.eup %13828  ;;  %v11610_v40 = vpop.xlane.xlu0 %11609 }
 0xc3b   : > { %v11622_v27 = vmul.f32 0.03125, %v11610_v40  ;;  %v11607_v63 = vpop.xlane.xlu1 %11606  ;;  %v11643_v26 = vmul.f32 %v13829_v59, %v16250_v14 }
 0xc3c   : > { %v11621_v45 = vmul.f32 0.03125, %v11607_v63 }
 0xc3d   : > { %v11630_v51 = vadd.f32 1e-05, %v11622_v27  ;;  %v11655_v43 = vmul.f32 %v16325_v31, %v11643_v26 }
 0xc3e   : > { %v13831_v30 = vpop.eup %13830  ;;  %v11629_v39 = vadd.f32 1e-05, %v11621_v45  ;;  %v16617_v45 = vsub.s32 0, %v16608_v47 }
 0xc3f   : > { %13832 = vrsqrt.f32 %v11630_v51  ;;  %v16347_v13 = vadd.f32 %v16329_v56, %v11655_v43  ;;  %v11644_v16 = vmul.f32 %v13831_v30, %v16254_v50 }
 0xc40   : > { %13834 = vrsqrt.f32 %v11629_v39 }
 0xc41   : > { %13393 = vmatprep.mubr.msk.f32.mxu0 %vm5841_vm6, %v16347_v13  ;;  %v11656_v37 = vmul.f32 %v16325_v31, %v11644_v16 }
 0xc43   : > { %v16354_v14 = vadd.f32 %v16329_v56, %v11656_v37 }
 0xc45   : > { %13394 = vmatmul.mubr.msk.f32.gmra.mrb[142].mxu0 %vm5841_vm6, %v16354_v14 }
 0xc49   : > { %v13833_v19 = vpop.eup %13832 }
 0xc4a   : > { %v13835_v5 = vpop.eup %13834  ;;  %v11646_v53 = vmul.f32 %v13833_v19, %v16260_v48 }
 0xc4b   : > { %v11645_v10 = vmul.f32 %v13835_v5, %v16262_v7 }
 0xc4c   : > { %v11658_v50 = vmul.f32 %v16325_v31, %v11646_v53 }
 0xc4d   : > { %v11657_v33 = vmul.f32 %v16325_v31, %v11645_v10 }
 0xc4e   : > { %v16366_v52 = vadd.f32 %v16329_v56, %v11658_v50 }
 0xc4f   : > { %v16363_v17 = vadd.f32 %v16329_v56, %v11657_v33 }
 0xc51   : > { %13396 = vmatprep.mubr.msk.f32.mxu0 %vm5841_vm6, %v16363_v17 }
 0xc52   : > { %13397 = vmatmul.mubr.msk.f32.gmra.mrb[144].mxu0 %vm5841_vm6, %v16366_v52 }
 0xc5f   : > { %v11616_v15 = vpop.xlane.xlu0 %11615 }
 0xc60   : > { %v11624_v48 = vmul.f32 0.03125, %v11616_v15  ;;  %v11613_v2 = vpop.xlane.xlu1 %11612 }
 0xc61   : > { %v11623_v7 = vmul.f32 0.03125, %v11613_v2 }
 0xc62   : > { %v11632_v32 = vadd.f32 1e-05, %v11624_v48 }
 0xc63   : > { %v11631_v3 = vadd.f32 1e-05, %v11623_v7 }
 0xc64   : > { %13836 = vrsqrt.f32 %v11632_v32 }
 0xc65   : > { %13838 = vrsqrt.f32 %v11631_v3 }
 0xc6e   : > { %v13837_v24 = vpop.eup %13836 }
 0xc6f   : > { %v13839_v29 = vpop.eup %13838  ;;  %v11648_v23 = vmul.f32 %v13837_v24, %v16270_v28 }
 0xc70   : > { %v11647_v21 = vmul.f32 %v13839_v29, %v16272_v20  ;;  %v256_v20 = vld [vmem:[%s16555_s4 + $0x8] sm:$0x3] }
 0xc71   : > { %v11660_v9 = vmul.f32 %v16325_v31, %v11648_v23  ;;  %v11676_v8 = vrot.slane %v256_v20, %v11406_v55  ;;  %v11817_v51 = vrot.slane %v256_v20, %v16617_v45 }
 0xc72   : > { %v11659_v22 = vmul.f32 %v16325_v31, %v11647_v21 }
 0xc73   : > { %v16386_v28 = vadd.f32 %v16329_v56, %v11660_v9 }
 0xc74   : > { %v16383_v57 = vadd.f32 %v16329_v56, %v11659_v22 }
 0xc76   : > { %13399 = vmatprep.mubr.msk.f32.mxu0 %vm5841_vm6, %v16383_v57 }
 0xc77   : > { %13400 = vmatmul.mubr.msk.f32.gmra.mrb[146].mxu0 %vm5841_vm6, %v16386_v28 }
 0xcec   : > { %v13392_v11 = vpop.f32.mrb[140].mxu0 }
 0xced   : > { %v11773_v41 = vadd.f32 %v13392_v11, %v11676_v8  ;;  %v11767_v46 = vpop.f32.mrb[141].mxu0 }
 0xcee   : > { %v11768_v1 = vadd.f32 %v11767_v46, %v11676_v8 }
 0xcef   : > { %v11807_v62 = vmax.f32 %v11773_v41, 0.0 }
 0xcf0   : > { %v11806_v31 = vmax.f32 %v11768_v1, 0.0 }
 0xcf2   : > { %13434 = vmatprep.mubr.f32.mxu1 %v11806_v31 }
 0xcf3   : > { %13435 = vmatmul.mubr.f32.vlgmr.msra.gmra.mrb[132].mxu1 %v11807_v62 }
 0xd18   : > { %v13395_v6 = vpop.f32.mrb[142].mxu0 }
 0xd19   : > { %v11783_v38 = vadd.f32 %v13395_v6, %v11676_v8  ;;  %v11777_v56 = vpop.f32.mrb[143].mxu0 }
 0xd1a   : > { %v11778_v58 = vadd.f32 %v11777_v56, %v11676_v8 }
 0xd1b   : > { %v11809_v61 = vmax.f32 %v11783_v38, 0.0 }
 0xd1c   : > { %v11808_v34 = vmax.f32 %v11778_v58, 0.0 }
 0xd1e   : > { %13437 = vmatprep.mubr.f32.mxu1 %v11808_v34 }
 0xd1f   : > { %13438 = vmatmul.mubr.f32.gmra.mrb[134].mxu1 %v11809_v61 }
 0xd25   : > { %v13398_v18 = vpop.f32.mrb[144].mxu0 }
 0xd26   : > { %v11793_v12 = vadd.f32 %v13398_v18, %v11676_v8  ;;  %v11787_v35 = vpop.f32.mrb[145].mxu0 }
 0xd27   : > { %v11788_v55 = vadd.f32 %v11787_v35, %v11676_v8 }
 0xd28   : > { %v11811_v54 = vmax.f32 %v11793_v12, 0.0 }
 0xd29   : > { %v11810_v49 = vmax.f32 %v11788_v55, 0.0 }
 0xd2b   : > { %13440 = vmatprep.mubr.f32.mxu1 %v11810_v49 }
 0xd2c   : > { %13441 = vmatmul.mubr.f32.gmra.mrb[136].mxu1 %v11811_v54 }
 0xd4a   : > { %v13401_v36 = vpop.f32.mrb[146].mxu0 }
 0xd4b   : > { %v11803_v59 = vadd.f32 %v13401_v36, %v11676_v8  ;;  %v11797_v40 = vpop.f32.mrb[147].mxu0 }
 0xd4c   : > { %v11798_v27 = vadd.f32 %v11797_v40, %v11676_v8 }
 0xd4d   : > { %v11813_v26 = vmax.f32 %v11803_v59, 0.0 }
 0xd4e   : > { %v11812_v63 = vmax.f32 %v11798_v27, 0.0 }
 0xd50   : > { %13443 = vmatprep.mubr.f32.mxu1 %v11812_v63 }
 0xd51   : > { %13444 = vmatmul.mubr.f32.gmra.mrb[138].mxu1 %v11813_v26 }
 0xdc6   : > { %v13436_v43 = vpop.f32.mrb[132].mxu1 }
 0xdc7   : > { %v11890_v30 = vadd.f32 %v13436_v43, %v11817_v51  ;;  %v11884_v39 = vpop.f32.mrb[133].mxu1 }
 0xdc8   : > { %v11885_v16 = vadd.f32 %v11884_v39, %v11817_v51 }
 0xdc9   : > { %v11924_v37 = vadd.f32 %v11890_v30, %v16338_v42 }
 0xdca   : > { %v11923_v19 = vadd.f32 %v11885_v16, %v16335_v0 }
 0xdcb   : > { %v11934_v5 = vsel %vm5841_vm6, %v11924_v37, 0.0 }
 0xdcc   : > { %11935 = vadd.xlane.f32.xlu0 %v11934_v5  ;;  %v11931_v53 = vsel %vm5841_vm6, %v11923_v19, 0.0 }
 0xdcd   : > { %11932 = vadd.xlane.f32.xlu1 %v11931_v53 }
 0xdf2   : > { %v13439_v10 = vpop.f32.mrb[134].mxu1 }
 0xdf3   : > { %v11900_v50 = vadd.f32 %v13439_v10, %v11817_v51  ;;  %v11894_v33 = vpop.f32.mrb[135].mxu1 }
 0xdf4   : > { %v11895_v15 = vadd.f32 %v11894_v33, %v11817_v51 }
 0xdf5   : > { %v11926_v48 = vadd.f32 %v11900_v50, %v16354_v14 }
 0xdf6   : > { %v11925_v2 = vadd.f32 %v11895_v15, %v16347_v13 }
 0xdf7   : > { %v11940_v7 = vsel %vm5841_vm6, %v11926_v48, 0.0 }
 0xdf8   : > { %11941 = vadd.xlane.f32.xlu0 %v11940_v7  ;;  %v11937_v42 = vsel %vm5841_vm6, %v11925_v2, 0.0 }
 0xdf9   : > { %11938 = vadd.xlane.f32.xlu1 %v11937_v42 }
 0xdff   : > { %v13442_v0 = vpop.f32.mrb[136].mxu1 }
 0xe00   : > { %v11910_v32 = vadd.f32 %v13442_v0, %v11817_v51  ;;  %v11904_v3 = vpop.f32.mrb[137].mxu1  ;;  %v12037_v0 = vsub.s32 6, %v16608_v47 }
 0xe01   : > { %v11905_v24 = vadd.f32 %v11904_v3, %v11817_v51 }
 0xe02   : > { %v11928_v29 = vadd.f32 %v11910_v32, %v16366_v52  ;;  %v12049_v32 = vsub.s32 7, %v16608_v47  ;;  %v16451_v3 = vrot.slane %v16207_v25, %v12037_v0 }
 0xe03   : > { %v11927_v23 = vadd.f32 %v11905_v24, %v16363_v17 }
 0xe04   : > { %v11946_v4 = vsel %vm5841_vm6, %v11928_v29, 0.0 }
 0xe05   : > { %11947 = vadd.xlane.f32.xlu0 %v11946_v4  ;;  %v11943_v14 = vsel %vm5841_vm6, %v11927_v23, 0.0 }
 0xe06   : > { %11944 = vadd.xlane.f32.xlu1 %v11943_v14 }
 0xe24   : > { %v13445_v13 = vpop.f32.mrb[138].mxu1 }
 0xe25   : > { %v11920_v60 = vadd.f32 %v13445_v13, %v11817_v51  ;;  %v11914_v21 = vpop.f32.mrb[139].mxu1 }
 0xe26   : > { %v11915_v44 = vadd.f32 %v11914_v21, %v11817_v51 }
 0xe27   : > { %v11930_v9 = vadd.f32 %v11920_v60, %v16386_v28 }
 0xe28   : > { %v11929_v22 = vadd.f32 %v11915_v44, %v16383_v57 }
 0xe29   : > { %v11952_v20 = vsel %vm5841_vm6, %v11930_v9, 0.0 }
 0xe2a   : > { %11953 = vadd.xlane.f32.xlu0 %v11952_v20  ;;  %v11949_v52 = vsel %vm5841_vm6, %v11929_v22, 0.0 }
 0xe2b   : > { %11950 = vadd.xlane.f32.xlu1 %v11949_v52 }
 0xe59   : > { %v11936_v17 = vpop.xlane.xlu0 %11935 }
 0xe5a   : > { %v11956_v8 = vmul.f32 0.03125, %v11936_v17  ;;  %v11933_v11 = vpop.xlane.xlu1 %11932 }
 0xe5b   : > { %v11955_v41 = vmul.f32 0.03125, %v11933_v11 }
 0xe5c   : > { %v11964_v46 = vsub.f32 %v11924_v37, %v11956_v8 }
 0xe5d   : > { %v11963_v1 = vsub.f32 %v11923_v19, %v11955_v41 }
 0xe5e   : > { %v11972_v31 = vmul.f32 %v11964_v46, %v11964_v46 }
 0xe5f   : > { %v11971_v62 = vmul.f32 %v11963_v1, %v11963_v1 }
 0xe60   : > { %v11982_v6 = vsel %vm5841_vm6, %v11972_v31, 0.0 }
 0xe61   : > { %11983 = vadd.xlane.f32.xlu0 %v11982_v6  ;;  %v11979_v28 = vsel %vm5841_vm6, %v11971_v62, 0.0 }
 0xe62   : > { %11980 = vadd.xlane.f32.xlu1 %v11979_v28 }
 0xe85   : > { %v11942_v57 = vpop.xlane.xlu0 %11941 }
 0xe86   : > { %v11958_v38 = vmul.f32 0.03125, %v11942_v57  ;;  %v11939_v56 = vpop.xlane.xlu1 %11938 }
 0xe87   : > { %v11957_v58 = vmul.f32 0.03125, %v11939_v56 }
 0xe88   : > { %v16417_v34 = vsub.f32 %v11926_v48, %v11958_v38 }
 0xe89   : > { %v16419_v61 = vsub.f32 %v11925_v2, %v11957_v58 }
 0xe8a   : > { %v11974_v18 = vmul.f32 %v16417_v34, %v16417_v34 }
 0xe8b   : > { %v11973_v12 = vmul.f32 %v16419_v61, %v16419_v61 }
 0xe8c   : > { %v11988_v35 = vsel %vm5841_vm6, %v11974_v18, 0.0 }
 0xe8d   : > { %11989 = vadd.xlane.f32.xlu0 %v11988_v35  ;;  %v11985_v55 = vsel %vm5841_vm6, %v11973_v12, 0.0 }
 0xe8e   : > { %11986 = vadd.xlane.f32.xlu1 %v11985_v55 }
 0xe92   : > { %v11948_v49 = vpop.xlane.xlu0 %11947 }
 0xe93   : > { %v11960_v54 = vmul.f32 0.03125, %v11948_v49  ;;  %v11945_v36 = vpop.xlane.xlu1 %11944 }
 0xe94   : > { %v11959_v59 = vmul.f32 0.03125, %v11945_v36 }
 0xe95   : > { %v16427_v40 = vsub.f32 %v11928_v29, %v11960_v54 }
 0xe96   : > { %v16429_v27 = vsub.f32 %v11927_v23, %v11959_v59  ;;  %v16454_v23 = vrot.slane %v16207_v25, %v12049_v32 }
 0xe97   : > { %v11976_v63 = vmul.f32 %v16427_v40, %v16427_v40 }
 0xe98   : > { %v11975_v26 = vmul.f32 %v16429_v27, %v16429_v27 }
 0xe99   : > { %v11994_v45 = vsel %vm5841_vm6, %v11976_v63, 0.0 }
 0xe9a   : > { %11995 = vadd.xlane.f32.xlu0 %v11994_v45  ;;  %v11991_v51 = vsel %vm5841_vm6, %v11975_v26, 0.0 }
 0xe9b   : > { %11992 = vadd.xlane.f32.xlu1 %v11991_v51 }
 0xeb7   : > { %v11954_v43 = vpop.xlane.xlu0 %11953 }
 0xeb8   : > { %v11962_v30 = vmul.f32 0.03125, %v11954_v43  ;;  %v11951_v39 = vpop.xlane.xlu1 %11950 }
 0xeb9   : > { %v11961_v16 = vmul.f32 0.03125, %v11951_v39 }
 0xeba   : > { %v16437_v37 = vsub.f32 %v11930_v9, %v11962_v30 }
 0xebb   : > { %v16439_v19 = vsub.f32 %v11929_v22, %v11961_v16 }
 0xebc   : > { %v11978_v5 = vmul.f32 %v16437_v37, %v16437_v37 }
 0xebd   : > { %v11977_v53 = vmul.f32 %v16439_v19, %v16439_v19 }
 0xebe   : > { %v12000_v10 = vsel %vm5841_vm6, %v11978_v5, 0.0 }
 0xebf   : > { %12001 = vadd.xlane.f32.xlu0 %v12000_v10  ;;  %v11997_v50 = vsel %vm5841_vm6, %v11977_v53, 0.0 }
 0xec0   : > { %11998 = vadd.xlane.f32.xlu1 %v11997_v50 }
 0xeee   : > { %v11984_v33 = vpop.xlane.xlu0 %11983 }
 0xeef   : > { %v12004_v15 = vmul.f32 0.03125, %v11984_v33  ;;  %v11981_v48 = vpop.xlane.xlu1 %11980 }
 0xef0   : > { %v12003_v2 = vmul.f32 0.03125, %v11981_v48 }
 0xef1   : > { %v12012_v7 = vadd.f32 1e-05, %v12004_v15 }
 0xef2   : > { %v12011_v42 = vadd.f32 1e-05, %v12003_v2 }
 0xef3   : > { %13840 = vrsqrt.f32 %v12012_v7 }
 0xef4   : > { %13842 = vrsqrt.f32 %v12011_v42 }
 0xefd   : > { %v13841_v24 = vpop.eup %13840 }
 0xefe   : > { %v13843_v29 = vpop.eup %13842  ;;  %v12028_v4 = vmul.f32 %v13841_v24, %v11964_v46 }
 0xeff   : > { %v12027_v14 = vmul.f32 %v13843_v29, %v11963_v1 }
 0xf00   : > { %v12040_v13 = vmul.f32 %v16451_v3, %v12028_v4 }
 0xf01   : > { %v12039_v60 = vmul.f32 %v16451_v3, %v12027_v14 }
 0xf02   : > { %v12052_v21 = vadd.f32 %v16454_v23, %v12040_v13 }
 0xf03   : > { %v12051_v47 = vadd.f32 %v16454_v23, %v12039_v60 }
 0xf04   : > { %12060 = vst.msk [vmem:[%s16462_s11 + $0x8] sm:$0xff] %vm5841_vm6, %v12052_v21 }
 0xf05   : > { %12059 = vst.msk [vmem:[%s16462_s11] sm:$0xff] %vm5841_vm6, %v12051_v47 }
 0xf1a   : > { %v11990_v25 = vpop.xlane.xlu0 %11989 }
 0xf1b   : > { %v12006_v44 = vmul.f32 0.03125, %v11990_v25  ;;  %v11987_v9 = vpop.xlane.xlu1 %11986 }
 0xf1c   : > { %v12005_v22 = vmul.f32 0.03125, %v11987_v9 }
 0xf1d   : > { %v12014_v20 = vadd.f32 1e-05, %v12006_v44 }
 0xf1e   : > { %v12013_v52 = vadd.f32 1e-05, %v12005_v22 }
 0xf1f   : > { %13844 = vrsqrt.f32 %v12014_v20 }
 0xf20   : > { %13846 = vrsqrt.f32 %v12013_v52 }
 0xf27   : > { %v11996_v17 = vpop.xlane.xlu0 %11995 }
 0xf28   : > { %v12008_v8 = vmul.f32 0.03125, %v11996_v17  ;;  %v11993_v11 = vpop.xlane.xlu1 %11992 }
 0xf29   : > { %v13845_v41 = vpop.eup %13844  ;;  %v12007_v46 = vmul.f32 0.03125, %v11993_v11 }
 0xf2a   : > { %v13847_v1 = vpop.eup %13846  ;;  %v12030_v31 = vmul.f32 %v13845_v41, %v16417_v34  ;;  %v12016_v62 = vadd.f32 1e-05, %v12008_v8 }
 0xf2b   : > { %v12029_v6 = vmul.f32 %v13847_v1, %v16419_v61  ;;  %v12015_v28 = vadd.f32 1e-05, %v12007_v46 }
 0xf2c   : > { %v12042_v57 = vmul.f32 %v16451_v3, %v12030_v31  ;;  %13848 = vrsqrt.f32 %v12016_v62 }
 0xf2d   : > { %v12041_v38 = vmul.f32 %v16451_v3, %v12029_v6  ;;  %13850 = vrsqrt.f32 %v12015_v28 }
 0xf2e   : > { %v12054_v56 = vadd.f32 %v16454_v23, %v12042_v57 }
 0xf2f   : > { %v12053_v58 = vadd.f32 %v16454_v23, %v12041_v38 }
 0xf30   : > { %12062 = vst.msk [vmem:[%s16462_s11 + $0x18] sm:$0xff] %vm5841_vm6, %v12054_v56 }
 0xf31   : > { %12061 = vst.msk [vmem:[%s16462_s11 + $0x10] sm:$0xff] %vm5841_vm6, %v12053_v58 }
 0xf36   : > { %v13849_v34 = vpop.eup %13848 }
 0xf37   : > { %v13851_v18 = vpop.eup %13850  ;;  %v12032_v61 = vmul.f32 %v13849_v34, %v16427_v40 }
 0xf38   : > { %v12031_v12 = vmul.f32 %v13851_v18, %v16429_v27 }
 0xf39   : > { %v12044_v35 = vmul.f32 %v16451_v3, %v12032_v61 }
 0xf3a   : > { %v12043_v55 = vmul.f32 %v16451_v3, %v12031_v12 }
 0xf3b   : > { %v12056_v49 = vadd.f32 %v16454_v23, %v12044_v35 }
 0xf3c   : > { %v12055_v54 = vadd.f32 %v16454_v23, %v12043_v55 }
 0xf3d   : > { %12064 = vst.msk [vmem:[%s16462_s11 + $0x28] sm:$0xff] %vm5841_vm6, %v12056_v49 }
 0xf3e   : > { %12063 = vst.msk [vmem:[%s16462_s11 + $0x20] sm:$0xff] %vm5841_vm6, %v12055_v54 }
 0xf4c   : > { %v12002_v36 = vpop.xlane.xlu0 %12001 }
 0xf4d   : > { %v12010_v59 = vmul.f32 0.03125, %v12002_v36  ;;  %v11999_v63 = vpop.xlane.xlu1 %11998 }
 0xf4e   : > { %v12009_v40 = vmul.f32 0.03125, %v11999_v63 }
 0xf4f   : > { %v12018_v26 = vadd.f32 1e-05, %v12010_v59 }
 0xf50   : > { %v12017_v27 = vadd.f32 1e-05, %v12009_v40 }
 0xf51   : > { %13852 = vrsqrt.f32 %v12018_v26 }
 0xf52   : > { %13854 = vrsqrt.f32 %v12017_v27 }
 0xf5b   : > { %v13853_v45 = vpop.eup %13852 }
 0xf5c   : > { %v13855_v51 = vpop.eup %13854  ;;  %v12034_v43 = vmul.f32 %v13853_v45, %v16437_v37 }
 0xf5d   : > { %v12033_v30 = vmul.f32 %v13855_v51, %v16439_v19 }
 0xf5e   : > { %v12046_v39 = vmul.f32 %v16451_v3, %v12034_v43 }
 0xf5f   : > { %v12045_v16 = vmul.f32 %v16451_v3, %v12033_v30 }
 0xf60   : > { %v12058_v5 = vadd.f32 %v16454_v23, %v12046_v39 }
 0xf61   : > { %v12057_v53 = vadd.f32 %v16454_v23, %v12045_v16 }
 0xf62   : > { %12066 = vst.msk [vmem:[%s16462_s11 + $0x38] sm:$0xff] %vm5841_vm6, %v12058_v5 }
 0xf63   : > { %12065 = vst.msk [vmem:[%s16462_s11 + $0x30] sm:$0xff] %vm5841_vm6, %v12057_v53 }
 0xf64   : > { %13891 = shalt.err (!%p13888_p3)
}
 0xf65   : > { %s13892_s16 = scalar_lea.hbm %s16498_s26, 1024  ;;  %s13896_s8 = scalar_lea.hbm %s16556_s5, 2048 }
 0xf66   : > { %p13893_p4 = scmp.ne.s32.totalorder %s16498_s26, %s13892_s16  ;;  %p13897_p9 = scmp.lt.u32.totalorder %s16498_s26, %s16556_s5 }
 0xf67   : > { %p13898_p10 = scmp.lt.u32.totalorder %s13896_s8, %s13892_s16  ;;  %p13900_p12 = scmp.lt.u32.totalorder %s13892_s16, %s16498_s26 }
 0xf68   : > { %p13894_p7 = pnand %p13893_p4, %p14021_p5 }
 0xf69   : > { %p13899_p11 = por %p13898_p10, %p13897_p9 }
 0xf6a   : > { %p13895_p8 = pneg %p13894_p7 }
 0xf6b   : > { %p13901_p13 = por %p13900_p12, %p13899_p11 }
 0xf6d   : > { %p13902_p0 = pnand %p13901_p13, %p13895_p8 }
 0xf6f   : > { %13905 = shalt.err (!%p13902_p0)
}
 0xf70   : > { %s13952_s12 = smov 128  }
 0xf71   : > { %13503 = dma.vmem_to_hbm [thread:$0]  (%p14021_p5), %s16501_s17, 1024, %s16498_s26, %s16509_s22, %s13952_s12, %s13952_s12, %s13948_s7  }
 0xf72 PF: > { %p13509_p1 = scmp.ge.s32.totalorder %s13940_s21, 2  ;;  %s12096_s23 = sand.u32 1, %s13928_s18  }
 0xf73   : > { %s12097_s25 = scalar_lea.sflag [#allocation3], %s12096_s23 }
 0xf74   : > { %p13506_p2 = pnand %p13509_p1, %p14025_p6 }
 0xf76   : > { %13923 = dma.done.wait (!%p13506_p2), %s12097_s25, 1024  }
 0xf77   : > { %13925 = vsyncadd (!%p13506_p2), %s12097_s25, 4294966272  ;;  %p15_p3 = scmp.ge.s32.totalorder %s14008_s24, 4   ;;  %s16618_s18 = smov %s13932_s19 }
 0xf78   : > { %s16619_s19 = smov %s13936_s20  ;;  %s16620_s20 = smov %s14019_s27 }
 0xf79   : > { %s16621_s21 = smov %s14008_s24  ;;  %17 = sbr.rel (!%p15_p3) target bundleno = 3 (0x3), region = 78 }
 0xf80   :  { %12102 = vsyncpa [#allocation3], 1 }
 0xf81   :  { %12104 = vsyncpa [#allocation3 + $0x1], 1 }

</bundles_post_ra>
